<compile_context>
chip_gen: v7x
topology: tpu7x:2x2x1
jax: 0.10.0
libtpu: 0.0.40
codegen_flags: <defaults>
</compile_context>

<pallas_src>
import math

import jax
import jax.numpy as jnp
from jax.experimental import pallas as pl
from jax.experimental.pallas import tpu as pltpu

LATENT_DIM = 100
LATENT_PAD = 128          # lane-aligned K for the first matmul
H1, H2, H3, OUT = 128, 512, 1024, 3
OUT_PAD = 128             # lane-dense output; sliced back to 3 outside


# ----------------------------------------------------------------------------
# Kernel body: whole 4-layer MLP on one (batch_tile, *) activation tile.
# ----------------------------------------------------------------------------
def _mlp_kernel(x_ref, w1_ref, b1_ref, w2_ref, b2_ref, w3_ref, b3_ref,
                w4_ref, b4_ref, o_ref):
    # bf16 operands on the MXU, f32 accumulation, ReLU on the VPU.
    h = jnp.dot(x_ref[...], w1_ref[...],
                preferred_element_type=jnp.float32) + b1_ref[...]
    h = jnp.maximum(h, 0.0).astype(jnp.bfloat16)

    h = jnp.dot(h, w2_ref[...],
                preferred_element_type=jnp.float32) + b2_ref[...]
    h = jnp.maximum(h, 0.0).astype(jnp.bfloat16)

    h = jnp.dot(h, w3_ref[...],
                preferred_element_type=jnp.float32) + b3_ref[...]
    h = jnp.maximum(h, 0.0).astype(jnp.bfloat16)

    y = jnp.dot(h, w4_ref[...],
                preferred_element_type=jnp.float32) + b4_ref[...]
    o_ref[...] = y.astype(o_ref.dtype)     # bf16 lane-dense store (unmasked vst)


# ----------------------------------------------------------------------------
# One-time parameter layout prep (init / param-load time, NOT per forward).
# ----------------------------------------------------------------------------
def prepare_params(params):
    """Cast weights to bf16 and pad to MXU/lane-aligned shapes — once.

    w1: (100,128) -> (128,128) bf16   (K of first matmul lane-aligned)
    w4: (1024,3)  -> (1024,128) bf16  (lane-dense N; zero cols cost ~250 KiB of
                                       DMA but only once per forward call, not
                                       per grid step, and never per-call XLA
                                       prep kernels anymore)
    b4: (1,3)     -> (1,128) f32
    Biases stay f32 (added after the f32 accumulation).
    """
    (w1, b1), (w2, b2), (w3, b3), (w4, b4) = params
    w1_p = jnp.pad(w1, ((0, LATENT_PAD - LATENT_DIM), (0, 0))).astype(jnp.bfloat16)
    w2_p = w2.astype(jnp.bfloat16)
    w3_p = w3.astype(jnp.bfloat16)
    w4_p = jnp.pad(w4, ((0, 0), (0, OUT_PAD - OUT))).astype(jnp.bfloat16)
    b4_p = jnp.pad(b4, ((0, 0), (0, OUT_PAD - OUT))).astype(jnp.float32)
    return (w1_p, b1.astype(jnp.float32), w2_p, b2.astype(jnp.float32),
            w3_p, b3.astype(jnp.float32), w4_p, b4_p)


def _pick_batch_tile(B):
    """Adaptive tile: never below 256 (keeps the 256-wide MXU fed on v6e/v7x);
    larger for big batches to amortize the ~0.35 us per-grid-step overhead.
    Even at tile=1024 the largest intermediate (tile x 1024 f32 = 4 MiB) is far
    under the 32 MiB scoped VMEM default on every generation."""
    if B >= 4096:
        return 1024
    if B >= 2048:
        return 512
    return 256


# ----------------------------------------------------------------------------
# Forward wrapper.
# ----------------------------------------------------------------------------
def gan_model_forward(x, prepped_params, *, batch_tile=None):
    """GANModel MLP forward via one fused Pallas kernel.

    x: (B, 100) float32.  prepped_params: output of prepare_params().
    Returns (B, 3) float32.
    On v7x keep B / batch_tile >= 2 (and even) so both TensorCores are used.
    """
    w1_p, b1, w2_p, b2, w3_p, b3, w4_p, b4_p = prepped_params
    B, d = x.shape
    assert d == LATENT_DIM

    if batch_tile is None:
        batch_tile = _pick_batch_tile(B)

    n_tiles = -(-B // batch_tile)          # ceil
    B_pad = n_tiles * batch_tile

    # Single fused pad+cast over x (one XLA fusion when jitted): batch pad to a
    # tile multiple (no-op when B % batch_tile == 0) and lane pad 100 -> 128.
    x_p = jnp.pad(
        x, ((0, B_pad - B), (0, LATENT_PAD - LATENT_DIM))
    ).astype(jnp.bfloat16)

    # Weights/biases: full-array blocks with a constant index_map -> fetched
    # once per call and VMEM-resident across all grid steps.
    def full_spec(shape):
        return pl.BlockSpec(shape, lambda i: (0, 0))

    in_specs = [
        pl.BlockSpec((batch_tile, LATENT_PAD), lambda i: (i, 0)),   # x tile
        full_spec(w1_p.shape), full_spec(b1.shape),
        full_spec(w2_p.shape), full_spec(b2.shape),
        full_spec(w3_p.shape), full_spec(b3.shape),
        full_spec(w4_p.shape), full_spec(b4_p.shape),
    ]
    out_spec = pl.BlockSpec((batch_tile, OUT_PAD), lambda i: (i, 0))

    out_padded = pl.pallas_call(
        _mlp_kernel,
        out_shape=jax.ShapeDtypeStruct((B_pad, OUT_PAD), jnp.bfloat16),
        grid_spec=pltpu.PrefetchScalarGridSpec(
            num_scalar_prefetch=0,
            grid=(n_tiles,),
            in_specs=in_specs,
            out_specs=out_spec,
        ),
        compiler_params=pltpu.CompilerParams(
            dimension_semantics=("parallel",),
        ),
    )(x_p, w1_p, b1, w2_p, b2, w3_p, b3, w4_p, b4_p)

    # Slice away padding (rows beyond B are bias-only garbage, never exposed)
    # and cast back to f32; fuses into one tiny consumer op under jit.
    return out_padded[:B, :OUT].astype(jnp.float32)


# ----------------------------------------------------------------------------
# Init + reference + demo.
# ----------------------------------------------------------------------------
def init_params(key):
    """Deterministic init mimicking PyTorch nn.Linear default:
    U(-1/sqrt(fan_in), 1/sqrt(fan_in)) for both weight and bias."""
    dims = [(LATENT_DIM, H1), (H1, H2), (H2, H3), (H3, OUT)]
    params = []
    for (fan_in, fan_out) in dims:
        key, kw, kb = jax.random.split(key, 3)
        bound = 1.0 / math.sqrt(fan_in)
        w = jax.random.uniform(kw, (fan_in, fan_out), jnp.float32,
                               minval=-bound, maxval=bound)
        b = jax.random.uniform(kb, (1, fan_out), jnp.float32,
                               minval=-bound, maxval=bound)
        params.append((w, b))
    return params


def reference_forward(x, params):
    """Pure-f32 JAX reference (exact nn.Linear semantics, no final activation
    — matches the PyTorch module, which ends in a bare Linear(1024, 3))."""
    h = x
    for i, (w, b) in enumerate(params):
        h = h @ w + b
        if i < len(params) - 1:
            h = jnp.maximum(h, 0.0)
    return h


if __name__ == "__main__":
    key = jax.random.PRNGKey(0)
    kp, kx = jax.random.split(key)
    params = init_params(kp)

    # One-time layout prep (would live at model init / checkpoint load).
    prepped = prepare_params(params)
    prepped = jax.tree_util.tree_map(jax.block_until_ready, prepped)

    batch = 512                       # 2 grid steps at batch_tile=256
    x = jax.random.normal(kx, (batch, LATENT_DIM), jnp.float32)

    fwd = jax.jit(lambda xs: gan_model_forward(xs, prepped))
    out = jax.block_until_ready(fwd(x))

    ref = reference_forward(x, params)
    assert out.shape == (batch, OUT)
    # bf16 MXU operands / bf16 output with f32 accumulation: loose tolerance.
    assert jnp.allclose(out, ref, atol=2e-2, rtol=2e-2), "mismatch vs reference"

    # TODO(synk): GANModel.generate / vector_to_smiles is host-side random
    # SMILES-string selection (no tensor compute) — not a kernel concern.
    print("KERNEL_OK")
</pallas_src>

<mosaic_0001>
module attributes {stable_mosaic.version = 11 : i64} {
  func.func @_mlp_kernel(%arg0: i32, %arg1: memref<256x128xbf16, #tpu.memory_space<vmem>>, %arg2: memref<128x128xbf16, #tpu.memory_space<vmem>>, %arg3: memref<1x128xf32, #tpu.memory_space<vmem>>, %arg4: memref<128x512xbf16, #tpu.memory_space<vmem>>, %arg5: memref<1x512xf32, #tpu.memory_space<vmem>>, %arg6: memref<512x1024xbf16, #tpu.memory_space<vmem>>, %arg7: memref<1x1024xf32, #tpu.memory_space<vmem>>, %arg8: memref<1024x128xbf16, #tpu.memory_space<vmem>>, %arg9: memref<1x128xf32, #tpu.memory_space<vmem>>, %arg10: memref<256x128xbf16, #tpu.memory_space<vmem>>) attributes {dimension_semantics = [#tpu.dimension_semantics<parallel>], iteration_bounds = array<i64: 2>, scalar_prefetch = 0 : i64, scratch_operands = 0 : i64, tpu.core_type = #tpu.core_type<tc>, window_params = [{transform_indices = @transform_0, window_bounds = array<i64: 256, 128>}, {pipeline_mode = #tpu.pipeline_mode<synchronous>, transform_indices = @transform_1, window_bounds = array<i64: 128, 128>}, {pipeline_mode = #tpu.pipeline_mode<synchronous>, transform_indices = @transform_2, window_bounds = array<i64: 1, 128>}, {pipeline_mode = #tpu.pipeline_mode<synchronous>, transform_indices = @transform_3, window_bounds = array<i64: 128, 512>}, {pipeline_mode = #tpu.pipeline_mode<synchronous>, transform_indices = @transform_4, window_bounds = array<i64: 1, 512>}, {pipeline_mode = #tpu.pipeline_mode<synchronous>, transform_indices = @transform_5, window_bounds = array<i64: 512, 1024>}, {pipeline_mode = #tpu.pipeline_mode<synchronous>, transform_indices = @transform_6, window_bounds = array<i64: 1, 1024>}, {pipeline_mode = #tpu.pipeline_mode<synchronous>, transform_indices = @transform_7, window_bounds = array<i64: 1024, 128>}, {pipeline_mode = #tpu.pipeline_mode<synchronous>, transform_indices = @transform_8, window_bounds = array<i64: 1, 128>}, {transform_indices = @transform_9, window_bounds = array<i64: 256, 128>}]} {
    %c0 = arith.constant 0 : index
    %c0_0 = arith.constant 0 : index
    %0 = vector.load %arg1[%c0, %c0_0] : memref<256x128xbf16, #tpu.memory_space<vmem>>, vector<256x128xbf16>
    %c0_1 = arith.constant 0 : index
    %c0_2 = arith.constant 0 : index
    %1 = vector.load %arg2[%c0_1, %c0_2] : memref<128x128xbf16, #tpu.memory_space<vmem>>, vector<128x128xbf16>
    %cst = arith.constant dense<0.000000e+00> : vector<256x128xf32>
    %2 = tpu.matmul %0, %1, %cst {dimension_numbers = #tpu.dot_dimension_numbers<[1], [0], [0], [1], [0, 0, 1, 1], [], []>} : vector<256x128xbf16>, vector<128x128xbf16>, vector<256x128xf32> -> vector<256x128xf32>
    %c0_3 = arith.constant 0 : index
    %c0_4 = arith.constant 0 : index
    %3 = vector.load %arg3[%c0_3, %c0_4] : memref<1x128xf32, #tpu.memory_space<vmem>>, vector<1x128xf32>
    %4 = vector.broadcast %3 : vector<1x128xf32> to vector<256x128xf32>
    %5 = arith.addf %2, %4 : vector<256x128xf32>
    %cst_5 = arith.constant 0.000000e+00 : f32
    %6 = vector.broadcast %cst_5 : f32 to vector<256x128xf32>
    %7 = arith.maximumf %5, %6 : vector<256x128xf32>
    %8 = arith.truncf %7 : vector<256x128xf32> to vector<256x128xbf16>
    %c0_6 = arith.constant 0 : index
    %c0_7 = arith.constant 0 : index
    %9 = vector.load %arg4[%c0_6, %c0_7] : memref<128x512xbf16, #tpu.memory_space<vmem>>, vector<128x512xbf16>
    %cst_8 = arith.constant dense<0.000000e+00> : vector<256x512xf32>
    %10 = tpu.matmul %8, %9, %cst_8 {dimension_numbers = #tpu.dot_dimension_numbers<[1], [0], [0], [1], [0, 0, 1, 1], [], []>} : vector<256x128xbf16>, vector<128x512xbf16>, vector<256x512xf32> -> vector<256x512xf32>
    %c0_9 = arith.constant 0 : index
    %c0_10 = arith.constant 0 : index
    %11 = vector.load %arg5[%c0_9, %c0_10] : memref<1x512xf32, #tpu.memory_space<vmem>>, vector<1x512xf32>
    %12 = vector.broadcast %11 : vector<1x512xf32> to vector<256x512xf32>
    %13 = arith.addf %10, %12 : vector<256x512xf32>
    %cst_11 = arith.constant 0.000000e+00 : f32
    %14 = vector.broadcast %cst_11 : f32 to vector<256x512xf32>
    %15 = arith.maximumf %13, %14 : vector<256x512xf32>
    %16 = arith.truncf %15 : vector<256x512xf32> to vector<256x512xbf16>
    %c0_12 = arith.constant 0 : index
    %c0_13 = arith.constant 0 : index
    %17 = vector.load %arg6[%c0_12, %c0_13] : memref<512x1024xbf16, #tpu.memory_space<vmem>>, vector<512x1024xbf16>
    %cst_14 = arith.constant dense<0.000000e+00> : vector<256x1024xf32>
    %18 = tpu.matmul %16, %17, %cst_14 {dimension_numbers = #tpu.dot_dimension_numbers<[1], [0], [0], [1], [0, 0, 1, 1], [], []>} : vector<256x512xbf16>, vector<512x1024xbf16>, vector<256x1024xf32> -> vector<256x1024xf32>
    %c0_15 = arith.constant 0 : index
    %c0_16 = arith.constant 0 : index
    %19 = vector.load %arg7[%c0_15, %c0_16] : memref<1x1024xf32, #tpu.memory_space<vmem>>, vector<1x1024xf32>
    %20 = vector.broadcast %19 : vector<1x1024xf32> to vector<256x1024xf32>
    %21 = arith.addf %18, %20 : vector<256x1024xf32>
    %cst_17 = arith.constant 0.000000e+00 : f32
    %22 = vector.broadcast %cst_17 : f32 to vector<256x1024xf32>
    %23 = arith.maximumf %21, %22 : vector<256x1024xf32>
    %24 = arith.truncf %23 : vector<256x1024xf32> to vector<256x1024xbf16>
    %c0_18 = arith.constant 0 : index
    %c0_19 = arith.constant 0 : index
    %25 = vector.load %arg8[%c0_18, %c0_19] : memref<1024x128xbf16, #tpu.memory_space<vmem>>, vector<1024x128xbf16>
    %cst_20 = arith.constant dense<0.000000e+00> : vector<256x128xf32>
    %26 = tpu.matmul %24, %25, %cst_20 {dimension_numbers = #tpu.dot_dimension_numbers<[1], [0], [0], [1], [0, 0, 1, 1], [], []>} : vector<256x1024xbf16>, vector<1024x128xbf16>, vector<256x128xf32> -> vector<256x128xf32>
    %c0_21 = arith.constant 0 : index
    %c0_22 = arith.constant 0 : index
    %27 = vector.load %arg9[%c0_21, %c0_22] : memref<1x128xf32, #tpu.memory_space<vmem>>, vector<1x128xf32>
    %28 = vector.broadcast %27 : vector<1x128xf32> to vector<256x128xf32>
    %29 = arith.addf %26, %28 : vector<256x128xf32>
    %30 = arith.truncf %29 : vector<256x128xf32> to vector<256x128xbf16>
    %c0_23 = arith.constant 0 : index
    %c0_24 = arith.constant 0 : index
    %31 = vector.load %arg10[%c0_23, %c0_24] : memref<256x128xbf16, #tpu.memory_space<vmem>>, vector<256x128xbf16>
    tpu.vector_store %arg10[%c0_23, %c0_24], %30 {strides = array<i32>} : memref<256x128xbf16, #tpu.memory_space<vmem>>, vector<256x128xbf16>,
    return
  }
  func.func @transform_0(%arg0: i32) -> (i32, i32) {
    %c0_i32 = arith.constant 0 : i32
    %c0_i32_0 = arith.constant 0 : i32
    return %arg0, %c0_i32 : i32, i32
  }
  func.func @transform_1(%arg0: i32) -> (i32, i32) {
    %c0_i32 = arith.constant 0 : i32
    %c0_i32_0 = arith.constant 0 : i32
    %c0_i32_1 = arith.constant 0 : i32
    return %c0_i32, %c0_i32_0 : i32, i32
  }
  func.func @transform_2(%arg0: i32) -> (i32, i32) {
    %c0_i32 = arith.constant 0 : i32
    %c0_i32_0 = arith.constant 0 : i32
    %c0_i32_1 = arith.constant 0 : i32
    return %c0_i32, %c0_i32_0 : i32, i32
  }
  func.func @transform_3(%arg0: i32) -> (i32, i32) {
    %c0_i32 = arith.constant 0 : i32
    %c0_i32_0 = arith.constant 0 : i32
    %c0_i32_1 = arith.constant 0 : i32
    return %c0_i32, %c0_i32_0 : i32, i32
  }
  func.func @transform_4(%arg0: i32) -> (i32, i32) {
    %c0_i32 = arith.constant 0 : i32
    %c0_i32_0 = arith.constant 0 : i32
    %c0_i32_1 = arith.constant 0 : i32
    return %c0_i32, %c0_i32_0 : i32, i32
  }
  func.func @transform_5(%arg0: i32) -> (i32, i32) {
    %c0_i32 = arith.constant 0 : i32
    %c0_i32_0 = arith.constant 0 : i32
    %c0_i32_1 = arith.constant 0 : i32
    return %c0_i32, %c0_i32_0 : i32, i32
  }
  func.func @transform_6(%arg0: i32) -> (i32, i32) {
    %c0_i32 = arith.constant 0 : i32
    %c0_i32_0 = arith.constant 0 : i32
    %c0_i32_1 = arith.constant 0 : i32
    return %c0_i32, %c0_i32_0 : i32, i32
  }
  func.func @transform_7(%arg0: i32) -> (i32, i32) {
    %c0_i32 = arith.constant 0 : i32
    %c0_i32_0 = arith.constant 0 : i32
    %c0_i32_1 = arith.constant 0 : i32
    return %c0_i32, %c0_i32_0 : i32, i32
  }
  func.func @transform_8(%arg0: i32) -> (i32, i32) {
    %c0_i32 = arith.constant 0 : i32
    %c0_i32_0 = arith.constant 0 : i32
    %c0_i32_1 = arith.constant 0 : i32
    return %c0_i32, %c0_i32_0 : i32, i32
  }
  func.func @transform_9(%arg0: i32) -> (i32, i32) {
    %c0_i32 = arith.constant 0 : i32
    %c0_i32_0 = arith.constant 0 : i32
    return %arg0, %c0_i32 : i32, i32
  }
}

</mosaic_0001>

<bundles_post_ra>
// kernel: _lambda_.1
= control target key start
LH: loop header
LB: loop body
LE: loop exit
PB: predicated region body
PF: predicated region fallthrough
CT: control target
= control target key end

     0   :  { %s8223_s30 = smov 0   ;;  %s11313_s0 = inlined_call_operand.vmem [shape: bf16[512,128], index: 0, kind: input, shape index: {}]   ;;  %s11314_s1 = inlined_call_operand.vmem [shape: bf16[128,128], index: 1, kind: input, shape index: {}]   ;;  %s11315_s2 = inlined_call_operand.vmem [shape: f32[1,128], index: 2, kind: input, shape index: {}]   ;;  %s11316_s3 = inlined_call_operand.vmem [shape: bf16[128,512], index: 3, kind: input, shape index: {}]   ;;  %s11317_s4 = inlined_call_operand.vmem [shape: f32[1,512], index: 4, kind: input, shape index: {}]   ;;  %s11318_s5 = inlined_call_operand.vmem [shape: bf16[512,1024], index: 5, kind: input, shape index: {}]   ;;  %s11319_s6 = inlined_call_operand.vmem [shape: f32[1,1024], index: 6, kind: input, shape index: {}]   ;;  %s11320_s7 = inlined_call_operand.vmem [shape: bf16[1024,128], index: 7, kind: input, shape index: {}]   ;;  %s11321_s8 = inlined_call_operand.vmem [shape: f32[1,128], index: 8, kind: input, shape index: {}]   ;;  %s11322_s9 = inlined_call_operand.vmem [shape: bf16[512,128], index: 9, kind: output, shape index: {}]  }
   0x1 LB: > { %s6422_s10 = sadd.s32 4294967295, %s8170_s30   ;;  %p6426_p0 = scmp.ge.s32.totalorder %s8170_s30, 1  ;;  %s8170_s30 = sphi %s8223_s30, %s19_s30  }
   0x2   : > { %p288_p1 = scmp.lt.s32.totalorder %s8170_s30, 3 }
   0x4   : > { %p289_p2 = pnand %p6426_p0, %p288_p1 }
   0x6   : > { %292 = sbr.rel (%p289_p2) target bundleno = 1475 (0x5c3), region = 56 }
   0xd   : > { %v8027_v0 = vld [vmem:[%s11314_s1] sm:$0xff]   ;;  %s6427_s13 = sshll.u32 %s6422_s10, 5  ;;  %v8028_v1 = vld [vmem:[%s11314_s1 + $0x8] sm:$0xff]   ;;  %v8029_v2 = vld [vmem:[%s11314_s1 + $0x10] sm:$0xff]   ;;  %v8172_v56 = vmov 0  }
   0xe   : > { %p325_p3 = scmp.lt.s32.totalorder %s6427_s13, 63  ;;  %7442 = vmatprep.subr.bf16.mxu0 %v8027_v0  ;;  %7490 = vmatprep.subr.bf16.mxu1 %v8027_v0  ;;  %v8030_v3 = vld [vmem:[%s11314_s1 + $0x18] sm:$0xff]   ;;  %v8031_v5 = vld [vmem:[%s11314_s1 + $0x20] sm:$0xff]   ;;  %v8032_v6 = vld [vmem:[%s11314_s1 + $0x28] sm:$0xff]  }
   0xf   : > { %7443 = vmatpush3.bf16.msra.mxu0 %v8027_v0  ;;  %7498 = vmatpush3.bf16.msra.mxu1 %v8027_v0  ;;  %v8033_v8 = vld [vmem:[%s11314_s1 + $0x30] sm:$0xff]   ;;  %v8034_v9 = vld [vmem:[%s11314_s1 + $0x38] sm:$0xff]   ;;  %v8382_v57 = vld [vmem:[%s11318_s5] sm:$0xff] }
  0x10   : > { %s11499_s13 = smov (!%p325_p3, %s6427_s13), 63  ;;  %7444 = vmatprep.subr.bf16.mxu0 %v8028_v1  ;;  %7491 = vmatprep.subr.bf16.mxu1 %v8028_v1  ;;  %v8053_v10 = vld [vmem:[%s11316_s3 + $0x4] ss:$16 sps:$4 sm:$0xff]   ;;  %v8056_v12 = vld [vmem:[%s11316_s3 + $0xc] ss:$16 sps:$4 sm:$0xff]  }
  0x11   : > { %s6428_s18 = sshll.u32 %s11499_s13, 2  ;;  %v8051_v16 = vld [vmem:[%s11316_s3] ss:$16 sps:$4 sm:$0xff]   ;;  %v8054_v17 = vld [vmem:[%s11316_s3 + $0x8] ss:$16 sps:$4 sm:$0xff]  }
  0x12   : > { %s8248_s21 = scalar_lea.vmem %s11313_s0, %s6428_s18  ;;  %v8059_v18 = vld [vmem:[%s11316_s3 + $0x24] ss:$16 sps:$4 sm:$0xff]   ;;  %v8062_v19 = vld [vmem:[%s11316_s3 + $0x2c] ss:$16 sps:$4 sm:$0xff]   ;;  %v8057_v20 = vld [vmem:[%s11316_s3 + $0x20] ss:$16 sps:$4 sm:$0xff]   ;;  %s11262_s11 = scalar_lea.vmem %s11322_s9, %s6428_s18 }
  0x13   : > { %7445 = vmatpush3.bf16.msra.mxu0 %v8028_v1  ;;  %7499 = vmatpush3.bf16.msra.mxu1 %v8028_v1  ;;  %v8035_v4 = vld [vmem:[%s8248_s21] sm:$0xff]   ;;  %v8036_v11 = vld [vmem:[%s8248_s21 + $0x8] sm:$0xff]   ;;  %v8037_v13 = vld [vmem:[%s8248_s21 + $0x10] sm:$0xff]  }
  0x14   : > { %7446 = vmatprep.subr.bf16.mxu0 %v8029_v2  ;;  %7492 = vmatprep.subr.bf16.mxu1 %v8029_v2  ;;  %v8043_v7 = vld [vmem:[%s8248_s21 + $0x40] sm:$0xff]   ;;  %v8044_v14 = vld [vmem:[%s8248_s21 + $0x48] sm:$0xff]   ;;  %v8045_v15 = vld [vmem:[%s8248_s21 + $0x50] sm:$0xff]  }
  0x15   : > { %7458 = vmatprep.mubr.bf16.mxu0 %v8035_v4  ;;  %7474 = vmatprep.mubr.bf16.mxu1 %v8043_v7  ;;  %v8060_v21 = vld [vmem:[%s11316_s3 + $0x28] ss:$16 sps:$4 sm:$0xff]   ;;  %v8065_v24 = vld [vmem:[%s11316_s3 + $0x44] ss:$16 sps:$4 sm:$0xff]   ;;  %v8068_v27 = vld [vmem:[%s11316_s3 + $0x4c] ss:$16 sps:$4 sm:$0xff]  }
  0x16   : > { %v8038_v22 = vld [vmem:[%s8248_s21 + $0x18] sm:$0xff]   ;;  %v8039_v25 = vld [vmem:[%s8248_s21 + $0x20] sm:$0xff]   ;;  %v8040_v36 = vld [vmem:[%s8248_s21 + $0x28] sm:$0xff]  }
  0x17   : > { %7447 = vmatpush3.bf16.msra.mxu0 %v8029_v2  ;;  %7500 = vmatpush3.bf16.msra.mxu1 %v8029_v2  ;;  %v8046_v23 = vld [vmem:[%s8248_s21 + $0x58] sm:$0xff]   ;;  %v8047_v26 = vld [vmem:[%s8248_s21 + $0x60] sm:$0xff]   ;;  %v8048_v37 = vld [vmem:[%s8248_s21 + $0x68] sm:$0xff]  }
  0x18   : > { %7448 = vmatprep.subr.bf16.mxu0 %v8030_v3  ;;  %7493 = vmatprep.subr.bf16.mxu1 %v8030_v3  ;;  %v8063_v28 = vld [vmem:[%s11316_s3 + $0x40] ss:$16 sps:$4 sm:$0xff]   ;;  %v8066_v29 = vld [vmem:[%s11316_s3 + $0x48] ss:$16 sps:$4 sm:$0xff]   ;;  %v8071_v30 = vld [vmem:[%s11316_s3 + $0x64] ss:$16 sps:$4 sm:$0xff]  }
  0x19   : > { %v8074_v31 = vld [vmem:[%s11316_s3 + $0x6c] ss:$16 sps:$4 sm:$0xff]   ;;  %v8069_v32 = vld [vmem:[%s11316_s3 + $0x60] ss:$16 sps:$4 sm:$0xff]   ;;  %v8072_v33 = vld [vmem:[%s11316_s3 + $0x68] ss:$16 sps:$4 sm:$0xff]  }
  0x1a   : > { %v8077_v34 = vld [vmem:[%s11316_s3 + $0x84] ss:$16 sps:$4 sm:$0xff]   ;;  %v8080_v35 = vld [vmem:[%s11316_s3 + $0x8c] ss:$16 sps:$4 sm:$0xff]   ;;  %v8075_v40 = vld [vmem:[%s11316_s3 + $0x80] ss:$16 sps:$4 sm:$0xff]  }
  0x1b   : > { %7449 = vmatpush3.bf16.msra.mxu0 %v8030_v3  ;;  %7501 = vmatpush3.bf16.msra.mxu1 %v8030_v3  ;;  %v8041_v38 = vld [vmem:[%s8248_s21 + $0x30] sm:$0xff]   ;;  %v8078_v41 = vld [vmem:[%s11316_s3 + $0x88] ss:$16 sps:$4 sm:$0xff]   ;;  %v8086_v43 = vld [vmem:[%s11316_s3 + $0xac] ss:$16 sps:$4 sm:$0xff]  }
  0x1c   : > { %7450 = vmatprep.subr.bf16.mxu0 %v8031_v5  ;;  %7494 = vmatprep.subr.bf16.mxu1 %v8031_v5  ;;  %v8049_v39 = vld [vmem:[%s8248_s21 + $0x70] sm:$0xff]   ;;  %v8084_v45 = vld [vmem:[%s11316_s3 + $0xa8] ss:$16 sps:$4 sm:$0xff]   ;;  %v8092_v49 = vld [vmem:[%s11316_s3 + $0xcc] ss:$16 sps:$4 sm:$0xff]  }
  0x1d   : > { %v8083_v42 = vld [vmem:[%s11316_s3 + $0xa4] ss:$16 sps:$4 sm:$0xff]   ;;  %v8081_v44 = vld [vmem:[%s11316_s3 + $0xa0] ss:$16 sps:$4 sm:$0xff]   ;;  %v8042_v46 = vld [vmem:[%s8248_s21 + $0x38] sm:$0xff]  }
  0x1e   : > { %v8050_v47 = vld [vmem:[%s8248_s21 + $0x78] sm:$0xff]   ;;  %v8089_v48 = vld [vmem:[%s11316_s3 + $0xc4] ss:$16 sps:$4 sm:$0xff]   ;;  %v8087_v50 = vld [vmem:[%s11316_s3 + $0xc0] ss:$16 sps:$4 sm:$0xff]  }
  0x1f   : > { %7451 = vmatpush3.bf16.msra.mxu0 %v8031_v5  ;;  %7502 = vmatpush3.bf16.msra.mxu1 %v8031_v5  ;;  %v8090_v51 = vld [vmem:[%s11316_s3 + $0xc8] ss:$16 sps:$4 sm:$0xff]   ;;  %v8095_v52 = vld [vmem:[%s11316_s3 + $0xe4] ss:$16 sps:$4 sm:$0xff]   ;;  %v8098_v53 = vld [vmem:[%s11316_s3 + $0xec] ss:$16 sps:$4 sm:$0xff]  }
  0x20   : > { %7452 = vmatprep.subr.bf16.mxu0 %v8032_v6  ;;  %7495 = vmatprep.subr.bf16.mxu1 %v8032_v6  ;;  %v8093_v54 = vld [vmem:[%s11316_s3 + $0xe0] ss:$16 sps:$4 sm:$0xff]   ;;  %v8096_v55 = vld [vmem:[%s11316_s3 + $0xe8] ss:$16 sps:$4 sm:$0xff]  }
  0x21   : > { %v8387_v58 = vld [vmem:[%s11318_s5 + $0x20] sm:$0xff]  ;;  %v8394_v60 = vld [vmem:[%s11318_s5 + $0x8] sm:$0xff] }
  0x22   : > { %v6489_v59 = vcombine.high %v8382_v57, %v8387_v58  ;;  %v8399_v61 = vld [vmem:[%s11318_s5 + $0x28] sm:$0xff]  ;;  %v8406_v63 = vld [vmem:[%s11315_s2] ss:$0 sm:$0xff] }
  0x23   : > { %7453 = vmatpush3.bf16.msra.mxu0 %v8032_v6  ;;  %7503 = vmatpush3.bf16.msra.mxu1 %v8032_v6  ;;  %v6491_v62 = vcombine.high %v8394_v60, %v8399_v61 }
  0x24   : > { %7454 = vmatprep.subr.bf16.mxu0 %v8033_v8  ;;  %7496 = vmatprep.subr.bf16.mxu1 %v8033_v8 }
  0x27   : > { %7455 = vmatpush3.bf16.msra.mxu0 %v8033_v8  ;;  %7504 = vmatpush3.bf16.msra.mxu1 %v8033_v8 }
  0x28   : > { %7456 = vmatprep.subr.bf16.mxu0 %v8034_v9  ;;  %7497 = vmatprep.subr.bf16.mxu1 %v8034_v9 }
  0x2b   : > { %7457 = vmatpush3.bf16.msra.mxu0 %v8034_v9  ;;  %7505 = vmatpush3.bf16.msra.mxu1 %v8034_v9 }
  0x2c   : > { %959 = vmatprep.subr.bf16.mxu1 %v8053_v10  ;;  %1152 = vmatprep.subr.bf16.mxu0 %v8056_v12 }
  0x2e   : > { %7459 = vmatmul.mubr.bf16.vlgmr.msra.gmra.mrb[0].mxu0 %v8036_v11  ;;  %7475 = vmatmul.mubr.bf16.vlgmr.msra.gmra.mrb[0].mxu1 %v8044_v14 }
  0x2f   : > { %7462 = vmatprep.mubr.bf16.mxu0 %v8037_v13  ;;  %7478 = vmatprep.mubr.bf16.mxu1 %v8045_v15 }
  0x30   : > { %960 = vmatpush1.bf16.msra.mxu1 %v8051_v16  ;;  %1153 = vmatpush1.bf16.msra.mxu0 %v8054_v17 }
  0x31   : > { %961 = vmatprep.subr.bf16.mxu1 %v8059_v18  ;;  %1154 = vmatprep.subr.bf16.mxu0 %v8062_v19 }
  0x34   : > { %962 = vmatpush1.bf16.msra.mxu1 %v8057_v20  ;;  %1155 = vmatpush1.bf16.msra.mxu0 %v8060_v21  ;;  %v8419_v21 = vld [vmem:[%s11318_s5 + $0x40] sm:$0xff] }
  0x35   : > { %963 = vmatprep.subr.bf16.mxu1 %v8065_v24  ;;  %1156 = vmatprep.subr.bf16.mxu0 %v8068_v27  ;;  %v8434_v27 = vld [vmem:[%s11318_s5 + $0x68] sm:$0xff] }
  0x36   : > { %7463 = vmatmul.mubr.bf16.gmra.mrb[4].mxu0 %v8038_v22  ;;  %7479 = vmatmul.mubr.bf16.gmra.mrb[4].mxu1 %v8046_v23  ;;  %v8424_v22 = vld [vmem:[%s11318_s5 + $0x60] sm:$0xff] }
  0x37   : > { %7466 = vmatprep.mubr.bf16.mxu0 %v8039_v25  ;;  %7482 = vmatprep.mubr.bf16.mxu1 %v8047_v26  ;;  %v8429_v26 = vld [vmem:[%s11318_s5 + $0x48] sm:$0xff] }
  0x38   : > { %964 = vmatpush1.bf16.msra.mxu1 %v8063_v28  ;;  %1157 = vmatpush1.bf16.msra.mxu0 %v8066_v29 }
  0x39   : > { %965 = vmatprep.subr.bf16.mxu1 %v8071_v30  ;;  %1158 = vmatprep.subr.bf16.mxu0 %v8074_v31  ;;  %v6488_v30 = vcombine.low %v8382_v57, %v8387_v58 }
  0x3c   : > { %966 = vmatpush1.bf16.msra.mxu1 %v8069_v32  ;;  %1159 = vmatpush1.bf16.msra.mxu0 %v8072_v33 }
  0x3d   : > { %967 = vmatprep.subr.bf16.mxu1 %v8077_v34  ;;  %1160 = vmatprep.subr.bf16.mxu0 %v8080_v35  ;;  %v6490_v35 = vcombine.low %v8394_v60, %v8399_v61 }
  0x3e   : > { %7467 = vmatmul.mubr.bf16.gmra.mrb[8].mxu0 %v8040_v36  ;;  %7483 = vmatmul.mubr.bf16.gmra.mrb[8].mxu1 %v8048_v37  ;;  %v6496_v36 = vcombine.low %v8419_v21, %v8424_v22 }
  0x3f   : > { %7470 = vmatprep.mubr.bf16.mxu0 %v8041_v38  ;;  %7486 = vmatprep.mubr.bf16.mxu1 %v8049_v39 }
  0x40   : > { %968 = vmatpush1.bf16.msra.mxu1 %v8075_v40  ;;  %1161 = vmatpush1.bf16.msra.mxu0 %v8078_v41  ;;  %v6497_v41 = vcombine.high %v8419_v21, %v8424_v22 }
  0x41   : > { %969 = vmatprep.subr.bf16.mxu1 %v8083_v42  ;;  %1162 = vmatprep.subr.bf16.mxu0 %v8086_v43  ;;  %v6499_v42 = vcombine.high %v8429_v26, %v8434_v27  ;;  %v8457_v43 = vld [vmem:[%s11318_s5 + $0x80] sm:$0xff] }
  0x44   : > { %970 = vmatpush1.bf16.msra.mxu1 %v8081_v44  ;;  %1163 = vmatpush1.bf16.msra.mxu0 %v8084_v45 }
  0x45   : > { %971 = vmatprep.subr.bf16.mxu1 %v8089_v48  ;;  %1164 = vmatprep.subr.bf16.mxu0 %v8092_v49  ;;  %v6498_v48 = vcombine.low %v8429_v26, %v8434_v27  ;;  %v8466_v49 = vld [vmem:[%s11318_s5 + $0xa0] sm:$0xff] }
  0x46   : > { %7471 = vmatmul.mubr.bf16.gmra.mrb[12].mxu0 %v8042_v46  ;;  %7487 = vmatmul.mubr.bf16.gmra.mrb[12].mxu1 %v8050_v47 }
  0x47   : > { %991 = vmatprep.mubr.bf16.mxu1 %v8172_v56  ;;  %1184 = vmatprep.mubr.bf16.mxu0 %v8172_v56 }
  0x48   : > { %972 = vmatpush1.bf16.msra.mxu1 %v8087_v50  ;;  %1165 = vmatpush1.bf16.msra.mxu0 %v8090_v51  ;;  %v8471_v50 = vld [vmem:[%s11318_s5 + $0x88] sm:$0xff] }
  0x49   : > { %973 = vmatprep.subr.bf16.mxu1 %v8095_v52  ;;  %1166 = vmatprep.subr.bf16.mxu0 %v8098_v53  ;;  %v8476_v51 = vld [vmem:[%s11318_s5 + $0xa8] sm:$0xff] }
  0x4c   : > { %974 = vmatpush1.bf16.msra.mxu1 %v8093_v54  ;;  %1167 = vmatpush1.bf16.msra.mxu0 %v8096_v55 }
  0x4d   : > { %3115 = vmatprep.subr.bf16.mxu1 %v6489_v59  ;;  %3501 = vmatprep.subr.bf16.mxu0 %v6491_v62 }
 0x101   : > { %v7460_v0 = vpop.f32.mrb[0].mxu0  ;;  %v7476_v1 = vpop.f32.mrb[0].mxu1 }
 0x102   : > { %v579_v2 = vadd.f32 %v7460_v0, %v8406_v63  ;;  %v570_v3 = vpop.f32.mrb[1].mxu0  ;;  %v643_v4 = vadd.f32 %v7476_v1, %v8406_v63  ;;  %v634_v5 = vpop.f32.mrb[1].mxu1  ;;  %v8487_v0 = vld [vmem:[%s11318_s5 + $0xc0] sm:$0xff] }
 0x103   : > { %v571_v6 = vadd.f32 %v8406_v63, %v570_v3  ;;  %v7461_v7 = vpop.f32.mrb[2].mxu0  ;;  %v635_v8 = vadd.f32 %v8406_v63, %v634_v5  ;;  %v7477_v9 = vpop.f32.mrb[2].mxu1  ;;  %v8492_v1 = vld [vmem:[%s11318_s5 + $0xe0] sm:$0xff]  ;;  %v6507_v5 = vcombine.high %v8471_v50, %v8476_v51 }
 0x104   : > { %v582_v10 = vadd.f32 %v7461_v7, %v8406_v63  ;;  %v573_v11 = vpop.f32.mrb[3].mxu0  ;;  %v715_v12 = vmax.f32 %v643_v4, 0.0  ;;  %v646_v13 = vadd.f32 %v7477_v9, %v8406_v63  ;;  %v637_v14 = vpop.f32.mrb[3].mxu1  ;;  %v699_v18 = vmax.f32 %v579_v2, 0.0  ;;  %v8503_v9 = vld [vmem:[%s11318_s5 + $0xc8] sm:$0xff] }
 0x105   : > { %v574_v15 = vadd.f32 %v8406_v63, %v573_v11  ;;  %v713_v16 = vmax.f32 %v635_v8, 0.0  ;;  %v638_v17 = vadd.f32 %v8406_v63, %v637_v14  ;;  %v697_v23 = vmax.f32 %v571_v6, 0.0 }
 0x106   : > { %v700_v19 = vmax.f32 %v582_v10, 0.0  ;;  %v716_v20 = vmax.f32 %v646_v13, 0.0  ;;  %v6505_v4 = vcombine.high %v8457_v43, %v8466_v49  ;;  %v6504_v8 = vcombine.low %v8457_v43, %v8466_v49  ;;  %v8508_v10 = vld [vmem:[%s11318_s5 + $0xe8] sm:$0xff] }
 0x107   : > { %v698_v24 = vmax.f32 %v574_v15, 0.0  ;;  %v714_v25 = vmax.f32 %v638_v17, 0.0  ;;  %v6506_v13 = vcombine.low %v8471_v50, %v8476_v51  ;;  %v6512_v14 = vcombine.low %v8487_v0, %v8492_v1 }
 0x108   : > { %v8436_v28 = vpack.c.bf16 %v700_v19, %v699_v18  ;;  %v8438_v29 = vpack.c.bf16 %v716_v20, %v715_v12  ;;  %v6513_v19 = vcombine.high %v8487_v0, %v8492_v1 }
 0x109   : > { %v729_v31 = vpack.c.bf16 %v698_v24, %v697_v23  ;;  %v7464_v32 = vpop.f32.mrb[4].mxu0  ;;  %v8442_v33 = vpack.c.bf16 %v714_v25, %v713_v16  ;;  %v7480_v34 = vpop.f32.mrb[4].mxu1  ;;  %v6515_v24 = vcombine.high %v8503_v9, %v8508_v10  ;;  %v8531_v25 = vld [vmem:[%s11318_s5 + $0x100] sm:$0xff] }
 0x10a   : > { %v595_v37 = vadd.f32 %v7464_v32, %v8406_v63  ;;  %v586_v38 = vpop.f32.mrb[5].mxu0  ;;  %v659_v39 = vadd.f32 %v7480_v34, %v8406_v63  ;;  %v650_v40 = vpop.f32.mrb[5].mxu1  ;;  %v6514_v32 = vcombine.low %v8503_v9, %v8508_v10  ;;  %v8542_v34 = vld [vmem:[%s11318_s5 + $0x120] sm:$0xff] }
 0x10b   : > { %992 = vmatmul.mubr.bf16.vlgmr.msra.gmra.mrb[16].mxu1 %v729_v31  ;;  %1185 = vmatmul.mubr.bf16.vlgmr.msra.gmra.mrb[16].mxu0 %v729_v31  ;;  %v587_v44 = vadd.f32 %v8406_v63, %v586_v38  ;;  %v7465_v45 = vpop.f32.mrb[6].mxu0  ;;  %v651_v46 = vadd.f32 %v8406_v63, %v650_v40  ;;  %v7481_v47 = vpop.f32.mrb[6].mxu1  ;;  %v6521_v50 = vcombine.high %v8531_v25, %v8542_v34  ;;  %v1585_v9 = vld [vmem:[%s11318_s5 + $0x180] sm:$0xff] }
 0x10c   : > { %v703_v52 = vmax.f32 %v595_v37, 0.0  ;;  %v598_v53 = vadd.f32 %v7465_v45, %v8406_v63  ;;  %v589_v54 = vpop.f32.mrb[7].mxu0  ;;  %1001 = vmatprep.mubr.bf16.mxu1 %v8172_v56  ;;  %1194 = vmatprep.mubr.bf16.mxu0 %v8172_v56  ;;  %v719_v55 = vmax.f32 %v659_v39, 0.0  ;;  %v662_v57 = vadd.f32 %v7481_v47, %v8406_v63  ;;  %v653_v58 = vpop.f32.mrb[7].mxu1  ;;  %v8568_v47 = vld [vmem:[%s11318_s5 + $0x160] sm:$0xff] }
 0x10d   : > { %v701_v59 = vmax.f32 %v587_v44, 0.0  ;;  %v590_v60 = vadd.f32 %v8406_v63, %v589_v54  ;;  %v717_v61 = vmax.f32 %v651_v46, 0.0  ;;  %v654_v62 = vadd.f32 %v8406_v63, %v653_v58  ;;  %3116 = vmatpush1.bf16.msra.mxu1 %v6488_v30  ;;  %3502 = vmatpush1.bf16.msra.mxu0 %v6490_v35  ;;  %v8547_v35 = vld [vmem:[%s11318_s5 + $0x108] sm:$0xff]  ;;  %v8563_v46 = vld [vmem:[%s11318_s5 + $0x140] sm:$0xff] }
 0x10e   : > { %v704_v2 = vmax.f32 %v598_v53, 0.0  ;;  %v720_v3 = vmax.f32 %v662_v57, 0.0  ;;  %3117 = vmatprep.subr.bf16.mxu1 %v6497_v41  ;;  %3503 = vmatprep.subr.bf16.mxu0 %v6499_v42  ;;  %v6520_v54 = vcombine.low %v8531_v25, %v8542_v34  ;;  %v1582_v57 = vld [vmem:[%s11318_s5 + $0x168] sm:$0xff] }
 0x10f   : > { %v702_v6 = vmax.f32 %v590_v60, 0.0  ;;  %v718_v7 = vmax.f32 %v654_v62, 0.0 }
 0x110   : > { %v8510_v11 = vpack.c.bf16 %v704_v2, %v703_v52  ;;  %v8512_v12 = vpack.c.bf16 %v720_v3, %v719_v55  ;;  %v8579_v55 = vld [vmem:[%s11318_s5 + $0x148] sm:$0xff]  ;;  %v6529_v3 = vcombine.high %v8563_v46, %v8568_v47 }
 0x111   : > { %v8518_v15 = vpack.c.bf16 %v702_v6, %v701_v59  ;;  %v7468_v16 = vpop.f32.mrb[8].mxu0  ;;  %v8520_v17 = vpack.c.bf16 %v718_v7, %v717_v61  ;;  %v7484_v18 = vpop.f32.mrb[8].mxu1  ;;  %3118 = vmatpush1.bf16.msra.mxu1 %v6496_v36  ;;  %3504 = vmatpush1.bf16.msra.mxu0 %v6498_v48  ;;  %v6528_v61 = vcombine.low %v8563_v46, %v8568_v47 }
 0x112   : > { %v611_v20 = vadd.f32 %v7468_v16, %v8406_v63  ;;  %v602_v21 = vpop.f32.mrb[9].mxu0  ;;  %v675_v22 = vadd.f32 %v7484_v18, %v8406_v63  ;;  %v666_v23 = vpop.f32.mrb[9].mxu1  ;;  %3119 = vmatprep.subr.bf16.mxu1 %v6505_v4  ;;  %3505 = vmatprep.subr.bf16.mxu0 %v6507_v5  ;;  %v6530_v18 = vcombine.low %v8579_v55, %v1582_v57 }
 0x113   : > { %1002 = vmatmul.mubr.bf16.gmra.mrb[20].mxu1 %v8436_v28  ;;  %1195 = vmatmul.mubr.bf16.gmra.mrb[20].mxu0 %v8436_v28  ;;  %v603_v26 = vadd.f32 %v8406_v63, %v602_v21  ;;  %v7469_v27 = vpop.f32.mrb[10].mxu0  ;;  %v667_v30 = vadd.f32 %v8406_v63, %v666_v23  ;;  %v7485_v31 = vpop.f32.mrb[10].mxu1  ;;  %v8552_v28 = vld [vmem:[%s11318_s5 + $0x128] sm:$0xff] }
 0x114   : > { %1011 = vmatprep.mubr.bf16.mxu1 %v8172_v56  ;;  %1204 = vmatprep.mubr.bf16.mxu0 %v8172_v56  ;;  %v707_v36 = vmax.f32 %v611_v20, 0.0  ;;  %v614_v37 = vadd.f32 %v7469_v27, %v8406_v63  ;;  %v605_v38 = vpop.f32.mrb[11].mxu0  ;;  %v723_v39 = vmax.f32 %v675_v22, 0.0  ;;  %v678_v40 = vadd.f32 %v7485_v31, %v8406_v63  ;;  %v669_v41 = vpop.f32.mrb[11].mxu1  ;;  %v1586_v20 = vld [vmem:[%s11318_s5 + $0x188] sm:$0xff] }
 0x115   : > { %v705_v42 = vmax.f32 %v603_v26, 0.0  ;;  %v606_v43 = vadd.f32 %v8406_v63, %v605_v38  ;;  %v721_v44 = vmax.f32 %v667_v30, 0.0  ;;  %v670_v45 = vadd.f32 %v8406_v63, %v669_v41  ;;  %3120 = vmatpush1.bf16.msra.mxu1 %v6504_v8  ;;  %3506 = vmatpush1.bf16.msra.mxu0 %v6506_v13  ;;  %v1598_v41 = vld [vmem:[%s11318_s5 + $0x1e8] sm:$0xff] }
 0x116   : > { %v708_v48 = vmax.f32 %v614_v37, 0.0  ;;  %v724_v49 = vmax.f32 %v678_v40, 0.0  ;;  %3121 = vmatprep.subr.bf16.mxu1 %v6513_v19  ;;  %3507 = vmatprep.subr.bf16.mxu0 %v6515_v24  ;;  %v6523_v51 = vcombine.high %v8547_v35, %v8552_v28  ;;  %v6522_v60 = vcombine.low %v8547_v35, %v8552_v28  ;;  %v1589_v19 = vld [vmem:[%s11318_s5 + $0x1a0] sm:$0xff] }
 0x117   : > { %v706_v52 = vmax.f32 %v606_v43, 0.0  ;;  %v722_v53 = vmax.f32 %v670_v45, 0.0  ;;  %v6531_v8 = vcombine.high %v8579_v55, %v1582_v57  ;;  %v6537_v28 = vcombine.high %v1585_v9, %v1589_v19  ;;  %v1593_v37 = vld [vmem:[%s11318_s5 + $0x1c0] sm:$0xff] }
 0x118   : > { %v8584_v58 = vpack.c.bf16 %v708_v48, %v707_v36  ;;  %v8586_v59 = vpack.c.bf16 %v724_v49, %v723_v39  ;;  %v1597_v40 = vld [vmem:[%s11318_s5 + $0x1e0] sm:$0xff] }
 0x119   : > { %v8592_v62 = vpack.c.bf16 %v706_v52, %v705_v42  ;;  %v7472_v0 = vpop.f32.mrb[12].mxu0  ;;  %v8594_v1 = vpack.c.bf16 %v722_v53, %v721_v44  ;;  %v7488_v2 = vpop.f32.mrb[12].mxu1  ;;  %3122 = vmatpush1.bf16.msra.mxu1 %v6512_v14  ;;  %3508 = vmatpush1.bf16.msra.mxu0 %v6514_v32  ;;  %v6536_v44 = vcombine.low %v1585_v9, %v1589_v19  ;;  %v1602_v52 = vld [vmem:[%s11318_s5 + $0x208] sm:$0xff]  ;;  %v1629_v19 = vld [vmem:[%s11318_s5 + $0x2e0] sm:$0xff] }
 0x11a   : > { %v627_v4 = vadd.f32 %v7472_v0, %v8406_v63  ;;  %v618_v5 = vpop.f32.mrb[13].mxu0  ;;  %v691_v6 = vadd.f32 %v7488_v2, %v8406_v63  ;;  %v682_v7 = vpop.f32.mrb[13].mxu1  ;;  %3123 = vmatprep.subr.bf16.mxu1 %v6521_v50  ;;  %3509 = vmatprep.subr.bf16.mxu0 %v6523_v51  ;;  %v6545_v48 = vcombine.high %v1593_v37, %v1597_v40  ;;  %v1601_v50 = vld [vmem:[%s11318_s5 + $0x200] sm:$0xff]  ;;  %v1606_v53 = vld [vmem:[%s11318_s5 + $0x228] sm:$0xff] }
 0x11b   : > { %1012 = vmatmul.mubr.bf16.gmra.mrb[24].mxu1 %v8518_v15  ;;  %1205 = vmatmul.mubr.bf16.gmra.mrb[24].mxu0 %v8518_v15  ;;  %v619_v10 = vadd.f32 %v8406_v63, %v618_v5  ;;  %v7473_v13 = vpop.f32.mrb[14].mxu0  ;;  %v683_v14 = vadd.f32 %v8406_v63, %v682_v7  ;;  %v7489_v16 = vpop.f32.mrb[14].mxu1  ;;  %v1590_v15 = vld [vmem:[%s11318_s5 + $0x1a8] sm:$0xff]  ;;  %v1605_v51 = vld [vmem:[%s11318_s5 + $0x220] sm:$0xff]  ;;  %v6555_v57 = vcombine.high %v1602_v52, %v1606_v53 }
 0x11c   : > { %1021 = vmatprep.mubr.bf16.mxu1 %v8172_v56  ;;  %1214 = vmatprep.mubr.bf16.mxu0 %v8172_v56  ;;  %v711_v21 = vmax.f32 %v627_v4, 0.0  ;;  %v630_v22 = vadd.f32 %v7473_v13, %v8406_v63  ;;  %v621_v23 = vpop.f32.mrb[15].mxu0  ;;  %v727_v24 = vmax.f32 %v691_v6, 0.0  ;;  %v694_v25 = vadd.f32 %v7489_v16, %v8406_v63  ;;  %v685_v26 = vpop.f32.mrb[15].mxu1  ;;  %v1610_v0 = vld [vmem:[%s11318_s5 + $0x248] sm:$0xff]  ;;  %v1617_v7 = vld [vmem:[%s11318_s5 + $0x280] sm:$0xff] }
 0x11d   : > { %v709_v27 = vmax.f32 %v619_v10, 0.0  ;;  %v622_v30 = vadd.f32 %v8406_v63, %v621_v23  ;;  %v725_v31 = vmax.f32 %v683_v14, 0.0  ;;  %v686_v32 = vadd.f32 %v8406_v63, %v685_v26  ;;  %3124 = vmatpush1.bf16.msra.mxu1 %v6520_v54  ;;  %3510 = vmatpush1.bf16.msra.mxu0 %v6522_v60  ;;  %v1594_v63 = vld [vmem:[%s11318_s5 + $0x1c8] sm:$0xff]  ;;  %v1609_v60 = vld [vmem:[%s11318_s5 + $0x240] sm:$0xff] }
 0x11e   : > { %v712_v34 = vmax.f32 %v630_v22, 0.0  ;;  %v728_v35 = vmax.f32 %v694_v25, 0.0  ;;  %3125 = vmatprep.subr.bf16.mxu1 %v6529_v3  ;;  %3511 = vmatprep.subr.bf16.mxu0 %v6531_v8  ;;  %v6539_v36 = vcombine.high %v1586_v20, %v1590_v15  ;;  %v6538_v47 = vcombine.low %v1586_v20, %v1590_v15  ;;  %v1614_v2 = vld [vmem:[%s11318_s5 + $0x268] sm:$0xff]  ;;  %v1621_v8 = vld [vmem:[%s11318_s5 + $0x2a0] sm:$0xff] }
 0x11f   : > { %v710_v38 = vmax.f32 %v622_v30, 0.0  ;;  %v726_v39 = vmax.f32 %v686_v32, 0.0  ;;  %v6547_v49 = vcombine.high %v1594_v63, %v1598_v41  ;;  %v6544_v54 = vcombine.low %v1593_v37, %v1597_v40  ;;  %v1618_v9 = vld [vmem:[%s11318_s5 + $0x288] sm:$0xff]  ;;  %v1633_v25 = vld [vmem:[%s11318_s5 + $0x300] sm:$0xff] }
 0x120   : > { %v8636_v42 = vpack.c.bf16 %v712_v34, %v711_v21  ;;  %v8638_v43 = vpack.c.bf16 %v728_v35, %v727_v24  ;;  %v6553_v55 = vcombine.high %v1601_v50, %v1605_v51  ;;  %v6552_v3 = vcombine.low %v1601_v50, %v1605_v51  ;;  %v1622_v10 = vld [vmem:[%s11318_s5 + $0x2a8] sm:$0xff]  ;;  %v1637_v26 = vld [vmem:[%s11318_s5 + $0x320] sm:$0xff] }
 0x121   : > { %v8640_v45 = vpack.c.bf16 %v710_v38, %v709_v27  ;;  %v8642_v46 = vpack.c.bf16 %v726_v39, %v725_v31  ;;  %3126 = vmatpush1.bf16.msra.mxu1 %v6528_v61  ;;  %3512 = vmatpush1.bf16.msra.mxu0 %v6530_v18  ;;  %v1613_v61 = vld [vmem:[%s11318_s5 + $0x260] sm:$0xff]  ;;  %v6554_v4 = vcombine.low %v1602_v52, %v1606_v53  ;;  %v1626_v20 = vld [vmem:[%s11318_s5 + $0x2c8] sm:$0xff] }
 0x122   : > { %3127 = vmatprep.subr.bf16.mxu1 %v6537_v28  ;;  %3513 = vmatprep.subr.bf16.mxu0 %v6539_v36  ;;  %v6561_v5 = vcombine.high %v1609_v60, %v1613_v61  ;;  %v6563_v6 = vcombine.high %v1610_v0, %v1614_v2  ;;  %v6560_v13 = vcombine.low %v1609_v60, %v1613_v61  ;;  %v1625_v18 = vld [vmem:[%s11318_s5 + $0x2c0] sm:$0xff]  ;;  %v1630_v15 = vld [vmem:[%s11318_s5 + $0x2e8] sm:$0xff] }
 0x123   : > { %1022 = vmatmul.mubr.bf16.gmra.mrb[28].mxu1 %v8510_v11  ;;  %1215 = vmatmul.mubr.bf16.gmra.mrb[28].mxu0 %v8510_v11  ;;  %v6546_v11 = vcombine.low %v1594_v63, %v1598_v41  ;;  %v6569_v14 = vcombine.high %v1617_v7, %v1621_v8  ;;  %v6571_v16 = vcombine.high %v1618_v9, %v1622_v10  ;;  %v1634_v27 = vld [vmem:[%s11318_s5 + $0x308] sm:$0xff]  ;;  %v1641_v35 = vld [vmem:[%s11318_s5 + $0x340] sm:$0xff] }
 0x124   : > { %1031 = vmatprep.mubr.bf16.mxu1 %v8172_v56  ;;  %1224 = vmatprep.mubr.bf16.mxu0 %v8172_v56  ;;  %v6568_v21 = vcombine.low %v1617_v7, %v1621_v8  ;;  %v6570_v22 = vcombine.low %v1618_v9, %v1622_v10  ;;  %v6577_v23 = vcombine.high %v1625_v18, %v1629_v19  ;;  %v1638_v30 = vld [vmem:[%s11318_s5 + $0x328] sm:$0xff]  ;;  %v1645_v28 = vld [vmem:[%s11318_s5 + $0x360] sm:$0xff] }
 0x125   : > { %3128 = vmatpush1.bf16.msra.mxu1 %v6536_v44  ;;  %3514 = vmatpush1.bf16.msra.mxu0 %v6538_v47  ;;  %v6579_v24 = vcombine.high %v1626_v20, %v1630_v15  ;;  %v6576_v31 = vcombine.low %v1625_v18, %v1629_v19  ;;  %v6585_v32 = vcombine.high %v1633_v25, %v1637_v26  ;;  %v1642_v36 = vld [vmem:[%s11318_s5 + $0x348] sm:$0xff]  ;;  %v1649_v41 = vld [vmem:[%s11318_s5 + $0x380] sm:$0xff] }
 0x126   : > { %3129 = vmatprep.subr.bf16.mxu1 %v6545_v48  ;;  %3515 = vmatprep.subr.bf16.mxu0 %v6547_v49  ;;  %v6587_v34 = vcombine.high %v1634_v27, %v1638_v30  ;;  %v1646_v37 = vld [vmem:[%s11318_s5 + $0x368] sm:$0xff]  ;;  %v6584_v38 = vcombine.low %v1633_v25, %v1637_v26  ;;  %v6586_v39 = vcombine.low %v1634_v27, %v1638_v30  ;;  %v1653_v44 = vld [vmem:[%s11318_s5 + $0x3a0] sm:$0xff] }
 0x127   : > { %v6593_v40 = vcombine.high %v1641_v35, %v1645_v28  ;;  %v6595_v63 = vcombine.high %v1642_v36, %v1646_v37  ;;  %v1650_v47 = vld [vmem:[%s11318_s5 + $0x388] sm:$0xff]  ;;  %v6592_v49 = vcombine.low %v1641_v35, %v1645_v28  ;;  %v6601_v50 = vcombine.high %v1649_v41, %v1653_v44  ;;  %v8788_v60 = vld [vmem:[%s11318_s5 + $0x420] sm:$0xff] }
 0x128   : > { %v1654_v48 = vld [vmem:[%s11318_s5 + $0x3a8] sm:$0xff]  ;;  %v6600_v52 = vcombine.low %v1649_v41, %v1653_v44  ;;  %v777_v8 = vld [vmem:[%s11317_s4] sm:$0xf]  ;;  %v8899_v44 = vld [vmem:[%s11318_s5 + $0x10] sm:$0xff] }
 0x129   : > { %3130 = vmatpush1.bf16.msra.mxu1 %v6544_v54  ;;  %3516 = vmatpush1.bf16.msra.mxu0 %v6546_v11  ;;  %v6603_v51 = vcombine.high %v1650_v47, %v1654_v48  ;;  %v6602_v53 = vcombine.low %v1650_v47, %v1654_v48  ;;  %v1662_v54 = vld [vmem:[%s11318_s5 + $0x3e8] sm:$0xff]  ;;  %v8873_v25 = vld [vmem:[%s11318_s5 + $0x4a0] sm:$0xff] }
 0x12a   : > { %3131 = vmatprep.subr.bf16.mxu1 %v6553_v55  ;;  %3517 = vmatprep.subr.bf16.mxu0 %v6555_v57  ;;  %v8856_v19 = vld [vmem:[%s11318_s5 + $0x448] sm:$0xff] }
 0x12b   : > { %1032 = vmatmul.mubr.bf16.gmra.mrb[32].mxu1 %v8592_v62  ;;  %1225 = vmatmul.mubr.bf16.gmra.mrb[32].mxu0 %v8592_v62  ;;  %v6562_v62 = vcombine.low %v1610_v0, %v1614_v2  ;;  %v8797_v0 = vld [vmem:[%s11318_s5 + $0x408] sm:$0xff] }
 0x12c   : > { %1041 = vmatprep.mubr.bf16.mxu1 %v8172_v56  ;;  %1234 = vmatprep.mubr.bf16.mxu0 %v8172_v56  ;;  %v8802_v2 = vld [vmem:[%s11318_s5 + $0x428] sm:$0xff] }
 0x12d   : > { %3132 = vmatpush1.bf16.msra.mxu1 %v6552_v3  ;;  %3518 = vmatpush1.bf16.msra.mxu0 %v6554_v4  ;;  %v6618_v3 = vcombine.low %v8797_v0, %v8802_v2  ;;  %v6619_v4 = vcombine.high %v8797_v0, %v8802_v2  ;;  %v8894_v41 = vld [vmem:[%s11318_s5 + $0x488] sm:$0xff]  ;;  %v9001_v0 = vld [vmem:[%s11318_s5 + $0x18] sm:$0xff] }
 0x12e   : > { %3133 = vmatprep.subr.bf16.mxu1 %v6561_v5  ;;  %3519 = vmatprep.subr.bf16.mxu0 %v6563_v6  ;;  %v779_v5 = vlaneseq  ;;  %v9006_v2 = vld [vmem:[%s11318_s5 + $0x38] sm:$0xff] }
 0x130   : > { %v8818_v6 = vshrl.u32 %v779_v5, 7 }
 0x131   : > { %3134 = vmatpush1.bf16.msra.mxu1 %v6560_v13  ;;  %3520 = vmatpush1.bf16.msra.mxu0 %v6562_v62  ;;  %v8846_v62 = vld [vmem:[%s11318_s5 + $0x440] sm:$0xff] }
 0x132   : > { %3135 = vmatprep.subr.bf16.mxu1 %v6569_v14  ;;  %3521 = vmatprep.subr.bf16.mxu0 %v6571_v16  ;;  %11378 = vst [vmem:[#allocation2_spill] sm:$0xff] %v8818_v6  ;;  %v11325_v7 = vsub.s32 2, %v8818_v6  ;;  %v11323_v9 = vsub.s32 3, %v8818_v6  ;;  %v8851_v14 = vld [vmem:[%s11318_s5 + $0x460] sm:$0xff] }
 0x133   : > { %1042 = vmatmul.mubr.bf16.gmra.mrb[36].mxu1 %v8584_v58  ;;  %1235 = vmatmul.mubr.bf16.gmra.mrb[36].mxu0 %v8584_v58  ;;  %v6578_v58 = vcombine.low %v1626_v20, %v1630_v15  ;;  %v8861_v20 = vld [vmem:[%s11318_s5 + $0x468] sm:$0xff] }
 0x134   : > { %1051 = vmatprep.mubr.bf16.mxu1 %v8172_v56  ;;  %1244 = vmatprep.mubr.bf16.mxu0 %v8172_v56  ;;  %v8841_v13 = vrot.slane %v777_v8, %v11323_v9 }
 0x135   : > { %3136 = vmatpush1.bf16.msra.mxu1 %v6568_v21  ;;  %3522 = vmatpush1.bf16.msra.mxu0 %v6570_v22 }
 0x136   : > { %3137 = vmatprep.subr.bf16.mxu1 %v6577_v23  ;;  %3523 = vmatprep.subr.bf16.mxu0 %v6579_v24  ;;  %v8868_v24 = vld [vmem:[%s11318_s5 + $0x480] sm:$0xff] }
 0x139   : > { %3138 = vmatpush1.bf16.msra.mxu1 %v6576_v31  ;;  %3524 = vmatpush1.bf16.msra.mxu0 %v6578_v58  ;;  %v6624_v58 = vcombine.low %v8846_v62, %v8851_v14 }
 0x13a   : > { %3139 = vmatprep.subr.bf16.mxu1 %v6585_v32  ;;  %3525 = vmatprep.subr.bf16.mxu0 %v6587_v34 }
 0x13b   : > { %1052 = vmatmul.mubr.bf16.gmra.mrb[40].mxu1 %v8640_v45  ;;  %1245 = vmatmul.mubr.bf16.gmra.mrb[40].mxu0 %v8640_v45  ;;  %v6594_v45 = vcombine.low %v1642_v36, %v1646_v37  ;;  %v6625_v36 = vcombine.high %v8846_v62, %v8851_v14  ;;  %v6626_v37 = vcombine.low %v8856_v19, %v8861_v20 }
 0x13c   : > { %1061 = vmatprep.mubr.bf16.mxu1 %v8172_v56  ;;  %1254 = vmatprep.mubr.bf16.mxu0 %v8172_v56 }
 0x13d   : > { %3140 = vmatpush1.bf16.msra.mxu1 %v6584_v38  ;;  %3526 = vmatpush1.bf16.msra.mxu0 %v6586_v39 }
 0x13e   : > { %3141 = vmatprep.subr.bf16.mxu1 %v6593_v40  ;;  %3527 = vmatprep.subr.bf16.mxu0 %v6595_v63  ;;  %v6627_v40 = vcombine.high %v8856_v19, %v8861_v20  ;;  %v6632_v63 = vcombine.low %v8868_v24, %v8873_v25 }
 0x141   : > { %3142 = vmatpush1.bf16.msra.mxu1 %v6592_v49  ;;  %3528 = vmatpush1.bf16.msra.mxu0 %v6594_v45 }
 0x142   : > { %3143 = vmatprep.subr.bf16.mxu1 %v6601_v50  ;;  %3529 = vmatprep.subr.bf16.mxu0 %v6603_v51  ;;  %v8904_v50 = vld [vmem:[%s11318_s5 + $0x4a8] sm:$0xff]  ;;  %v8909_v51 = vld [vmem:[%s11318_s5 + $0x30] sm:$0xff] }
 0x143   : > { %1062 = vmatmul.mubr.bf16.gmra.mrb[44].mxu1 %v8636_v42  ;;  %1255 = vmatmul.mubr.bf16.gmra.mrb[44].mxu0 %v8636_v42  ;;  %v1658_v42 = vld [vmem:[%s11318_s5 + $0x3c8] sm:$0xff] }
 0x144   : > { %1071 = vmatprep.mubr.bf16.mxu1 %v8172_v56  ;;  %1264 = vmatprep.mubr.bf16.mxu0 %v8172_v56  ;;  %v6610_v55 = vcombine.low %v1658_v42, %v1662_v54  ;;  %v6611_v57 = vcombine.high %v1658_v42, %v1662_v54  ;;  %v8914_v42 = vld [vmem:[%s11318_s5 + $0x4c0] sm:$0xff] }
 0x145   : > { %3144 = vmatpush1.bf16.msra.mxu1 %v6600_v52  ;;  %3530 = vmatpush1.bf16.msra.mxu0 %v6602_v53 }
 0x146   : > { %3531 = vmatprep.subr.bf16.mxu0 %v6611_v57  ;;  %v8930_v57 = vld [vmem:[%s11318_s5 + $0x4c8] sm:$0xff] }
 0x149   : > { %3532 = vmatpush1.bf16.msra.mxu0 %v6610_v55  ;;  %v6633_v55 = vcombine.high %v8868_v24, %v8873_v25 }
 0x14a   : > { %3694 = vmatprep.subr.bf16.mxu0 %v6619_v4  ;;  %v9290_v4 = vld [vmem:[%s11318_s5 + $0x688] sm:$0xff] }
 0x14b   : > { %1072 = vmatmul.mubr.bf16.gmra.mrb[48].mxu1 %v8442_v33  ;;  %1265 = vmatmul.mubr.bf16.gmra.mrb[48].mxu0 %v8442_v33  ;;  %v1657_v33 = vld [vmem:[%s11318_s5 + $0x3c0] sm:$0xff] }
 0x14c   : > { %1081 = vmatprep.mubr.bf16.mxu1 %v8172_v56  ;;  %1274 = vmatprep.mubr.bf16.mxu0 %v8172_v56 }
 0x153   : > { %1082 = vmatmul.mubr.bf16.gmra.mrb[52].mxu1 %v8438_v29  ;;  %1275 = vmatmul.mubr.bf16.gmra.mrb[52].mxu0 %v8438_v29  ;;  %v1661_v29 = vld [vmem:[%s11318_s5 + $0x3e0] sm:$0xff] }
 0x154   : > { %1091 = vmatprep.mubr.bf16.mxu1 %v8172_v56  ;;  %1284 = vmatprep.mubr.bf16.mxu0 %v8172_v56  ;;  %v6608_v11 = vcombine.low %v1657_v33, %v1661_v29 }
 0x15b   : > { %1092 = vmatmul.mubr.bf16.gmra.mrb[56].mxu1 %v8520_v17  ;;  %1285 = vmatmul.mubr.bf16.gmra.mrb[56].mxu0 %v8520_v17  ;;  %v6609_v17 = vcombine.high %v1657_v33, %v1661_v29 }
 0x15c   : > { %1101 = vmatprep.mubr.bf16.mxu1 %v8172_v56  ;;  %1294 = vmatprep.mubr.bf16.mxu0 %v8172_v56 }
 0x15d   : > { %3145 = vmatprep.subr.bf16.mxu1 %v6609_v17  ;;  %v8919_v17 = vld [vmem:[%s11318_s5 + $0x4e0] sm:$0xff] }
 0x15e   : > { %3146 = vmatpush1.bf16.msra.mxu1 %v6608_v11 }
 0x163   : > { %1102 = vmatmul.mubr.bf16.gmra.mrb[60].mxu1 %v8512_v12  ;;  %1295 = vmatmul.mubr.bf16.gmra.mrb[60].mxu0 %v8512_v12  ;;  %v8783_v12 = vld [vmem:[%s11318_s5 + $0x400] sm:$0xff] }
 0x164   : > { %1111 = vmatprep.mubr.bf16.mxu1 %v8172_v56  ;;  %1304 = vmatprep.mubr.bf16.mxu0 %v8172_v56  ;;  %v6616_v61 = vcombine.low %v8783_v12, %v8788_v60 }
 0x16b   : > { %1112 = vmatmul.mubr.bf16.gmra.mrb[64].mxu1 %v8594_v1  ;;  %1305 = vmatmul.mubr.bf16.gmra.mrb[64].mxu0 %v8594_v1  ;;  %v6617_v1 = vcombine.high %v8783_v12, %v8788_v60 }
 0x16c   : > { %1121 = vmatprep.mubr.bf16.mxu1 %v8172_v56  ;;  %1314 = vmatprep.mubr.bf16.mxu0 %v8172_v56 }
 0x16d   : > { %3308 = vmatprep.subr.bf16.mxu1 %v6617_v1  ;;  %v8935_v1 = vld [vmem:[%s11318_s5 + $0x4e8] sm:$0xff] }
 0x173   : > { %1122 = vmatmul.mubr.bf16.gmra.mrb[68].mxu1 %v8586_v59  ;;  %1315 = vmatmul.mubr.bf16.gmra.mrb[68].mxu0 %v8586_v59  ;;  %v11326_v59 = vsub.s32 0, %v8818_v6 }
 0x174   : > { %1131 = vmatprep.mubr.bf16.mxu1 %v8172_v56  ;;  %1324 = vmatprep.mubr.bf16.mxu0 %v8172_v56 }
 0x17b   : > { %1132 = vmatmul.mubr.bf16.gmra.mrb[72].mxu1 %v8642_v46  ;;  %1325 = vmatmul.mubr.bf16.gmra.mrb[72].mxu0 %v8642_v46  ;;  %v11324_v46 = vsub.s32 1, %v8818_v6  ;;  %v1786_v6 = vld [vmem:[%s11318_s5 + $0x7c8] sm:$0xff] }
 0x17c   : > { %1141 = vmatprep.mubr.bf16.mxu1 %v8172_v56  ;;  %1334 = vmatprep.mubr.bf16.mxu0 %v8172_v56  ;;  %v8829_v56 = vrot.slane %v777_v8, %v11326_v59 }
 0x17d   : > { %v8837_v10 = vrot.slane %v777_v8, %v11324_v46  ;;  %v9116_v46 = vld [vmem:[%s11318_s5 + $0x5c0] sm:$0xff] }
 0x183   : > { %1142 = vmatmul.mubr.bf16.gmra.mrb[76].mxu1 %v8638_v43  ;;  %1335 = vmatmul.mubr.bf16.gmra.mrb[76].mxu0 %v8638_v43  ;;  %v8833_v43 = vrot.slane %v777_v8, %v11325_v7 }
 0x1de   : > { %v993_v16 = vpop.f32.mrb[16].mxu1  ;;  %v1186_v18 = vpop.f32.mrb[16].mxu0 }
 0x1df   : > { %v994_v15 = vadd.f32 %v993_v16, %v8829_v56  ;;  %v1187_v21 = vadd.f32 %v1186_v18, %v8833_v43  ;;  %v995_v22 = vpop.f32.mrb[17].mxu1  ;;  %v1188_v23 = vpop.f32.mrb[17].mxu0 }
 0x1e0   : > { %v996_v26 = vadd.f32 %v995_v22, %v8837_v10  ;;  %v1189_v27 = vadd.f32 %v1188_v23, %v8841_v13  ;;  %v997_v30 = vpop.f32.mrb[18].mxu1  ;;  %v1190_v31 = vpop.f32.mrb[18].mxu0 }
 0x1e1   : > { %v998_v32 = vadd.f32 %v997_v30, %v8829_v56  ;;  %v1191_v34 = vadd.f32 %v1190_v31, %v8833_v43  ;;  %v999_v35 = vpop.f32.mrb[19].mxu1  ;;  %v1192_v28 = vpop.f32.mrb[19].mxu0  ;;  %v1345_v47 = vmax.f32 %v994_v15, 0.0  ;;  %v1347_v48 = vmax.f32 %v1187_v21, 0.0 }
 0x1e2   : > { %v1000_v38 = vadd.f32 %v999_v35, %v8837_v10  ;;  %v1193_v39 = vadd.f32 %v1192_v28, %v8841_v13  ;;  %v1346_v52 = vmax.f32 %v996_v26, 0.0  ;;  %v1348_v53 = vmax.f32 %v1189_v27, 0.0 }
 0x1e3   : > { %v1349_v49 = vmax.f32 %v998_v32, 0.0  ;;  %v1351_v45 = vmax.f32 %v1191_v34, 0.0  ;;  %v6634_v15 = vcombine.low %v8894_v41, %v8904_v50  ;;  %v6635_v21 = vcombine.high %v8894_v41, %v8904_v50  ;;  %v8956_v32 = vld [vmem:[%s11318_s5 + $0x500] sm:$0xff]  ;;  %v9098_v41 = vld [vmem:[%s11318_s5 + $0x588] sm:$0xff] }
 0x1e4   : > { %v1350_v33 = vmax.f32 %v1000_v38, 0.0  ;;  %v1352_v29 = vmax.f32 %v1193_v39, 0.0  ;;  %v6640_v30 = vcombine.low %v8914_v42, %v8919_v17  ;;  %v6641_v31 = vcombine.high %v8914_v42, %v8919_v17  ;;  %v8961_v34 = vld [vmem:[%s11318_s5 + $0x520] sm:$0xff]  ;;  %v9103_v50 = vld [vmem:[%s11318_s5 + $0x5a8] sm:$0xff] }
 0x1e5   : > { %v8921_v54 = vpack.c.bf16 %v1349_v49, %v1345_v47  ;;  %v8923_v11 = vpack.c.bf16 %v1351_v45, %v1347_v48  ;;  %v6642_v47 = vcombine.low %v8930_v57, %v8935_v1  ;;  %v6667_v42 = vcombine.high %v9098_v41, %v9103_v50  ;;  %v9145_v17 = vld [vmem:[%s11318_s5 + $0x5c8] sm:$0xff] }
 0x1e6   : > { %v8939_v5 = vpack.c.bf16 %v1350_v33, %v1346_v52  ;;  %v8941_v8 = vpack.c.bf16 %v1352_v29, %v1348_v53  ;;  %v1003_v16 = vpop.f32.mrb[20].mxu1  ;;  %v1196_v18 = vpop.f32.mrb[20].mxu0  ;;  %v6643_v53 = vcombine.high %v8930_v57, %v8935_v1  ;;  %v9150_v57 = vld [vmem:[%s11318_s5 + $0x5e8] sm:$0xff] }
 0x1e7   : > { %v1004_v22 = vadd.f32 %v1003_v16, %v8829_v56  ;;  %v1197_v23 = vadd.f32 %v1196_v18, %v8833_v43  ;;  %v1005_v26 = vpop.f32.mrb[21].mxu1  ;;  %v1198_v27 = vpop.f32.mrb[21].mxu0  ;;  %v6648_v18 = vcombine.low %v8956_v32, %v8961_v34 }
 0x1e8   : > { %v1006_v35 = vadd.f32 %v1005_v26, %v8837_v10  ;;  %v1199_v28 = vadd.f32 %v1198_v27, %v8841_v13  ;;  %v1007_v38 = vpop.f32.mrb[22].mxu1  ;;  %v1200_v39 = vpop.f32.mrb[22].mxu0  ;;  %3147 = vmatprep.mubr.bf16.mxu1 %v8939_v5  ;;  %3533 = vmatprep.mubr.bf16.mxu0 %v8939_v5  ;;  %v8988_v26 = vld [vmem:[%s11318_s5 + $0x508] sm:$0xff] }
 0x1e9   : > { %v1008_v48 = vadd.f32 %v1007_v38, %v8829_v56  ;;  %v1201_v49 = vadd.f32 %v1200_v39, %v8833_v43  ;;  %v1009_v45 = vpop.f32.mrb[23].mxu1  ;;  %v1202_v52 = vpop.f32.mrb[23].mxu0  ;;  %3148 = vmatmul.mubr.bf16.vlgmr.msra.gmra.mrb[80].mxu1 %v8921_v54  ;;  %3534 = vmatmul.mubr.bf16.vlgmr.msra.gmra.mrb[80].mxu0 %v8921_v54  ;;  %v1353_v33 = vmax.f32 %v1004_v22, 0.0  ;;  %v8993_v22 = vld [vmem:[%s11318_s5 + $0x528] sm:$0xff]  ;;  %v1355_v27 = vmax.f32 %v1197_v23, 0.0  ;;  %v9011_v38 = vld [vmem:[%s11318_s5 + $0x540] sm:$0xff] }
 0x1ea   : > { %v1010_v29 = vadd.f32 %v1009_v45, %v8837_v10  ;;  %v1203_v16 = vadd.f32 %v1202_v52, %v8841_v13  ;;  %3309 = vmatpush1.bf16.msra.mxu1 %v6616_v61  ;;  %3695 = vmatpush1.bf16.msra.mxu0 %v6618_v3  ;;  %v1354_v12 = vmax.f32 %v1006_v35, 0.0  ;;  %v1356_v3 = vmax.f32 %v1199_v28, 0.0 }
 0x1eb   : > { %v1357_v60 = vmax.f32 %v1008_v48, 0.0  ;;  %v1359_v61 = vmax.f32 %v1201_v49, 0.0  ;;  %3310 = vmatprep.subr.bf16.mxu1 %v6625_v36  ;;  %3696 = vmatprep.subr.bf16.mxu0 %v6627_v40  ;;  %v9016_v36 = vld [vmem:[%s11318_s5 + $0x560] sm:$0xff]  ;;  %v6649_v28 = vcombine.high %v8956_v32, %v8961_v34  ;;  %v6650_v49 = vcombine.low %v8988_v26, %v8993_v22  ;;  %v9190_v40 = vld [vmem:[%s11318_s5 + $0x608] sm:$0xff] }
 0x1ec   : > { %v1358_v23 = vmax.f32 %v1010_v29, 0.0  ;;  %v1360_v35 = vmax.f32 %v1203_v16, 0.0  ;;  %v6656_v20 = vcombine.low %v9011_v38, %v9016_v36 }
 0x1ed   : > { %v9020_v39 = vpack.c.bf16 %v1357_v60, %v1353_v33  ;;  %v9022_v48 = vpack.c.bf16 %v1359_v61, %v1355_v27  ;;  %v6651_v33 = vcombine.high %v8988_v26, %v8993_v22  ;;  %v9043_v27 = vld [vmem:[%s11318_s5 + $0x548] sm:$0xff] }
 0x1ee   : > { %v9028_v45 = vpack.c.bf16 %v1358_v23, %v1354_v12  ;;  %v9030_v52 = vpack.c.bf16 %v1360_v35, %v1356_v3  ;;  %v1013_v29 = vpop.f32.mrb[24].mxu1  ;;  %v1206_v16 = vpop.f32.mrb[24].mxu0  ;;  %3311 = vmatpush1.bf16.msra.mxu1 %v6624_v58  ;;  %3697 = vmatpush1.bf16.msra.mxu0 %v6626_v37  ;;  %v9048_v12 = vld [vmem:[%s11318_s5 + $0x568] sm:$0xff]  ;;  %v6657_v23 = vcombine.high %v9011_v38, %v9016_v36 }
 0x1ef   : > { %v1014_v62 = vadd.f32 %v1013_v29, %v8829_v56  ;;  %v1207_v14 = vadd.f32 %v1206_v16, %v8833_v43  ;;  %v1015_v58 = vpop.f32.mrb[25].mxu1  ;;  %v1208_v19 = vpop.f32.mrb[25].mxu0  ;;  %3312 = vmatprep.subr.bf16.mxu1 %v6633_v55  ;;  %3698 = vmatprep.subr.bf16.mxu0 %v6635_v21  ;;  %v6658_v16 = vcombine.low %v9043_v27, %v9048_v12 }
 0x1f0   : > { %v1016_v37 = vadd.f32 %v1015_v58, %v8837_v10  ;;  %v1209_v60 = vadd.f32 %v1208_v19, %v8841_v13  ;;  %v1017_v61 = vpop.f32.mrb[26].mxu1  ;;  %v1210_v3 = vpop.f32.mrb[26].mxu0  ;;  %3157 = vmatprep.mubr.bf16.mxu1 %v9028_v45  ;;  %3543 = vmatprep.mubr.bf16.mxu0 %v9028_v45 }
 0x1f1   : > { %v1018_v35 = vadd.f32 %v1017_v61, %v8829_v56  ;;  %v1211_v55 = vadd.f32 %v1210_v3, %v8833_v43  ;;  %v1019_v21 = vpop.f32.mrb[27].mxu1  ;;  %v1212_v29 = vpop.f32.mrb[27].mxu0  ;;  %3158 = vmatmul.mubr.bf16.gmra.mrb[84].mxu1 %v9020_v39  ;;  %3544 = vmatmul.mubr.bf16.gmra.mrb[84].mxu0 %v9020_v39  ;;  %v6659_v61 = vcombine.high %v9043_v27, %v9048_v12  ;;  %v9082_v3 = vld [vmem:[%s11318_s5 + $0x580] sm:$0xff]  ;;  %v1363_v24 = vmax.f32 %v1207_v14, 0.0 }
 0x1f2   : > { %v1020_v58 = vadd.f32 %v1019_v21, %v8837_v10  ;;  %v1213_v19 = vadd.f32 %v1212_v29, %v8841_v13  ;;  %3313 = vmatpush1.bf16.msra.mxu1 %v6632_v63  ;;  %3699 = vmatpush1.bf16.msra.mxu0 %v6634_v15  ;;  %v9087_v21 = vld [vmem:[%s11318_s5 + $0x5a0] sm:$0xff]  ;;  %v1361_v29 = vmax.f32 %v1014_v62, 0.0  ;;  %v1362_v15 = vmax.f32 %v1016_v37, 0.0 }
 0x1f3   : > { %v1365_v25 = vmax.f32 %v1018_v35, 0.0  ;;  %v1367_v63 = vmax.f32 %v1211_v55, 0.0  ;;  %3314 = vmatprep.subr.bf16.mxu1 %v6641_v31  ;;  %3700 = vmatprep.subr.bf16.mxu0 %v6643_v53  ;;  %v1364_v62 = vmax.f32 %v1209_v60, 0.0  ;;  %v6664_v53 = vcombine.low %v9082_v3, %v9087_v21  ;;  %v9121_v37 = vld [vmem:[%s11318_s5 + $0x5e0] sm:$0xff] }
 0x1f4   : > { %v1366_v14 = vmax.f32 %v1020_v58, 0.0  ;;  %v1368_v35 = vmax.f32 %v1213_v19, 0.0  ;;  %v6665_v9 = vcombine.high %v9082_v3, %v9087_v21 }
 0x1f5   : > { %v9105_v55 = vpack.c.bf16 %v1365_v25, %v1361_v29  ;;  %v9107_v31 = vpack.c.bf16 %v1367_v63, %v1363_v24  ;;  %v6666_v24 = vcombine.low %v9098_v41, %v9103_v50  ;;  %v9272_v41 = vld [vmem:[%s11318_s5 + $0x680] sm:$0xff] }
 0x1f6   : > { %v9123_v60 = vpack.c.bf16 %v1366_v14, %v1362_v15  ;;  %v9125_v58 = vpack.c.bf16 %v1368_v35, %v1364_v62  ;;  %v1023_v19 = vpop.f32.mrb[28].mxu1  ;;  %v1216_v29 = vpop.f32.mrb[28].mxu0  ;;  %3315 = vmatpush1.bf16.msra.mxu1 %v6640_v30  ;;  %3701 = vmatpush1.bf16.msra.mxu0 %v6642_v47  ;;  %v9277_v50 = vld [vmem:[%s11318_s5 + $0x6a0] sm:$0xff] }
 0x1f7   : > { %11379 = vst [vmem:[#allocation3_spill] sm:$0xff] %v9105_v55  ;;  %v1024_v25 = vadd.f32 %v1023_v19, %v8829_v56  ;;  %v1217_v63 = vadd.f32 %v1216_v29, %v8833_v43  ;;  %v1025_v15 = vpop.f32.mrb[29].mxu1  ;;  %v1218_v62 = vpop.f32.mrb[29].mxu0  ;;  %3316 = vmatprep.subr.bf16.mxu1 %v6649_v28  ;;  %3702 = vmatprep.subr.bf16.mxu0 %v6651_v33 }
 0x1f8   : > { %v1026_v1 = vadd.f32 %v1025_v15, %v8837_v10  ;;  %v1219_v30 = vadd.f32 %v1218_v62, %v8841_v13  ;;  %v1027_v47 = vpop.f32.mrb[30].mxu1  ;;  %v1220_v28 = vpop.f32.mrb[30].mxu0  ;;  %3167 = vmatprep.mubr.bf16.mxu1 %v9123_v60  ;;  %3553 = vmatprep.mubr.bf16.mxu0 %v9123_v60  ;;  %v6672_v33 = vcombine.low %v9116_v46, %v9121_v37 }
 0x1f9   : > { %v1028_v14 = vadd.f32 %v1027_v47, %v8829_v56  ;;  %v1221_v35 = vadd.f32 %v1220_v28, %v8833_v43  ;;  %v1029_v19 = vpop.f32.mrb[31].mxu1  ;;  %v1222_v29 = vpop.f32.mrb[31].mxu0  ;;  %3168 = vmatmul.mubr.bf16.gmra.mrb[88].mxu1 %v9105_v55  ;;  %3554 = vmatmul.mubr.bf16.gmra.mrb[88].mxu0 %v9105_v55  ;;  %v6673_v15 = vcombine.high %v9116_v46, %v9121_v37  ;;  %v9177_v28 = vld [vmem:[%s11318_s5 + $0x600] sm:$0xff]  ;;  %v1371_v32 = vmax.f32 %v1217_v63, 0.0 }
 0x1fa   : > { %v1030_v62 = vadd.f32 %v1029_v19, %v8837_v10  ;;  %v1223_v7 = vadd.f32 %v1222_v29, %v8841_v13  ;;  %3317 = vmatpush1.bf16.msra.mxu1 %v6648_v18  ;;  %3703 = vmatpush1.bf16.msra.mxu0 %v6650_v49  ;;  %v6674_v47 = vcombine.low %v9145_v17, %v9150_v57  ;;  %v9182_v19 = vld [vmem:[%s11318_s5 + $0x620] sm:$0xff]  ;;  %v1369_v29 = vmax.f32 %v1024_v25, 0.0  ;;  %v9195_v25 = vld [vmem:[%s11318_s5 + $0x628] sm:$0xff] }
 0x1fb   : > { %v1373_v34 = vmax.f32 %v1028_v14, 0.0  ;;  %v1375_v18 = vmax.f32 %v1221_v35, 0.0  ;;  %3318 = vmatprep.subr.bf16.mxu1 %v6657_v23  ;;  %3704 = vmatprep.subr.bf16.mxu0 %v6659_v61  ;;  %v1370_v26 = vmax.f32 %v1026_v1, 0.0  ;;  %v1372_v22 = vmax.f32 %v1219_v30, 0.0  ;;  %v9316_v46 = vld [vmem:[%s11318_s5 + $0x6c0] sm:$0xff] }
 0x1fc   : > { %v1374_v49 = vmax.f32 %v1030_v62, 0.0  ;;  %v1376_v59 = vmax.f32 %v1223_v7, 0.0  ;;  %v6675_v23 = vcombine.high %v9145_v17, %v9150_v57  ;;  %v6680_v7 = vcombine.low %v9177_v28, %v9182_v19  ;;  %v9321_v37 = vld [vmem:[%s11318_s5 + $0x6e0] sm:$0xff] }
 0x1fd   : > { %v9197_v63 = vpack.c.bf16 %v1373_v34, %v1369_v29  ;;  %v9199_v14 = vpack.c.bf16 %v1375_v18, %v1371_v32  ;;  %v6681_v62 = vcombine.high %v9177_v28, %v9182_v19  ;;  %v9220_v29 = vld [vmem:[%s11318_s5 + $0x640] sm:$0xff]  ;;  %v6682_v12 = vcombine.low %v9190_v40, %v9195_v25 }
 0x1fe   : > { %v9205_v61 = vpack.c.bf16 %v1374_v49, %v1370_v26  ;;  %v9207_v1 = vpack.c.bf16 %v1376_v59, %v1372_v22  ;;  %v1033_v30 = vpop.f32.mrb[32].mxu1  ;;  %v1226_v35 = vpop.f32.mrb[32].mxu0  ;;  %3319 = vmatpush1.bf16.msra.mxu1 %v6656_v20  ;;  %3705 = vmatpush1.bf16.msra.mxu0 %v6658_v16  ;;  %v9225_v59 = vld [vmem:[%s11318_s5 + $0x660] sm:$0xff]  ;;  %v6683_v26 = vcombine.high %v9190_v40, %v9195_v25 }
 0x1ff   : > { %11380 = vst [vmem:[#allocation4_spill] sm:$0xff] %v9197_v63  ;;  %v1034_v38 = vadd.f32 %v1033_v30, %v8829_v56  ;;  %v1227_v36 = vadd.f32 %v1226_v35, %v8833_v43  ;;  %v1035_v20 = vpop.f32.mrb[33].mxu1  ;;  %v1228_v27 = vpop.f32.mrb[33].mxu0  ;;  %3320 = vmatprep.subr.bf16.mxu1 %v6665_v9  ;;  %3706 = vmatprep.subr.bf16.mxu0 %v6667_v42 }
 0x200   : > { %11381 = vst [vmem:[#allocation5_spill] sm:$0xff] %v9205_v61  ;;  %v1036_v16 = vadd.f32 %v1035_v20, %v8837_v10  ;;  %v1229_v32 = vadd.f32 %v1228_v27, %v8841_v13  ;;  %v1037_v34 = vpop.f32.mrb[34].mxu1  ;;  %v1230_v18 = vpop.f32.mrb[34].mxu0  ;;  %3177 = vmatprep.mubr.bf16.mxu1 %v9205_v61  ;;  %3563 = vmatprep.mubr.bf16.mxu0 %v9205_v61 }
 0x201   : > { %v1038_v22 = vadd.f32 %v1037_v34, %v8829_v56  ;;  %v1231_v9 = vadd.f32 %v1230_v18, %v8833_v43  ;;  %v1039_v42 = vpop.f32.mrb[35].mxu1  ;;  %v1232_v49 = vpop.f32.mrb[35].mxu0  ;;  %3178 = vmatmul.mubr.bf16.gmra.mrb[92].mxu1 %v9197_v63  ;;  %3564 = vmatmul.mubr.bf16.gmra.mrb[92].mxu0 %v9197_v63  ;;  %v6688_v30 = vcombine.low %v9220_v29, %v9225_v59  ;;  %v9259_v34 = vld [vmem:[%s11318_s5 + $0x648] sm:$0xff]  ;;  %v1379_v3 = vmax.f32 %v1227_v36, 0.0 }
 0x202   : > { %v1040_v35 = vadd.f32 %v1039_v42, %v8837_v10  ;;  %v1233_v20 = vadd.f32 %v1232_v49, %v8841_v13  ;;  %3321 = vmatpush1.bf16.msra.mxu1 %v6664_v53  ;;  %3707 = vmatpush1.bf16.msra.mxu0 %v6666_v24  ;;  %v6689_v27 = vcombine.high %v9220_v29, %v9225_v59  ;;  %v9264_v18 = vld [vmem:[%s11318_s5 + $0x668] sm:$0xff]  ;;  %v1377_v42 = vmax.f32 %v1034_v38, 0.0 }
 0x203   : > { %v1381_v21 = vmax.f32 %v1038_v22, 0.0  ;;  %v1383_v53 = vmax.f32 %v1231_v9, 0.0  ;;  %3322 = vmatprep.subr.bf16.mxu1 %v6673_v15  ;;  %3708 = vmatprep.subr.bf16.mxu0 %v6675_v23  ;;  %v1378_v24 = vmax.f32 %v1036_v16, 0.0  ;;  %v1380_v38 = vmax.f32 %v1229_v32, 0.0  ;;  %v9295_v16 = vld [vmem:[%s11318_s5 + $0x6a8] sm:$0xff] }
 0x204   : > { %v1382_v36 = vmax.f32 %v1040_v35, 0.0  ;;  %v1384_v22 = vmax.f32 %v1233_v20, 0.0  ;;  %v6690_v15 = vcombine.low %v9259_v34, %v9264_v18  ;;  %v6691_v23 = vcombine.high %v9259_v34, %v9264_v18 }
 0x205   : > { %v9279_v9 = vpack.c.bf16 %v1381_v21, %v1377_v42  ;;  %v9281_v49 = vpack.c.bf16 %v1383_v53, %v1379_v3  ;;  %v6696_v34 = vcombine.low %v9272_v41, %v9277_v50 }
 0x206   : > { %v9297_v32 = vpack.c.bf16 %v1382_v36, %v1378_v24  ;;  %v9299_v35 = vpack.c.bf16 %v1384_v22, %v1380_v38  ;;  %v1043_v20 = vpop.f32.mrb[36].mxu1  ;;  %v1236_v42 = vpop.f32.mrb[36].mxu0  ;;  %3323 = vmatpush1.bf16.msra.mxu1 %v6672_v33  ;;  %3709 = vmatpush1.bf16.msra.mxu0 %v6674_v47  ;;  %v6697_v24 = vcombine.high %v9272_v41, %v9277_v50 }
 0x207   : > { %11382 = vst [vmem:[#allocation6_spill] sm:$0xff] %v9279_v9  ;;  %v1044_v18 = vadd.f32 %v1043_v20, %v8829_v56  ;;  %v1237_v3 = vadd.f32 %v1236_v42, %v8833_v43  ;;  %v1045_v21 = vpop.f32.mrb[37].mxu1  ;;  %v1238_v53 = vpop.f32.mrb[37].mxu0  ;;  %3324 = vmatprep.subr.bf16.mxu1 %v6681_v62  ;;  %3710 = vmatprep.subr.bf16.mxu0 %v6683_v26  ;;  %v9363_v62 = vld [vmem:[%s11318_s5 + $0x720] sm:$0xff] }
 0x208   : > { %11383 = vst [vmem:[#allocation7_spill] sm:$0xff] %v9297_v32  ;;  %v1046_v17 = vadd.f32 %v1045_v21, %v8837_v10  ;;  %v1239_v57 = vadd.f32 %v1238_v53, %v8841_v13  ;;  %v1047_v33 = vpop.f32.mrb[38].mxu1  ;;  %v1240_v47 = vpop.f32.mrb[38].mxu0  ;;  %3187 = vmatprep.mubr.bf16.mxu1 %v9297_v32  ;;  %3573 = vmatprep.mubr.bf16.mxu0 %v9297_v32  ;;  %v9358_v53 = vld [vmem:[%s11318_s5 + $0x700] sm:$0xff] }
 0x209   : > { %v1048_v26 = vadd.f32 %v1047_v33, %v8829_v56  ;;  %v1241_v38 = vadd.f32 %v1240_v47, %v8833_v43  ;;  %v1049_v36 = vpop.f32.mrb[39].mxu1  ;;  %v1242_v22 = vpop.f32.mrb[39].mxu0  ;;  %3188 = vmatmul.mubr.bf16.gmra.mrb[96].mxu1 %v9279_v9  ;;  %3574 = vmatmul.mubr.bf16.gmra.mrb[96].mxu0 %v9279_v9  ;;  %v6699_v20 = vcombine.high %v9290_v4, %v9295_v16  ;;  %v9348_v33 = vld [vmem:[%s11318_s5 + $0x6c8] sm:$0xff]  ;;  %v1387_v28 = vmax.f32 %v1237_v3, 0.0 }
 0x20a   : > { %v1050_v42 = vadd.f32 %v1049_v36, %v8837_v10  ;;  %v1243_v21 = vadd.f32 %v1242_v22, %v8841_v13  ;;  %3325 = vmatpush1.bf16.msra.mxu1 %v6680_v7  ;;  %3711 = vmatpush1.bf16.msra.mxu0 %v6682_v12  ;;  %v9353_v47 = vld [vmem:[%s11318_s5 + $0x6e8] sm:$0xff]  ;;  %v1385_v36 = vmax.f32 %v1044_v18, 0.0  ;;  %v1386_v40 = vmax.f32 %v1046_v17, 0.0 }
 0x20b   : > { %v1389_v19 = vmax.f32 %v1048_v26, 0.0  ;;  %v1391_v7 = vmax.f32 %v1241_v38, 0.0  ;;  %3326 = vmatprep.subr.bf16.mxu1 %v6689_v27  ;;  %3712 = vmatprep.subr.bf16.mxu0 %v6691_v23  ;;  %v1388_v25 = vmax.f32 %v1239_v57, 0.0  ;;  %v6705_v27 = vcombine.high %v9316_v46, %v9321_v37 }
 0x20c   : > { %v1390_v12 = vmax.f32 %v1050_v42, 0.0  ;;  %v1392_v22 = vmax.f32 %v1243_v21, 0.0  ;;  %v6706_v23 = vcombine.low %v9348_v33, %v9353_v47  ;;  %v6707_v42 = vcombine.high %v9348_v33, %v9353_v47  ;;  %v9385_v21 = vld [vmem:[%s11318_s5 + $0x708] sm:$0xff] }
 0x20d   : > { %v9365_v18 = vpack.c.bf16 %v1389_v19, %v1385_v36  ;;  %v9367_v3 = vpack.c.bf16 %v1391_v7, %v1387_v28  ;;  %v9390_v36 = vld [vmem:[%s11318_s5 + $0x728] sm:$0xff] }
 0x20e   : > { %v9373_v17 = vpack.c.bf16 %v1390_v12, %v1386_v40  ;;  %v9375_v57 = vpack.c.bf16 %v1392_v22, %v1388_v25  ;;  %v1053_v26 = vpop.f32.mrb[40].mxu1  ;;  %v1246_v38 = vpop.f32.mrb[40].mxu0  ;;  %3327 = vmatpush1.bf16.msra.mxu1 %v6688_v30  ;;  %3713 = vmatpush1.bf16.msra.mxu0 %v6690_v15  ;;  %v6712_v30 = vcombine.low %v9358_v53, %v9363_v62 }
 0x20f   : > { %11384 = vst [vmem:[#allocation8_spill] sm:$0xff] %v9365_v18  ;;  %v1054_v28 = vadd.f32 %v1053_v26, %v8829_v56  ;;  %v1247_v19 = vadd.f32 %v1246_v38, %v8833_v43  ;;  %v1055_v29 = vpop.f32.mrb[41].mxu1  ;;  %v1248_v59 = vpop.f32.mrb[41].mxu0  ;;  %3328 = vmatprep.subr.bf16.mxu1 %v6697_v24  ;;  %3714 = vmatprep.subr.bf16.mxu0 %v6699_v20 }
 0x210   : > { %11385 = vst [vmem:[#allocation9_spill] sm:$0xff] %v9373_v17  ;;  %v1056_v15 = vadd.f32 %v1055_v29, %v8837_v10  ;;  %v1249_v33 = vadd.f32 %v1248_v59, %v8841_v13  ;;  %v1057_v47 = vpop.f32.mrb[42].mxu1  ;;  %v1250_v7 = vpop.f32.mrb[42].mxu0  ;;  %3197 = vmatprep.mubr.bf16.mxu1 %v9373_v17  ;;  %3583 = vmatprep.mubr.bf16.mxu0 %v9373_v17 }
 0x211   : > { %v6713_v40 = vcombine.high %v9358_v53, %v9363_v62  ;;  %v1058_v25 = vadd.f32 %v1057_v47, %v8829_v56  ;;  %v1251_v24 = vadd.f32 %v1250_v7, %v8833_v43  ;;  %v1059_v20 = vpop.f32.mrb[43].mxu1  ;;  %v1252_v12 = vpop.f32.mrb[43].mxu0  ;;  %3198 = vmatmul.mubr.bf16.gmra.mrb[100].mxu1 %v9365_v18  ;;  %3584 = vmatmul.mubr.bf16.gmra.mrb[100].mxu0 %v9365_v18  ;;  %v9421_v47 = vld [vmem:[%s11318_s5 + $0x740] sm:$0xff]  ;;  %v1395_v41 = vmax.f32 %v1247_v19, 0.0 }
 0x212   : > { %v6714_v22 = vcombine.low %v9385_v21, %v9390_v36  ;;  %v1060_v26 = vadd.f32 %v1059_v20, %v8837_v10  ;;  %v1253_v38 = vadd.f32 %v1252_v12, %v8841_v13  ;;  %3329 = vmatpush1.bf16.msra.mxu1 %v6696_v34  ;;  %v11386_v29 = vcombine.low %v9290_v4, %v9295_v16  ;;  %v9426_v7 = vld [vmem:[%s11318_s5 + $0x760] sm:$0xff]  ;;  %v9431_v4 = vld [vmem:[%s11318_s5 + $0x748] sm:$0xff] }
 0x213   : > { %v6715_v59 = vcombine.high %v9385_v21, %v9390_v36  ;;  %v1393_v20 = vmax.f32 %v1054_v28, 0.0  ;;  %v1397_v50 = vmax.f32 %v1058_v25, 0.0  ;;  %v1399_v34 = vmax.f32 %v1251_v24, 0.0  ;;  %3330 = vmatprep.subr.bf16.mxu1 %v6705_v27  ;;  %v9436_v16 = vld [vmem:[%s11318_s5 + $0x768] sm:$0xff]  ;;  %v9449_v25 = vld [vmem:[%s11318_s5 + $0x780] sm:$0xff] }
 0x214   : > { %3715 = vmatpush1.bf16.msra.mxu0 %v11386_v29  ;;  %v1394_v21 = vmax.f32 %v1056_v15, 0.0  ;;  %v1396_v36 = vmax.f32 %v1249_v33, 0.0  ;;  %v1398_v12 = vmax.f32 %v1060_v26, 0.0  ;;  %v1400_v29 = vmax.f32 %v1253_v38, 0.0  ;;  %v9454_v15 = vld [vmem:[%s11318_s5 + $0x7a0] sm:$0xff] }
 0x215   : > { %3716 = vmatprep.subr.bf16.mxu0 %v6707_v42  ;;  %v9438_v28 = vpack.c.bf16 %v1397_v50, %v1393_v20  ;;  %v9440_v19 = vpack.c.bf16 %v1399_v34, %v1395_v41  ;;  %v6720_v27 = vcombine.low %v9421_v47, %v9426_v7  ;;  %v6721_v42 = vcombine.high %v9421_v47, %v9426_v7 }
 0x216   : > { %v9456_v33 = vpack.c.bf16 %v1398_v12, %v1394_v21  ;;  %v9458_v24 = vpack.c.bf16 %v1400_v29, %v1396_v36  ;;  %v1063_v26 = vpop.f32.mrb[44].mxu1  ;;  %v1256_v38 = vpop.f32.mrb[44].mxu0  ;;  %v11389_v20 = vcombine.low %v9316_v46, %v9321_v37  ;;  %v6722_v47 = vcombine.low %v9431_v4, %v9436_v16  ;;  %v9472_v46 = vld [vmem:[%s11318_s5 + $0x788] sm:$0xff] }
 0x217   : > { %11387 = vst [vmem:[#allocation10_spill] sm:$0xff] %v9438_v28  ;;  %v1064_v7 = vadd.f32 %v1063_v26, %v8829_v56  ;;  %v1257_v41 = vadd.f32 %v1256_v38, %v8833_v43  ;;  %v1065_v50 = vpop.f32.mrb[45].mxu1  ;;  %v1258_v34 = vpop.f32.mrb[45].mxu0  ;;  %v6723_v21 = vcombine.high %v9431_v4, %v9436_v16  ;;  %v9477_v37 = vld [vmem:[%s11318_s5 + $0x7a8] sm:$0xff]  ;;  %v6729_v38 = vcombine.high %v9449_v25, %v9454_v15 }
 0x218   : > { %11388 = vst [vmem:[#allocation11_spill] sm:$0xff] %v9456_v33  ;;  %3331 = vmatpush1.bf16.msra.mxu1 %v11389_v20  ;;  %3717 = vmatpush1.bf16.msra.mxu0 %v6706_v23  ;;  %v1066_v23 = vadd.f32 %v1065_v50, %v8837_v10  ;;  %v1259_v36 = vadd.f32 %v1258_v34, %v8841_v13  ;;  %v1067_v12 = vpop.f32.mrb[46].mxu1 }
 0x219   : > { %3332 = vmatprep.subr.bf16.mxu1 %v6713_v40  ;;  %3718 = vmatprep.subr.bf16.mxu0 %v6715_v59  ;;  %v1260_v40 = vpop.f32.mrb[46].mxu0  ;;  %v6728_v59 = vcombine.low %v9449_v25, %v9454_v15  ;;  %v1068_v4 = vadd.f32 %v1067_v12, %v8829_v56  ;;  %v1069_v29 = vpop.f32.mrb[47].mxu1  ;;  %v6731_v34 = vcombine.high %v9472_v46, %v9477_v37  ;;  %v9501_v12 = vld [vmem:[%s11318_s5 + $0x7c0] sm:$0xff]  ;;  %v1401_v15 = vmax.f32 %v1064_v7, 0.0 }
 0x21a   : > { %3207 = vmatprep.mubr.bf16.mxu1 %v9456_v33  ;;  %3593 = vmatprep.mubr.bf16.mxu0 %v9456_v33  ;;  %v1261_v16 = vadd.f32 %v1260_v40, %v8833_v43  ;;  %v1262_v26 = vpop.f32.mrb[47].mxu0  ;;  %v1070_v20 = vadd.f32 %v1069_v29, %v8837_v10  ;;  %v9506_v25 = vld [vmem:[%s11318_s5 + $0x7e0] sm:$0xff]  ;;  %v1403_v40 = vmax.f32 %v1257_v41, 0.0  ;;  %v1402_v62 = vmax.f32 %v1066_v23, 0.0 }
 0x21b   : > { %3208 = vmatmul.mubr.bf16.gmra.mrb[104].mxu1 %v9438_v28  ;;  %3594 = vmatmul.mubr.bf16.gmra.mrb[104].mxu0 %v9438_v28  ;;  %v1263_v50 = vadd.f32 %v1262_v26, %v8841_v13  ;;  %v1405_v29 = vmax.f32 %v1068_v4, 0.0  ;;  %v1404_v53 = vmax.f32 %v1259_v36, 0.0  ;;  %v1790_v28 = vld [vmem:[%s11318_s5 + $0x7e8] sm:$0xff]  ;;  %v6736_v41 = vcombine.low %v9501_v12, %v9506_v25 }
 0x21c   : > { %3333 = vmatpush1.bf16.msra.mxu1 %v6712_v30  ;;  %3719 = vmatpush1.bf16.msra.mxu0 %v6714_v22  ;;  %v1407_v26 = vmax.f32 %v1261_v16, 0.0  ;;  %v1406_v30 = vmax.f32 %v1070_v20, 0.0  ;;  %v6737_v16 = vcombine.high %v9501_v12, %v9506_v25 }
 0x21d   : > { %3334 = vmatprep.subr.bf16.mxu1 %v6721_v42  ;;  %3720 = vmatprep.subr.bf16.mxu0 %v6723_v21  ;;  %v1408_v22 = vmax.f32 %v1263_v50, 0.0  ;;  %v9514_v33 = vpack.c.bf16 %v1405_v29, %v1401_v15  ;;  %v6730_v42 = vcombine.low %v9472_v46, %v9477_v37  ;;  %v6739_v37 = vcombine.high %v1786_v6, %v1790_v28 }
 0x21e   : > { %v9516_v7 = vpack.c.bf16 %v1407_v26, %v1403_v40  ;;  %v9522_v21 = vpack.c.bf16 %v1406_v30, %v1402_v62  ;;  %v1073_v36 = vpop.f32.mrb[48].mxu1  ;;  %v1266_v4 = vpop.f32.mrb[48].mxu0 }
 0x21f   : > { %11390 = vst [vmem:[#allocation12_spill] sm:$0xff] %v9514_v33  ;;  %v9524_v23 = vpack.c.bf16 %v1408_v22, %v1404_v53  ;;  %v1074_v20 = vadd.f32 %v1073_v36, %v8829_v56  ;;  %v1267_v50 = vadd.f32 %v1266_v4, %v8833_v43  ;;  %v1075_v15 = vpop.f32.mrb[49].mxu1  ;;  %v1268_v46 = vpop.f32.mrb[49].mxu0 }
 0x220   : > { %11391 = vst [vmem:[#allocation13_spill] sm:$0xff] %v9522_v21  ;;  %3335 = vmatpush1.bf16.msra.mxu1 %v6720_v27  ;;  %3721 = vmatpush1.bf16.msra.mxu0 %v6722_v47  ;;  %v1076_v40 = vadd.f32 %v1075_v15, %v8837_v10  ;;  %v1269_v29 = vadd.f32 %v1268_v46, %v8841_v13  ;;  %v1077_v26 = vpop.f32.mrb[50].mxu1  ;;  %v1270_v62 = vpop.f32.mrb[50].mxu0 }
 0x221   : > { %3336 = vmatprep.subr.bf16.mxu1 %v6729_v38  ;;  %3722 = vmatprep.subr.bf16.mxu0 %v6731_v34  ;;  %v6738_v27 = vcombine.low %v1786_v6, %v1790_v28  ;;  %v1078_v47 = vadd.f32 %v1077_v26, %v8829_v56  ;;  %v1271_v12 = vadd.f32 %v1270_v62, %v8833_v43  ;;  %v1079_v25 = vpop.f32.mrb[51].mxu1  ;;  %v1272_v53 = vpop.f32.mrb[51].mxu0  ;;  %v1409_v28 = vmax.f32 %v1074_v20, 0.0 }
 0x222   : > { %3217 = vmatprep.mubr.bf16.mxu1 %v9522_v21  ;;  %3603 = vmatprep.mubr.bf16.mxu0 %v9522_v21  ;;  %v6493_v38 = vcombine.high %v8899_v44, %v8909_v51  ;;  %v1080_v34 = vadd.f32 %v1079_v25, %v8837_v10  ;;  %v1273_v30 = vadd.f32 %v1272_v53, %v8841_v13  ;;  %v1411_v22 = vmax.f32 %v1267_v50, 0.0 }
 0x223   : > { %3218 = vmatmul.mubr.bf16.gmra.mrb[108].mxu1 %v9514_v33  ;;  %3604 = vmatmul.mubr.bf16.gmra.mrb[108].mxu0 %v9514_v33  ;;  %v6495_v6 = vcombine.high %v9001_v0, %v9006_v2  ;;  %v1413_v36 = vmax.f32 %v1078_v47, 0.0  ;;  %v1415_v4 = vmax.f32 %v1271_v12, 0.0  ;;  %v1410_v15 = vmax.f32 %v1076_v40, 0.0 }
 0x224   : > { %3337 = vmatpush1.bf16.msra.mxu1 %v6728_v59  ;;  %3723 = vmatpush1.bf16.msra.mxu0 %v6730_v42  ;;  %v1412_v46 = vmax.f32 %v1269_v29, 0.0  ;;  %v1414_v26 = vmax.f32 %v1080_v34, 0.0  ;;  %v1416_v62 = vmax.f32 %v1273_v30, 0.0 }
 0x225   : > { %3338 = vmatprep.subr.bf16.mxu1 %v6737_v16  ;;  %3724 = vmatprep.subr.bf16.mxu0 %v6739_v37  ;;  %v9544_v33 = vpack.c.bf16 %v1413_v36, %v1409_v28  ;;  %v9546_v25 = vpack.c.bf16 %v1415_v4, %v1411_v22 }
 0x226   : > { %v9548_v53 = vpack.c.bf16 %v1414_v26, %v1410_v15  ;;  %v9550_v59 = vpack.c.bf16 %v1416_v62, %v1412_v46  ;;  %v1083_v42 = vpop.f32.mrb[52].mxu1  ;;  %v1276_v21 = vpop.f32.mrb[52].mxu0 }
 0x227   : > { %11392 = vst [vmem:[#allocation14_spill] sm:$0xff] %v9544_v33  ;;  %v1084_v20 = vadd.f32 %v1083_v42, %v8829_v56  ;;  %v1277_v16 = vadd.f32 %v1276_v21, %v8833_v43  ;;  %v1085_v50 = vpop.f32.mrb[53].mxu1  ;;  %v1278_v37 = vpop.f32.mrb[53].mxu0 }
 0x228   : > { %11393 = vst [vmem:[#allocation15_spill] sm:$0xff] %v9548_v53  ;;  %3339 = vmatpush1.bf16.msra.mxu1 %v6736_v41  ;;  %3725 = vmatpush1.bf16.msra.mxu0 %v6738_v27  ;;  %v1086_v40 = vadd.f32 %v1085_v50, %v8837_v10  ;;  %v1279_v29 = vadd.f32 %v1278_v37, %v8841_v13  ;;  %v1087_v47 = vpop.f32.mrb[54].mxu1  ;;  %v1280_v12 = vpop.f32.mrb[54].mxu0 }
 0x229   : > { %3887 = vmatprep.subr.bf16.mxu1 %v6493_v38  ;;  %4273 = vmatprep.subr.bf16.mxu0 %v6495_v6  ;;  %v1088_v41 = vadd.f32 %v1087_v47, %v8829_v56  ;;  %v1281_v27 = vadd.f32 %v1280_v12, %v8833_v43  ;;  %v1089_v34 = vpop.f32.mrb[55].mxu1  ;;  %v1282_v21 = vpop.f32.mrb[55].mxu0  ;;  %v1417_v6 = vmax.f32 %v1084_v20, 0.0  ;;  %v1419_v28 = vmax.f32 %v1277_v16, 0.0 }
 0x22a   : > { %3227 = vmatprep.mubr.bf16.mxu1 %v9548_v53  ;;  %3613 = vmatprep.mubr.bf16.mxu0 %v9548_v53  ;;  %v1090_v38 = vadd.f32 %v1089_v34, %v8837_v10  ;;  %v1283_v30 = vadd.f32 %v1282_v21, %v8841_v13  ;;  %v1418_v4 = vmax.f32 %v1086_v40, 0.0  ;;  %v1420_v15 = vmax.f32 %v1279_v29, 0.0 }
 0x22b   : > { %3228 = vmatmul.mubr.bf16.gmra.mrb[112].mxu1 %v9544_v33  ;;  %3614 = vmatmul.mubr.bf16.gmra.mrb[112].mxu0 %v9544_v33  ;;  %v1421_v22 = vmax.f32 %v1088_v41, 0.0  ;;  %v1423_v36 = vmax.f32 %v1281_v27, 0.0 }
 0x22c   : > { %v1422_v46 = vmax.f32 %v1090_v38, 0.0  ;;  %v1424_v26 = vmax.f32 %v1283_v30, 0.0 }
 0x22d   : > { %v9564_v62 = vpack.c.bf16 %v1421_v22, %v1417_v6  ;;  %v9566_v42 = vpack.c.bf16 %v1423_v36, %v1419_v28 }
 0x22e   : > { %v9568_v50 = vpack.c.bf16 %v1422_v46, %v1418_v4  ;;  %v9570_v37 = vpack.c.bf16 %v1424_v26, %v1420_v15  ;;  %v1093_v47 = vpop.f32.mrb[56].mxu1  ;;  %v1286_v12 = vpop.f32.mrb[56].mxu0 }
 0x22f   : > { %11394 = vst [vmem:[#allocation16_spill] sm:$0xff] %v9564_v62  ;;  %v1094_v34 = vadd.f32 %v1093_v47, %v8829_v56  ;;  %v1287_v20 = vadd.f32 %v1286_v12, %v8833_v43  ;;  %v1095_v16 = vpop.f32.mrb[57].mxu1  ;;  %v1288_v41 = vpop.f32.mrb[57].mxu0 }
 0x230   : > { %11395 = vst [vmem:[#allocation17_spill] sm:$0xff] %v9568_v50  ;;  %v1096_v40 = vadd.f32 %v1095_v16, %v8837_v10  ;;  %v1289_v29 = vadd.f32 %v1288_v41, %v8841_v13  ;;  %v1097_v27 = vpop.f32.mrb[58].mxu1  ;;  %v1290_v21 = vpop.f32.mrb[58].mxu0  ;;  %3237 = vmatprep.mubr.bf16.mxu1 %v9568_v50  ;;  %3623 = vmatprep.mubr.bf16.mxu0 %v9568_v50 }
 0x231   : > { %v1098_v38 = vadd.f32 %v1097_v27, %v8829_v56  ;;  %v1291_v30 = vadd.f32 %v1290_v21, %v8833_v43  ;;  %v1099_v6 = vpop.f32.mrb[59].mxu1  ;;  %v1292_v28 = vpop.f32.mrb[59].mxu0  ;;  %v1425_v4 = vmax.f32 %v1094_v34, 0.0  ;;  %v1427_v15 = vmax.f32 %v1287_v20, 0.0 }
 0x232   : > { %v1100_v22 = vadd.f32 %v1099_v6, %v8837_v10  ;;  %v1293_v36 = vadd.f32 %v1292_v28, %v8841_v13  ;;  %v1426_v47 = vmax.f32 %v1096_v40, 0.0  ;;  %v1428_v12 = vmax.f32 %v1289_v29, 0.0 }
 0x233   : > { %3238 = vmatmul.mubr.bf16.gmra.mrb[116].mxu1 %v9564_v62  ;;  %3624 = vmatmul.mubr.bf16.gmra.mrb[116].mxu0 %v9564_v62  ;;  %v1429_v46 = vmax.f32 %v1098_v38, 0.0  ;;  %v1431_v26 = vmax.f32 %v1291_v30, 0.0 }
 0x234   : > { %v1430_v16 = vmax.f32 %v1100_v22, 0.0  ;;  %v1432_v41 = vmax.f32 %v1293_v36, 0.0 }
 0x235   : > { %v9584_v27 = vpack.c.bf16 %v1429_v46, %v1425_v4  ;;  %v9586_v21 = vpack.c.bf16 %v1431_v26, %v1427_v15 }
 0x236   : > { %v9588_v50 = vpack.c.bf16 %v1430_v16, %v1426_v47  ;;  %v9590_v33 = vpack.c.bf16 %v1432_v41, %v1428_v12  ;;  %v1103_v62 = vpop.f32.mrb[60].mxu1  ;;  %v1296_v6 = vpop.f32.mrb[60].mxu0 }
 0x237   : > { %11396 = vst [vmem:[#allocation18_spill] sm:$0xff] %v9584_v27  ;;  %v1104_v28 = vadd.f32 %v1103_v62, %v8829_v56  ;;  %v1297_v34 = vadd.f32 %v1296_v6, %v8833_v43  ;;  %v1105_v20 = vpop.f32.mrb[61].mxu1  ;;  %v1298_v38 = vpop.f32.mrb[61].mxu0 }
 0x238   : > { %11397 = vst [vmem:[#allocation19_spill] sm:$0xff] %v9588_v50  ;;  %v1106_v40 = vadd.f32 %v1105_v20, %v8837_v10  ;;  %v1299_v29 = vadd.f32 %v1298_v38, %v8841_v13  ;;  %v1107_v30 = vpop.f32.mrb[62].mxu1  ;;  %v1300_v22 = vpop.f32.mrb[62].mxu0  ;;  %3247 = vmatprep.mubr.bf16.mxu1 %v9588_v50  ;;  %3633 = vmatprep.mubr.bf16.mxu0 %v9588_v50 }
 0x239   : > { %v1108_v36 = vadd.f32 %v1107_v30, %v8829_v56  ;;  %v1301_v4 = vadd.f32 %v1300_v22, %v8833_v43  ;;  %v1109_v15 = vpop.f32.mrb[63].mxu1  ;;  %v1302_v62 = vpop.f32.mrb[63].mxu0  ;;  %v1433_v47 = vmax.f32 %v1104_v28, 0.0  ;;  %v1435_v12 = vmax.f32 %v1297_v34, 0.0 }
 0x23a   : > { %v1110_v46 = vadd.f32 %v1109_v15, %v8837_v10  ;;  %v1303_v26 = vadd.f32 %v1302_v62, %v8841_v13  ;;  %v1434_v6 = vmax.f32 %v1106_v40, 0.0  ;;  %v1436_v20 = vmax.f32 %v1299_v29, 0.0 }
 0x23b   : > { %3248 = vmatmul.mubr.bf16.gmra.mrb[120].mxu1 %v9584_v27  ;;  %3634 = vmatmul.mubr.bf16.gmra.mrb[120].mxu0 %v9584_v27  ;;  %v1437_v16 = vmax.f32 %v1108_v36, 0.0  ;;  %v1439_v41 = vmax.f32 %v1301_v4, 0.0 }
 0x23c   : > { %v1438_v38 = vmax.f32 %v1110_v46, 0.0  ;;  %v1440_v30 = vmax.f32 %v1303_v26, 0.0 }
 0x23d   : > { %v9604_v50 = vpack.c.bf16 %v1437_v16, %v1433_v47  ;;  %v9606_v22 = vpack.c.bf16 %v1439_v41, %v1435_v12 }
 0x23e   : > { %v9608_v53 = vpack.c.bf16 %v1438_v38, %v1434_v6  ;;  %v9610_v18 = vpack.c.bf16 %v1440_v30, %v1436_v20  ;;  %v1113_v27 = vpop.f32.mrb[64].mxu1  ;;  %v1306_v15 = vpop.f32.mrb[64].mxu0 }
 0x23f   : > { %11398 = vst [vmem:[#allocation20_spill] sm:$0xff] %v9604_v50  ;;  %v1114_v62 = vadd.f32 %v1113_v27, %v8829_v56  ;;  %v1307_v28 = vadd.f32 %v1306_v15, %v8833_v43  ;;  %v1115_v34 = vpop.f32.mrb[65].mxu1  ;;  %v1308_v36 = vpop.f32.mrb[65].mxu0 }
 0x240   : > { %11399 = vst [vmem:[#allocation21_spill] sm:$0xff] %v9608_v53  ;;  %v1116_v40 = vadd.f32 %v1115_v34, %v8837_v10  ;;  %v1309_v29 = vadd.f32 %v1308_v36, %v8841_v13  ;;  %v1117_v4 = vpop.f32.mrb[66].mxu1  ;;  %v1310_v46 = vpop.f32.mrb[66].mxu0  ;;  %3257 = vmatprep.mubr.bf16.mxu1 %v9608_v53  ;;  %3643 = vmatprep.mubr.bf16.mxu0 %v9608_v53 }
 0x241   : > { %v1118_v26 = vadd.f32 %v1117_v4, %v8829_v56  ;;  %v1311_v47 = vadd.f32 %v1310_v46, %v8833_v43  ;;  %v1119_v12 = vpop.f32.mrb[67].mxu1  ;;  %v1312_v27 = vpop.f32.mrb[67].mxu0  ;;  %v1441_v6 = vmax.f32 %v1114_v62, 0.0  ;;  %v1443_v20 = vmax.f32 %v1307_v28, 0.0 }
 0x242   : > { %v1120_v16 = vadd.f32 %v1119_v12, %v8837_v10  ;;  %v1313_v41 = vadd.f32 %v1312_v27, %v8841_v13  ;;  %v1442_v15 = vmax.f32 %v1116_v40, 0.0  ;;  %v1444_v34 = vmax.f32 %v1309_v29, 0.0 }
 0x243   : > { %3258 = vmatmul.mubr.bf16.gmra.mrb[124].mxu1 %v9604_v50  ;;  %3644 = vmatmul.mubr.bf16.gmra.mrb[124].mxu0 %v9604_v50  ;;  %v1445_v38 = vmax.f32 %v1118_v26, 0.0  ;;  %v1447_v30 = vmax.f32 %v1311_v47, 0.0 }
 0x244   : > { %v1446_v36 = vmax.f32 %v1120_v16, 0.0  ;;  %v1448_v4 = vmax.f32 %v1313_v41, 0.0 }
 0x245   : > { %v9624_v53 = vpack.c.bf16 %v1445_v38, %v1441_v6  ;;  %v9626_v46 = vpack.c.bf16 %v1447_v30, %v1443_v20 }
 0x246   : > { %v9628_v17 = vpack.c.bf16 %v1446_v36, %v1442_v15  ;;  %v9630_v9 = vpack.c.bf16 %v1448_v4, %v1444_v34  ;;  %v1123_v50 = vpop.f32.mrb[68].mxu1  ;;  %v1316_v12 = vpop.f32.mrb[68].mxu0 }
 0x247   : > { %11400 = vst [vmem:[#allocation22_spill] sm:$0xff] %v9624_v53  ;;  %v1124_v27 = vadd.f32 %v1123_v50, %v8829_v56  ;;  %v1317_v62 = vadd.f32 %v1316_v12, %v8833_v43  ;;  %v1125_v28 = vpop.f32.mrb[69].mxu1  ;;  %v1318_v26 = vpop.f32.mrb[69].mxu0 }
 0x248   : > { %11401 = vst [vmem:[#allocation23_spill] sm:$0xff] %v9628_v17  ;;  %v1126_v40 = vadd.f32 %v1125_v28, %v8837_v10  ;;  %v1319_v29 = vadd.f32 %v1318_v26, %v8841_v13  ;;  %v1127_v47 = vpop.f32.mrb[70].mxu1  ;;  %v1320_v16 = vpop.f32.mrb[70].mxu0  ;;  %3267 = vmatprep.mubr.bf16.mxu1 %v9628_v17  ;;  %3653 = vmatprep.mubr.bf16.mxu0 %v9628_v17 }
 0x249   : > { %v1128_v41 = vadd.f32 %v1127_v47, %v8829_v56  ;;  %v1321_v6 = vadd.f32 %v1320_v16, %v8833_v43  ;;  %v1129_v20 = vpop.f32.mrb[71].mxu1  ;;  %v1322_v50 = vpop.f32.mrb[71].mxu0  ;;  %v1449_v15 = vmax.f32 %v1124_v27, 0.0  ;;  %v1451_v34 = vmax.f32 %v1317_v62, 0.0 }
 0x24a   : > { %v1130_v38 = vadd.f32 %v1129_v20, %v8837_v10  ;;  %v1323_v30 = vadd.f32 %v1322_v50, %v8841_v13  ;;  %v1450_v12 = vmax.f32 %v1126_v40, 0.0  ;;  %v1452_v28 = vmax.f32 %v1319_v29, 0.0 }
 0x24b   : > { %3268 = vmatmul.mubr.bf16.gmra.mrb[128].mxu1 %v9624_v53  ;;  %3654 = vmatmul.mubr.bf16.gmra.mrb[128].mxu0 %v9624_v53  ;;  %v1453_v36 = vmax.f32 %v1128_v41, 0.0  ;;  %v1455_v4 = vmax.f32 %v1321_v6, 0.0 }
 0x24c   : > { %v1454_v26 = vmax.f32 %v1130_v38, 0.0  ;;  %v1456_v47 = vmax.f32 %v1323_v30, 0.0 }
 0x24d   : > { %v9644_v17 = vpack.c.bf16 %v1453_v36, %v1449_v15  ;;  %v9646_v16 = vpack.c.bf16 %v1455_v4, %v1451_v34 }
 0x24e   : > { %v9648_v32 = vpack.c.bf16 %v1454_v26, %v1450_v12  ;;  %v9650_v63 = vpack.c.bf16 %v1456_v47, %v1452_v28  ;;  %v1133_v53 = vpop.f32.mrb[72].mxu1  ;;  %v1326_v20 = vpop.f32.mrb[72].mxu0 }
 0x24f   : > { %11402 = vst [vmem:[#allocation24_spill] sm:$0xff] %v9644_v17  ;;  %v1134_v50 = vadd.f32 %v1133_v53, %v8829_v56  ;;  %v1327_v27 = vadd.f32 %v1326_v20, %v8833_v43  ;;  %v1135_v62 = vpop.f32.mrb[73].mxu1  ;;  %v1328_v41 = vpop.f32.mrb[73].mxu0 }
 0x250   : > { %11403 = vst [vmem:[#allocation25_spill] sm:$0xff] %v9648_v32  ;;  %v1136_v40 = vadd.f32 %v1135_v62, %v8837_v10  ;;  %v1329_v29 = vadd.f32 %v1328_v41, %v8841_v13  ;;  %v1137_v6 = vpop.f32.mrb[74].mxu1  ;;  %v1330_v38 = vpop.f32.mrb[74].mxu0  ;;  %3277 = vmatprep.mubr.bf16.mxu1 %v9648_v32  ;;  %3663 = vmatprep.mubr.bf16.mxu0 %v9648_v32 }
 0x251   : > { %v1138_v30 = vadd.f32 %v1137_v6, %v8829_v56  ;;  %v1331_v15 = vadd.f32 %v1330_v38, %v8833_v43  ;;  %v1139_v34 = vpop.f32.mrb[75].mxu1  ;;  %v1332_v53 = vpop.f32.mrb[75].mxu0  ;;  %v1457_v12 = vmax.f32 %v1134_v50, 0.0  ;;  %v1459_v28 = vmax.f32 %v1327_v27, 0.0 }
 0x252   : > { %v1140_v36 = vadd.f32 %v1139_v34, %v8837_v10  ;;  %v1333_v4 = vadd.f32 %v1332_v53, %v8841_v13  ;;  %v1458_v20 = vmax.f32 %v1136_v40, 0.0  ;;  %v1460_v62 = vmax.f32 %v1329_v29, 0.0 }
 0x253   : > { %3278 = vmatmul.mubr.bf16.gmra.mrb[132].mxu1 %v9644_v17  ;;  %3664 = vmatmul.mubr.bf16.gmra.mrb[132].mxu0 %v9644_v17  ;;  %v1461_v26 = vmax.f32 %v1138_v30, 0.0  ;;  %v1463_v47 = vmax.f32 %v1331_v15, 0.0 }
 0x254   : > { %v1462_v41 = vmax.f32 %v1140_v36, 0.0  ;;  %v1464_v6 = vmax.f32 %v1333_v4, 0.0 }
 0x255   : > { %v9664_v32 = vpack.c.bf16 %v1461_v26, %v1457_v12  ;;  %v9666_v38 = vpack.c.bf16 %v1463_v47, %v1459_v28 }
 0x256   : > { %v9668_v61 = vpack.c.bf16 %v1462_v41, %v1458_v20  ;;  %v9670_v55 = vpack.c.bf16 %v1464_v6, %v1460_v62  ;;  %v1143_v17 = vpop.f32.mrb[76].mxu1  ;;  %v1336_v34 = vpop.f32.mrb[76].mxu0 }
 0x257   : > { %v1144_v53 = vadd.f32 %v1143_v17, %v8829_v56  ;;  %v1337_v50 = vadd.f32 %v1336_v34, %v8833_v43  ;;  %v1145_v27 = vpop.f32.mrb[77].mxu1  ;;  %v1338_v30 = vpop.f32.mrb[77].mxu0 }
 0x258   : > { %11404 = vst [vmem:[#allocation26_spill] sm:$0xff] %v9668_v61  ;;  %v1146_v40 = vadd.f32 %v1145_v27, %v8837_v10  ;;  %v1339_v29 = vadd.f32 %v1338_v30, %v8841_v13  ;;  %v1147_v15 = vpop.f32.mrb[78].mxu1  ;;  %v1340_v36 = vpop.f32.mrb[78].mxu0  ;;  %3287 = vmatprep.mubr.bf16.mxu1 %v9668_v61  ;;  %3673 = vmatprep.mubr.bf16.mxu0 %v9668_v61 }
 0x259   : > { %v1148_v4 = vadd.f32 %v1147_v15, %v8829_v56  ;;  %v1341_v12 = vadd.f32 %v1340_v36, %v8833_v43  ;;  %v1149_v28 = vpop.f32.mrb[79].mxu1  ;;  %v1342_v17 = vpop.f32.mrb[79].mxu0  ;;  %v1465_v20 = vmax.f32 %v1144_v53, 0.0  ;;  %v1467_v62 = vmax.f32 %v1337_v50, 0.0  ;;  %v1547_v53 = vld [vmem:[%s11318_s5 + $0x50] sm:$0xff] }
 0x25a   : > { %v1150_v26 = vadd.f32 %v1149_v28, %v8837_v10  ;;  %v1343_v47 = vadd.f32 %v1342_v17, %v8841_v13  ;;  %v1466_v34 = vmax.f32 %v1146_v40, 0.0  ;;  %v1468_v27 = vmax.f32 %v1339_v29, 0.0  ;;  %v9701_v10 = vld [vmem:[%s11318_s5 + $0x410] sm:$0xff]  ;;  %v1548_v29 = vld [vmem:[%s11318_s5 + $0x58] sm:$0xff] }
 0x25b   : > { %3288 = vmatmul.mubr.bf16.gmra.mrb[136].mxu1 %v9664_v32  ;;  %3674 = vmatmul.mubr.bf16.gmra.mrb[136].mxu0 %v9664_v32  ;;  %v1469_v41 = vmax.f32 %v1148_v4, 0.0  ;;  %v1471_v6 = vmax.f32 %v1341_v12, 0.0  ;;  %v9706_v13 = vld [vmem:[%s11318_s5 + $0x430] sm:$0xff]  ;;  %v1552_v4 = vld [vmem:[%s11318_s5 + $0x78] sm:$0xff] }
 0x25c   : > { %v1470_v30 = vmax.f32 %v1150_v26, 0.0  ;;  %v1472_v56 = vmax.f32 %v1343_v47, 0.0  ;;  %v6620_v50 = vcombine.low %v9701_v10, %v9706_v13  ;;  %v1551_v40 = vld [vmem:[%s11318_s5 + $0x70] sm:$0xff]  ;;  %v6503_v28 = vcombine.high %v1548_v29, %v1552_v4  ;;  %v1556_v47 = vld [vmem:[%s11318_s5 + $0x98] sm:$0xff] }
 0x25d   : > { %v9684_v15 = vpack.c.bf16 %v1469_v41, %v1465_v20  ;;  %v9686_v43 = vpack.c.bf16 %v1471_v6, %v1467_v62  ;;  %v6501_v12 = vcombine.high %v1547_v53, %v1551_v40  ;;  %v1555_v17 = vld [vmem:[%s11318_s5 + $0x90] sm:$0xff]  ;;  %v1560_v20 = vld [vmem:[%s11318_s5 + $0xb8] sm:$0xff]  ;;  %v11405_v62 = vcombine.low %v8899_v44, %v8909_v51 }
 0x25e   : > { %v9688_v36 = vpack.c.bf16 %v1470_v30, %v1466_v34  ;;  %v9690_v61 = vpack.c.bf16 %v1472_v56, %v1468_v27  ;;  %v1559_v26 = vld [vmem:[%s11318_s5 + $0xb0] sm:$0xff]  ;;  %v6500_v41 = vcombine.low %v1547_v53, %v1551_v40  ;;  %v11406_v6 = vcombine.low %v9001_v0, %v9006_v2  ;;  %v9747_v30 = vld [vmem:[%s11318_s5 + $0x418] sm:$0xff] }
 0x25f   : > { %v6502_v34 = vcombine.low %v1548_v29, %v1552_v4  ;;  %v6509_v27 = vcombine.high %v1555_v17, %v1559_v26  ;;  %v9752_v44 = vld [vmem:[%s11318_s5 + $0x438] sm:$0xff]  ;;  %v6511_v51 = vcombine.high %v1556_v47, %v1560_v20  ;;  %v1563_v0 = vld [vmem:[%s11318_s5 + $0xd0] sm:$0xff]  ;;  %v6508_v29 = vcombine.low %v1555_v17, %v1559_v26 }
 0x260   : > { %3297 = vmatprep.mubr.bf16.mxu1 %v9688_v36  ;;  %3683 = vmatprep.mubr.bf16.mxu0 %v9688_v36  ;;  %v1567_v56 = vld [vmem:[%s11318_s5 + $0xf0] sm:$0xff]  ;;  %v1564_v53 = vld [vmem:[%s11318_s5 + $0xd8] sm:$0xff]  ;;  %v6510_v4 = vcombine.low %v1556_v47, %v1560_v20 }
 0x261   : > { %v1568_v40 = vld [vmem:[%s11318_s5 + $0xf8] sm:$0xff]  ;;  %v6516_v47 = vcombine.low %v1563_v0, %v1567_v56 }
 0x262   : > { %v1572_v17 = vld [vmem:[%s11318_s5 + $0x118] sm:$0xff]  ;;  %v6518_v20 = vcombine.low %v1564_v53, %v1568_v40 }
 0x263   : > { %3298 = vmatmul.mubr.bf16.gmra.mrb[140].mxu1 %v9684_v15  ;;  %3684 = vmatmul.mubr.bf16.gmra.mrb[140].mxu0 %v9684_v15  ;;  %v1576_v26 = vld [vmem:[%s11318_s5 + $0x138] sm:$0xff] }
 0x264   : > { %3340 = vmatprep.mubr.bf16.mxu1 %v8941_v8  ;;  %3726 = vmatprep.mubr.bf16.mxu0 %v8941_v8  ;;  %v1580_v2 = vld [vmem:[%s11318_s5 + $0x158] sm:$0xff] }
 0x26b   : > { %3341 = vmatmul.mubr.bf16.vlgmr.msra.gmra.mrb[80].mxu1 %v8923_v11  ;;  %3727 = vmatmul.mubr.bf16.vlgmr.msra.gmra.mrb[80].mxu0 %v8923_v11 }
 0x26c   : > { %3888 = vmatpush1.bf16.msra.mxu1 %v11405_v62  ;;  %3350 = vmatprep.mubr.bf16.mxu1 %v9030_v52  ;;  %v1571_v62 = vld [vmem:[%s11318_s5 + $0x110] sm:$0xff] }
 0x26d   : > { %3736 = vmatprep.mubr.bf16.mxu0 %v9030_v52  ;;  %4274 = vmatpush1.bf16.msra.mxu0 %v11406_v6  ;;  %v1575_v6 = vld [vmem:[%s11318_s5 + $0x130] sm:$0xff] }
 0x26e   : > { %3889 = vmatprep.subr.bf16.mxu1 %v6501_v12  ;;  %4275 = vmatprep.subr.bf16.mxu0 %v6503_v28  ;;  %v6517_v12 = vcombine.high %v1563_v0, %v1567_v56  ;;  %v6519_v28 = vcombine.high %v1564_v53, %v1568_v40  ;;  %v1584_v0 = vld [vmem:[%s11318_s5 + $0x178] sm:$0xff]  ;;  %v6524_v56 = vcombine.low %v1571_v62, %v1575_v6 }
 0x26f   : > { %v6526_v53 = vcombine.low %v1572_v17, %v1576_v26 }
 0x270   : > { %3890 = vmatpush1.bf16.msra.mxu1 %v6500_v41  ;;  %v6525_v41 = vcombine.high %v1571_v62, %v1575_v6  ;;  %v1592_v62 = vld [vmem:[%s11318_s5 + $0x1b8] sm:$0xff] }
 0x271   : > { %4276 = vmatpush1.bf16.msra.mxu0 %v6502_v34  ;;  %3891 = vmatprep.subr.bf16.mxu1 %v6509_v27  ;;  %v6527_v34 = vcombine.high %v1572_v17, %v1576_v26  ;;  %v1579_v27 = vld [vmem:[%s11318_s5 + $0x150] sm:$0xff]  ;;  %v6534_v17 = vcombine.low %v1580_v2, %v1584_v0 }
 0x272   : > { %4277 = vmatprep.subr.bf16.mxu0 %v6511_v51  ;;  %v1583_v51 = vld [vmem:[%s11318_s5 + $0x170] sm:$0xff] }
 0x273   : > { %3351 = vmatmul.mubr.bf16.gmra.mrb[84].mxu1 %v9022_v48  ;;  %3737 = vmatmul.mubr.bf16.gmra.mrb[84].mxu0 %v9022_v48  ;;  %v6533_v40 = vcombine.high %v1579_v27, %v1583_v51  ;;  %v6532_v6 = vcombine.low %v1579_v27, %v1583_v51 }
 0x274   : > { %3360 = vmatprep.mubr.bf16.mxu1 %v9125_v58  ;;  %3746 = vmatprep.mubr.bf16.mxu0 %v9125_v58 }
 0x275   : > { %3892 = vmatpush1.bf16.msra.mxu1 %v6508_v29  ;;  %4278 = vmatpush1.bf16.msra.mxu0 %v6510_v4  ;;  %v6535_v29 = vcombine.high %v1580_v2, %v1584_v0  ;;  %v1587_v4 = vld [vmem:[%s11318_s5 + $0x190] sm:$0xff]  ;;  %v1600_v2 = vld [vmem:[%s11318_s5 + $0x1f8] sm:$0xff] }
 0x276   : > { %3893 = vmatprep.subr.bf16.mxu1 %v6517_v12  ;;  %4279 = vmatprep.subr.bf16.mxu0 %v6519_v28  ;;  %v1591_v12 = vld [vmem:[%s11318_s5 + $0x1b0] sm:$0xff]  ;;  %v1588_v28 = vld [vmem:[%s11318_s5 + $0x198] sm:$0xff] }
 0x277   : > { %v6541_v26 = vcombine.high %v1587_v4, %v1591_v12  ;;  %v6540_v27 = vcombine.low %v1587_v4, %v1591_v12  ;;  %v6542_v51 = vcombine.low %v1588_v28, %v1592_v62  ;;  %v1608_v4 = vld [vmem:[%s11318_s5 + $0x238] sm:$0xff] }
 0x279   : > { %3894 = vmatpush1.bf16.msra.mxu1 %v6516_v47  ;;  %4280 = vmatpush1.bf16.msra.mxu0 %v6518_v20  ;;  %v6543_v47 = vcombine.high %v1588_v28, %v1592_v62  ;;  %v1595_v20 = vld [vmem:[%s11318_s5 + $0x1d0] sm:$0xff] }
 0x27a   : > { %3895 = vmatprep.subr.bf16.mxu1 %v6525_v41  ;;  %4281 = vmatprep.subr.bf16.mxu0 %v6527_v34  ;;  %v1599_v41 = vld [vmem:[%s11318_s5 + $0x1f0] sm:$0xff]  ;;  %v1596_v34 = vld [vmem:[%s11318_s5 + $0x1d8] sm:$0xff] }
 0x27b   : > { %3361 = vmatmul.mubr.bf16.gmra.mrb[88].mxu1 %v9107_v31  ;;  %3747 = vmatmul.mubr.bf16.gmra.mrb[88].mxu0 %v9107_v31  ;;  %v6549_v0 = vcombine.high %v1595_v20, %v1599_v41  ;;  %v6548_v12 = vcombine.low %v1595_v20, %v1599_v41  ;;  %v6550_v28 = vcombine.low %v1596_v34, %v1600_v2  ;;  %v1616_v20 = vld [vmem:[%s11318_s5 + $0x278] sm:$0xff] }
 0x27c   : > { %3370 = vmatprep.mubr.bf16.mxu1 %v9207_v1  ;;  %3756 = vmatprep.mubr.bf16.mxu0 %v9207_v1 }
 0x27d   : > { %3896 = vmatpush1.bf16.msra.mxu1 %v6524_v56  ;;  %4282 = vmatpush1.bf16.msra.mxu0 %v6526_v53  ;;  %v6551_v56 = vcombine.high %v1596_v34, %v1600_v2  ;;  %v1603_v53 = vld [vmem:[%s11318_s5 + $0x210] sm:$0xff] }
 0x27e   : > { %3897 = vmatprep.subr.bf16.mxu1 %v6533_v40  ;;  %4283 = vmatprep.subr.bf16.mxu0 %v6535_v29  ;;  %v1607_v40 = vld [vmem:[%s11318_s5 + $0x230] sm:$0xff]  ;;  %v1604_v29 = vld [vmem:[%s11318_s5 + $0x218] sm:$0xff] }
 0x27f   : > { %v6557_v62 = vcombine.high %v1603_v53, %v1607_v40  ;;  %v6556_v41 = vcombine.low %v1603_v53, %v1607_v40  ;;  %v6558_v34 = vcombine.low %v1604_v29, %v1608_v4  ;;  %v1624_v53 = vld [vmem:[%s11318_s5 + $0x2b8] sm:$0xff] }
 0x281   : > { %3898 = vmatpush1.bf16.msra.mxu1 %v6532_v6  ;;  %4284 = vmatpush1.bf16.msra.mxu0 %v6534_v17  ;;  %v6559_v6 = vcombine.high %v1604_v29, %v1608_v4  ;;  %v1611_v17 = vld [vmem:[%s11318_s5 + $0x250] sm:$0xff] }
 0x282   : > { %3899 = vmatprep.subr.bf16.mxu1 %v6541_v26  ;;  %4285 = vmatprep.subr.bf16.mxu0 %v6543_v47  ;;  %v1615_v26 = vld [vmem:[%s11318_s5 + $0x270] sm:$0xff]  ;;  %v1612_v47 = vld [vmem:[%s11318_s5 + $0x258] sm:$0xff] }
 0x283   : > { %3371 = vmatmul.mubr.bf16.gmra.mrb[92].mxu1 %v9199_v14  ;;  %3757 = vmatmul.mubr.bf16.gmra.mrb[92].mxu0 %v9199_v14  ;;  %v6565_v2 = vcombine.high %v1611_v17, %v1615_v26  ;;  %v6564_v40 = vcombine.low %v1611_v17, %v1615_v26  ;;  %v6566_v29 = vcombine.low %v1612_v47, %v1616_v20  ;;  %v1632_v17 = vld [vmem:[%s11318_s5 + $0x2f8] sm:$0xff] }
 0x284   : > { %3380 = vmatprep.mubr.bf16.mxu1 %v9299_v35  ;;  %3766 = vmatprep.mubr.bf16.mxu0 %v9299_v35 }
 0x285   : > { %3900 = vmatpush1.bf16.msra.mxu1 %v6540_v27  ;;  %4286 = vmatpush1.bf16.msra.mxu0 %v6542_v51  ;;  %v6567_v27 = vcombine.high %v1612_v47, %v1616_v20  ;;  %v1619_v51 = vld [vmem:[%s11318_s5 + $0x290] sm:$0xff] }
 0x286   : > { %3901 = vmatprep.subr.bf16.mxu1 %v6549_v0  ;;  %4287 = vmatprep.subr.bf16.mxu0 %v6551_v56  ;;  %v1623_v0 = vld [vmem:[%s11318_s5 + $0x2b0] sm:$0xff]  ;;  %v1620_v56 = vld [vmem:[%s11318_s5 + $0x298] sm:$0xff] }
 0x287   : > { %v6573_v4 = vcombine.high %v1619_v51, %v1623_v0  ;;  %v6572_v26 = vcombine.low %v1619_v51, %v1623_v0  ;;  %v6574_v47 = vcombine.low %v1620_v56, %v1624_v53  ;;  %v1640_v51 = vld [vmem:[%s11318_s5 + $0x338] sm:$0xff] }
 0x289   : > { %3902 = vmatpush1.bf16.msra.mxu1 %v6548_v12  ;;  %4288 = vmatpush1.bf16.msra.mxu0 %v6550_v28  ;;  %v6575_v12 = vcombine.high %v1620_v56, %v1624_v53  ;;  %v1627_v28 = vld [vmem:[%s11318_s5 + $0x2d0] sm:$0xff] }
 0x28a   : > { %3903 = vmatprep.subr.bf16.mxu1 %v6557_v62  ;;  %4289 = vmatprep.subr.bf16.mxu0 %v6559_v6  ;;  %v1631_v62 = vld [vmem:[%s11318_s5 + $0x2f0] sm:$0xff]  ;;  %v1628_v6 = vld [vmem:[%s11318_s5 + $0x2d8] sm:$0xff] }
 0x28b   : > { %3381 = vmatmul.mubr.bf16.gmra.mrb[96].mxu1 %v9281_v49  ;;  %3767 = vmatmul.mubr.bf16.gmra.mrb[96].mxu0 %v9281_v49  ;;  %v6581_v20 = vcombine.high %v1627_v28, %v1631_v62  ;;  %v6580_v0 = vcombine.low %v1627_v28, %v1631_v62  ;;  %v6582_v56 = vcombine.low %v1628_v6, %v1632_v17  ;;  %v1648_v28 = vld [vmem:[%s11318_s5 + $0x378] sm:$0xff] }
 0x28c   : > { %3390 = vmatprep.mubr.bf16.mxu1 %v9375_v57  ;;  %3776 = vmatprep.mubr.bf16.mxu0 %v9375_v57 }
 0x28d   : > { %3904 = vmatpush1.bf16.msra.mxu1 %v6556_v41  ;;  %4290 = vmatpush1.bf16.msra.mxu0 %v6558_v34  ;;  %v6583_v41 = vcombine.high %v1628_v6, %v1632_v17  ;;  %v1635_v34 = vld [vmem:[%s11318_s5 + $0x310] sm:$0xff] }
 0x28e   : > { %3905 = vmatprep.subr.bf16.mxu1 %v6565_v2  ;;  %4291 = vmatprep.subr.bf16.mxu0 %v6567_v27  ;;  %v1639_v2 = vld [vmem:[%s11318_s5 + $0x330] sm:$0xff]  ;;  %v1636_v27 = vld [vmem:[%s11318_s5 + $0x318] sm:$0xff] }
 0x28f   : > { %v6589_v53 = vcombine.high %v1635_v34, %v1639_v2  ;;  %v6588_v62 = vcombine.low %v1635_v34, %v1639_v2  ;;  %v6590_v6 = vcombine.low %v1636_v27, %v1640_v51  ;;  %v1656_v34 = vld [vmem:[%s11318_s5 + $0x3b8] sm:$0xff] }
 0x291   : > { %3906 = vmatpush1.bf16.msra.mxu1 %v6564_v40  ;;  %4292 = vmatpush1.bf16.msra.mxu0 %v6566_v29  ;;  %v6591_v40 = vcombine.high %v1636_v27, %v1640_v51  ;;  %v1643_v29 = vld [vmem:[%s11318_s5 + $0x350] sm:$0xff] }
 0x292   : > { %3907 = vmatprep.subr.bf16.mxu1 %v6573_v4  ;;  %4293 = vmatprep.subr.bf16.mxu0 %v6575_v12  ;;  %v1647_v4 = vld [vmem:[%s11318_s5 + $0x370] sm:$0xff]  ;;  %v1644_v12 = vld [vmem:[%s11318_s5 + $0x358] sm:$0xff] }
 0x293   : > { %3391 = vmatmul.mubr.bf16.gmra.mrb[100].mxu1 %v9367_v3  ;;  %3777 = vmatmul.mubr.bf16.gmra.mrb[100].mxu0 %v9367_v3  ;;  %v6597_v17 = vcombine.high %v1643_v29, %v1647_v4  ;;  %v6596_v2 = vcombine.low %v1643_v29, %v1647_v4  ;;  %v6598_v27 = vcombine.low %v1644_v12, %v1648_v28  ;;  %v1664_v29 = vld [vmem:[%s11318_s5 + $0x3f8] sm:$0xff] }
 0x294   : > { %3400 = vmatprep.mubr.bf16.mxu1 %v9458_v24  ;;  %3786 = vmatprep.mubr.bf16.mxu0 %v9458_v24 }
 0x295   : > { %3908 = vmatpush1.bf16.msra.mxu1 %v6572_v26  ;;  %4294 = vmatpush1.bf16.msra.mxu0 %v6574_v47  ;;  %v6599_v26 = vcombine.high %v1644_v12, %v1648_v28  ;;  %v1651_v47 = vld [vmem:[%s11318_s5 + $0x390] sm:$0xff] }
 0x296   : > { %3909 = vmatprep.subr.bf16.mxu1 %v6581_v20  ;;  %4295 = vmatprep.subr.bf16.mxu0 %v6583_v41  ;;  %v1655_v20 = vld [vmem:[%s11318_s5 + $0x3b0] sm:$0xff]  ;;  %v1652_v41 = vld [vmem:[%s11318_s5 + $0x398] sm:$0xff] }
 0x297   : > { %v6605_v51 = vcombine.high %v1651_v47, %v1655_v20  ;;  %v6604_v4 = vcombine.low %v1651_v47, %v1655_v20  ;;  %v6606_v12 = vcombine.low %v1652_v41, %v1656_v34  ;;  %v6623_v47 = vcombine.high %v9747_v30, %v9752_v44  ;;  %v1675_v20 = vld [vmem:[%s11318_s5 + $0x450] sm:$0xff] }
 0x299   : > { %3910 = vmatpush1.bf16.msra.mxu1 %v6580_v0  ;;  %4296 = vmatpush1.bf16.msra.mxu0 %v6582_v56  ;;  %v6607_v0 = vcombine.high %v1652_v41, %v1656_v34  ;;  %v1659_v56 = vld [vmem:[%s11318_s5 + $0x3d0] sm:$0xff]  ;;  %v1676_v34 = vld [vmem:[%s11318_s5 + $0x458] sm:$0xff] }
 0x29a   : > { %3911 = vmatprep.subr.bf16.mxu1 %v6589_v53  ;;  %4297 = vmatprep.subr.bf16.mxu0 %v6591_v40  ;;  %v1663_v53 = vld [vmem:[%s11318_s5 + $0x3f0] sm:$0xff]  ;;  %v1660_v40 = vld [vmem:[%s11318_s5 + $0x3d8] sm:$0xff] }
 0x29b   : > { %3401 = vmatmul.mubr.bf16.gmra.mrb[104].mxu1 %v9440_v19  ;;  %3787 = vmatmul.mubr.bf16.gmra.mrb[104].mxu0 %v9440_v19  ;;  %v6613_v28 = vcombine.high %v1659_v56, %v1663_v53  ;;  %v1679_v41 = vld [vmem:[%s11318_s5 + $0x470] sm:$0xff] }
 0x29c   : > { %3410 = vmatprep.mubr.bf16.mxu1 %v9524_v23  ;;  %3796 = vmatprep.mubr.bf16.mxu0 %v9524_v23 }
 0x29d   : > { %3912 = vmatpush1.bf16.msra.mxu1 %v6588_v62  ;;  %4298 = vmatpush1.bf16.msra.mxu0 %v6590_v6  ;;  %v6615_v62 = vcombine.high %v1660_v40, %v1664_v29  ;;  %v6612_v6 = vcombine.low %v1659_v56, %v1663_v53  ;;  %v1684_v56 = vld [vmem:[%s11318_s5 + $0x498] sm:$0xff] }
 0x29e   : > { %3913 = vmatprep.subr.bf16.mxu1 %v6597_v17  ;;  %4299 = vmatprep.subr.bf16.mxu0 %v6599_v26  ;;  %v6614_v17 = vcombine.low %v1660_v40, %v1664_v29  ;;  %v6621_v26 = vcombine.high %v9701_v10, %v9706_v13  ;;  %v1688_v53 = vld [vmem:[%s11318_s5 + $0x4b8] sm:$0xff]  ;;  %v6628_v40 = vcombine.low %v1675_v20, %v1679_v41  ;;  %v1695_v10 = vld [vmem:[%s11318_s5 + $0x4f0] sm:$0xff] }
 0x29f   : > { %v1696_v13 = vld [vmem:[%s11318_s5 + $0x4f8] sm:$0xff] }
 0x2a1   : > { %3914 = vmatpush1.bf16.msra.mxu1 %v6596_v2  ;;  %4300 = vmatpush1.bf16.msra.mxu0 %v6598_v27  ;;  %v1680_v2 = vld [vmem:[%s11318_s5 + $0x478] sm:$0xff]  ;;  %v6629_v27 = vcombine.high %v1675_v20, %v1679_v41 }
 0x2a2   : > { %3915 = vmatprep.subr.bf16.mxu1 %v6605_v51  ;;  %4301 = vmatprep.subr.bf16.mxu0 %v6607_v0  ;;  %v6631_v51 = vcombine.high %v1676_v34, %v1680_v2  ;;  %v1687_v0 = vld [vmem:[%s11318_s5 + $0x4b0] sm:$0xff]  ;;  %v6630_v29 = vcombine.low %v1676_v34, %v1680_v2 }
 0x2a3   : > { %3411 = vmatmul.mubr.bf16.gmra.mrb[108].mxu1 %v9516_v7  ;;  %3797 = vmatmul.mubr.bf16.gmra.mrb[108].mxu0 %v9516_v7  ;;  %v1707_v2 = vld [vmem:[%s11318_s5 + $0x550] sm:$0xff] }
 0x2a4   : > { %3420 = vmatprep.mubr.bf16.mxu1 %v9550_v59  ;;  %3806 = vmatprep.mubr.bf16.mxu0 %v9550_v59 }
 0x2a5   : > { %3916 = vmatpush1.bf16.msra.mxu1 %v6604_v4  ;;  %4302 = vmatpush1.bf16.msra.mxu0 %v6606_v12  ;;  %v6639_v12 = vcombine.high %v1684_v56, %v1688_v53 }
 0x2a6   : > { %3917 = vmatprep.subr.bf16.mxu1 %v6613_v28  ;;  %4303 = vmatprep.subr.bf16.mxu0 %v6615_v62  ;;  %v1691_v28 = vld [vmem:[%s11318_s5 + $0x4d0] sm:$0xff] }
 0x2a7   : > { %v6644_v20 = vcombine.low %v1691_v28, %v1695_v10 }
 0x2a9   : > { %3918 = vmatpush1.bf16.msra.mxu1 %v6612_v6  ;;  %4304 = vmatpush1.bf16.msra.mxu0 %v6614_v17  ;;  %v1699_v6 = vld [vmem:[%s11318_s5 + $0x510] sm:$0xff] }
 0x2aa   : > { %4080 = vmatprep.subr.bf16.mxu1 %v6621_v26  ;;  %4466 = vmatprep.subr.bf16.mxu0 %v6623_v47  ;;  %v1703_v17 = vld [vmem:[%s11318_s5 + $0x530] sm:$0xff]  ;;  %v1700_v26 = vld [vmem:[%s11318_s5 + $0x518] sm:$0xff] }
 0x2ab   : > { %3421 = vmatmul.mubr.bf16.gmra.mrb[112].mxu1 %v9546_v25  ;;  %3807 = vmatmul.mubr.bf16.gmra.mrb[112].mxu0 %v9546_v25  ;;  %v1704_v47 = vld [vmem:[%s11318_s5 + $0x538] sm:$0xff]  ;;  %v6653_v41 = vcombine.high %v1699_v6, %v1703_v17 }
 0x2ac   : > { %3430 = vmatprep.mubr.bf16.mxu1 %v9570_v37  ;;  %3816 = vmatprep.mubr.bf16.mxu0 %v9570_v37  ;;  %v6655_v34 = vcombine.high %v1700_v26, %v1704_v47 }
 0x2b3   : > { %3431 = vmatmul.mubr.bf16.gmra.mrb[116].mxu1 %v9566_v42  ;;  %3817 = vmatmul.mubr.bf16.gmra.mrb[116].mxu0 %v9566_v42 }
 0x2b4   : > { %3440 = vmatprep.mubr.bf16.mxu1 %v9590_v33  ;;  %3826 = vmatprep.mubr.bf16.mxu0 %v9590_v33 }
 0x2bb   : > { %3441 = vmatmul.mubr.bf16.gmra.mrb[120].mxu1 %v9586_v21  ;;  %3827 = vmatmul.mubr.bf16.gmra.mrb[120].mxu0 %v9586_v21 }
 0x2bc   : > { %3450 = vmatprep.mubr.bf16.mxu1 %v9610_v18  ;;  %3836 = vmatprep.mubr.bf16.mxu0 %v9610_v18 }
 0x2c3   : > { %3451 = vmatmul.mubr.bf16.gmra.mrb[124].mxu1 %v9606_v22  ;;  %3837 = vmatmul.mubr.bf16.gmra.mrb[124].mxu0 %v9606_v22 }
 0x2c4   : > { %3460 = vmatprep.mubr.bf16.mxu1 %v9630_v9  ;;  %3846 = vmatprep.mubr.bf16.mxu0 %v9630_v9 }
 0x2cb   : > { %3461 = vmatmul.mubr.bf16.gmra.mrb[128].mxu1 %v9626_v46  ;;  %3847 = vmatmul.mubr.bf16.gmra.mrb[128].mxu0 %v9626_v46 }
 0x2cc   : > { %3470 = vmatprep.mubr.bf16.mxu1 %v9650_v63  ;;  %3856 = vmatprep.mubr.bf16.mxu0 %v9650_v63 }
 0x2d3   : > { %3471 = vmatmul.mubr.bf16.gmra.mrb[132].mxu1 %v9646_v16  ;;  %3857 = vmatmul.mubr.bf16.gmra.mrb[132].mxu0 %v9646_v16 }
 0x2d4   : > { %3480 = vmatprep.mubr.bf16.mxu1 %v9670_v55  ;;  %3866 = vmatprep.mubr.bf16.mxu0 %v9670_v55 }
 0x2db   : > { %3481 = vmatmul.mubr.bf16.gmra.mrb[136].mxu1 %v9666_v38  ;;  %3867 = vmatmul.mubr.bf16.gmra.mrb[136].mxu0 %v9666_v38 }
 0x2dc   : > { %3490 = vmatprep.mubr.bf16.mxu1 %v9690_v61  ;;  %3876 = vmatprep.mubr.bf16.mxu0 %v9690_v61 }
 0x2e3   : > { %3491 = vmatmul.mubr.bf16.gmra.mrb[140].mxu1 %v9686_v43  ;;  %3877 = vmatmul.mubr.bf16.gmra.mrb[140].mxu0 %v9686_v43 }
 0x2e4   : > { %3919 = vmatprep.mubr.bf16.mxu1 %v8939_v5  ;;  %4305 = vmatprep.mubr.bf16.mxu0 %v8939_v5  ;;  %v1683_v5 = vld [vmem:[%s11318_s5 + $0x490] sm:$0xff] }
 0x2e5   : > { %v6637_v4 = vcombine.high %v1683_v5, %v1687_v0 }
 0x2eb   : > { %3920 = vmatmul.mubr.bf16.vlgmr.msra.gmra.mrb[144].mxu1 %v8921_v54  ;;  %4306 = vmatmul.mubr.bf16.vlgmr.msra.gmra.mrb[144].mxu0 %v8921_v54  ;;  %v11407_v54 = vcombine.low %v9747_v30, %v9752_v44  ;;  %v6638_v30 = vcombine.low %v1684_v56, %v1688_v53  ;;  %v6645_v44 = vcombine.high %v1691_v28, %v1695_v10  ;;  %v11409_v28 = vld [vmem:[#allocation5_spill] sm:$0xff] }
 0x2ec   : > { %4081 = vmatpush1.bf16.msra.mxu1 %v6620_v50  ;;  %3929 = vmatprep.mubr.bf16.mxu1 %v9028_v45  ;;  %v6636_v50 = vcombine.low %v1683_v5, %v1687_v0  ;;  %v6652_v5 = vcombine.low %v1699_v6, %v1703_v17  ;;  %v6654_v0 = vcombine.low %v1700_v26, %v1704_v47  ;;  %v1728_v6 = vld [vmem:[%s11318_s5 + $0x5f8] sm:$0xff] }
 0x2ed   : > { %4315 = vmatprep.mubr.bf16.mxu0 %v9028_v45  ;;  %4467 = vmatpush1.bf16.msra.mxu0 %v11407_v54  ;;  %v1692_v45 = vld [vmem:[%s11318_s5 + $0x4d8] sm:$0xff]  ;;  %v11408_v54 = vld [vmem:[#allocation3_spill] sm:$0xff] }
 0x2ee   : > { %4082 = vmatprep.subr.bf16.mxu1 %v6629_v27  ;;  %4468 = vmatprep.subr.bf16.mxu0 %v6631_v51  ;;  %v6647_v62 = vcombine.high %v1692_v45, %v1696_v13  ;;  %v1711_v27 = vld [vmem:[%s11318_s5 + $0x570] sm:$0xff]  ;;  %v1712_v51 = vld [vmem:[%s11318_s5 + $0x578] sm:$0xff] }
 0x2ef   : > { %v6661_v56 = vcombine.high %v1707_v2, %v1711_v27  ;;  %v6660_v10 = vcombine.low %v1707_v2, %v1711_v27  ;;  %v1732_v2 = vld [vmem:[%s11318_s5 + $0x618] sm:$0xff] }
 0x2f0   : > { %4083 = vmatpush1.bf16.msra.mxu1 %v6628_v40  ;;  %v1715_v40 = vld [vmem:[%s11318_s5 + $0x590] sm:$0xff]  ;;  %v1736_v27 = vld [vmem:[%s11318_s5 + $0x638] sm:$0xff] }
 0x2f1   : > { %4469 = vmatpush1.bf16.msra.mxu0 %v6630_v29  ;;  %4084 = vmatprep.subr.bf16.mxu1 %v6637_v4  ;;  %v1719_v29 = vld [vmem:[%s11318_s5 + $0x5b0] sm:$0xff]  ;;  %v1716_v4 = vld [vmem:[%s11318_s5 + $0x598] sm:$0xff] }
 0x2f2   : > { %4470 = vmatprep.subr.bf16.mxu0 %v6639_v12  ;;  %v1720_v12 = vld [vmem:[%s11318_s5 + $0x5b8] sm:$0xff]  ;;  %v6668_v17 = vcombine.low %v1715_v40, %v1719_v29 }
 0x2f3   : > { %3930 = vmatmul.mubr.bf16.gmra.mrb[148].mxu1 %v9020_v39  ;;  %4316 = vmatmul.mubr.bf16.gmra.mrb[148].mxu0 %v9020_v39  ;;  %v6646_v39 = vcombine.low %v1692_v45, %v1696_v13  ;;  %v6669_v13 = vcombine.high %v1715_v40, %v1719_v29  ;;  %v6670_v26 = vcombine.low %v1716_v4, %v1720_v12  ;;  %v1743_v40 = vld [vmem:[%s11318_s5 + $0x670] sm:$0xff]  ;;  %v1744_v29 = vld [vmem:[%s11318_s5 + $0x678] sm:$0xff] }
 0x2f4   : > { %3939 = vmatprep.mubr.bf16.mxu1 %v9123_v60  ;;  %4325 = vmatprep.mubr.bf16.mxu0 %v9123_v60  ;;  %v1708_v60 = vld [vmem:[%s11318_s5 + $0x558] sm:$0xff] }
 0x2f5   : > { %4085 = vmatpush1.bf16.msra.mxu1 %v6636_v50  ;;  %4471 = vmatpush1.bf16.msra.mxu0 %v6638_v30  ;;  %v6663_v53 = vcombine.high %v1708_v60, %v1712_v51  ;;  %v6662_v45 = vcombine.low %v1708_v60, %v1712_v51  ;;  %v6671_v50 = vcombine.high %v1716_v4, %v1720_v12  ;;  %v1723_v30 = vld [vmem:[%s11318_s5 + $0x5d0] sm:$0xff]  ;;  %v11411_v60 = vld [vmem:[#allocation7_spill] sm:$0xff] }
 0x2f6   : > { %4086 = vmatprep.subr.bf16.mxu1 %v6645_v44  ;;  %4472 = vmatprep.subr.bf16.mxu0 %v6647_v62  ;;  %v1727_v44 = vld [vmem:[%s11318_s5 + $0x5f0] sm:$0xff]  ;;  %v1724_v62 = vld [vmem:[%s11318_s5 + $0x5d8] sm:$0xff]  ;;  %v6686_v12 = vcombine.low %v1732_v2, %v1736_v27 }
 0x2f7   : > { %v6677_v47 = vcombine.high %v1723_v30, %v1727_v44  ;;  %v6676_v51 = vcombine.low %v1723_v30, %v1727_v44  ;;  %v1748_v30 = vld [vmem:[%s11318_s5 + $0x698] sm:$0xff] }
 0x2f8   : > { %v1752_v44 = vld [vmem:[%s11318_s5 + $0x6b8] sm:$0xff] }
 0x2f9   : > { %4087 = vmatpush1.bf16.msra.mxu1 %v6644_v20  ;;  %4473 = vmatpush1.bf16.msra.mxu0 %v6646_v39  ;;  %v6679_v20 = vcombine.high %v1724_v62, %v1728_v6  ;;  %v1731_v39 = vld [vmem:[%s11318_s5 + $0x610] sm:$0xff] }
 0x2fa   : > { %4088 = vmatprep.subr.bf16.mxu1 %v6653_v41  ;;  %4474 = vmatprep.subr.bf16.mxu0 %v6655_v34  ;;  %v11410_v41 = vld [vmem:[#allocation4_spill] sm:$0xff] }
 0x2fb   : > { %3940 = vmatmul.mubr.bf16.gmra.mrb[152].mxu1 %v11408_v54  ;;  %4326 = vmatmul.mubr.bf16.gmra.mrb[152].mxu0 %v11408_v54  ;;  %v1735_v34 = vld [vmem:[%s11318_s5 + $0x630] sm:$0xff]  ;;  %v1740_v54 = vld [vmem:[%s11318_s5 + $0x658] sm:$0xff] }
 0x2fc   : > { %3949 = vmatprep.mubr.bf16.mxu1 %v11409_v28  ;;  %4335 = vmatprep.mubr.bf16.mxu0 %v11409_v28  ;;  %v6684_v4 = vcombine.low %v1731_v39, %v1735_v34 }
 0x2fd   : > { %4089 = vmatpush1.bf16.msra.mxu1 %v6652_v5  ;;  %4475 = vmatpush1.bf16.msra.mxu0 %v6654_v0  ;;  %v6678_v5 = vcombine.low %v1724_v62, %v1728_v6  ;;  %v6685_v0 = vcombine.high %v1731_v39, %v1735_v34  ;;  %v11413_v62 = vld [vmem:[#allocation9_spill] sm:$0xff]  ;;  %v1759_v39 = vld [vmem:[%s11318_s5 + $0x6f0] sm:$0xff] }
 0x2fe   : > { %4090 = vmatprep.subr.bf16.mxu1 %v6661_v56  ;;  %4476 = vmatprep.subr.bf16.mxu0 %v6663_v53  ;;  %v6687_v56 = vcombine.high %v1732_v2, %v1736_v27  ;;  %v1739_v53 = vld [vmem:[%s11318_s5 + $0x650] sm:$0xff]  ;;  %v1760_v34 = vld [vmem:[%s11318_s5 + $0x6f8] sm:$0xff]  ;;  %v6702_v27 = vcombine.low %v1748_v30, %v1752_v44 }
 0x2ff   : > { %v6693_v28 = vcombine.high %v1739_v53, %v1743_v40  ;;  %v6692_v6 = vcombine.low %v1739_v53, %v1743_v40  ;;  %v1764_v53 = vld [vmem:[%s11318_s5 + $0x718] sm:$0xff] }
 0x300   : > { %v1768_v40 = vld [vmem:[%s11318_s5 + $0x738] sm:$0xff] }
 0x301   : > { %4091 = vmatpush1.bf16.msra.mxu1 %v6660_v10  ;;  %4477 = vmatpush1.bf16.msra.mxu0 %v6662_v45  ;;  %v6695_v10 = vcombine.high %v1740_v54, %v1744_v29  ;;  %v1747_v45 = vld [vmem:[%s11318_s5 + $0x690] sm:$0xff] }
 0x302   : > { %4092 = vmatprep.subr.bf16.mxu1 %v6669_v13  ;;  %4478 = vmatprep.subr.bf16.mxu0 %v6671_v50  ;;  %v11412_v13 = vld [vmem:[#allocation6_spill] sm:$0xff]  ;;  %v1751_v50 = vld [vmem:[%s11318_s5 + $0x6b0] sm:$0xff] }
 0x303   : > { %3950 = vmatmul.mubr.bf16.gmra.mrb[156].mxu1 %v11410_v41  ;;  %4336 = vmatmul.mubr.bf16.gmra.mrb[156].mxu0 %v11410_v41  ;;  %v1756_v41 = vld [vmem:[%s11318_s5 + $0x6d8] sm:$0xff]  ;;  %v6700_v2 = vcombine.low %v1747_v45, %v1751_v50 }
 0x304   : > { %3959 = vmatprep.mubr.bf16.mxu1 %v11411_v60  ;;  %4345 = vmatprep.mubr.bf16.mxu0 %v11411_v60 }
 0x305   : > { %4093 = vmatpush1.bf16.msra.mxu1 %v6668_v17  ;;  %4479 = vmatpush1.bf16.msra.mxu0 %v6670_v26  ;;  %v6694_v17 = vcombine.low %v1740_v54, %v1744_v29  ;;  %v6701_v26 = vcombine.high %v1747_v45, %v1751_v50  ;;  %v11415_v54 = vld [vmem:[#allocation11_spill] sm:$0xff]  ;;  %v1775_v45 = vld [vmem:[%s11318_s5 + $0x770] sm:$0xff]  ;;  %v1776_v50 = vld [vmem:[%s11318_s5 + $0x778] sm:$0xff] }
 0x306   : > { %4094 = vmatprep.subr.bf16.mxu1 %v6677_v47  ;;  %4480 = vmatprep.subr.bf16.mxu0 %v6679_v20  ;;  %v6703_v47 = vcombine.high %v1748_v30, %v1752_v44  ;;  %v1755_v20 = vld [vmem:[%s11318_s5 + $0x6d0] sm:$0xff]  ;;  %v6718_v44 = vcombine.low %v1764_v53, %v1768_v40 }
 0x307   : > { %v6709_v60 = vcombine.high %v1755_v20, %v1759_v39  ;;  %v6708_v29 = vcombine.low %v1755_v20, %v1759_v39  ;;  %v1780_v20 = vld [vmem:[%s11318_s5 + $0x798] sm:$0xff] }
 0x308   : > { %v1784_v39 = vld [vmem:[%s11318_s5 + $0x7b8] sm:$0xff] }
 0x309   : > { %4095 = vmatpush1.bf16.msra.mxu1 %v6676_v51  ;;  %4481 = vmatpush1.bf16.msra.mxu0 %v6678_v5  ;;  %v6711_v51 = vcombine.high %v1756_v41, %v1760_v34  ;;  %v1763_v5 = vld [vmem:[%s11318_s5 + $0x710] sm:$0xff] }
 0x30a   : > { %4096 = vmatprep.subr.bf16.mxu1 %v6685_v0  ;;  %4482 = vmatprep.subr.bf16.mxu0 %v6687_v56  ;;  %v11414_v0 = vld [vmem:[#allocation8_spill] sm:$0xff] }
 0x30b   : > { %3960 = vmatmul.mubr.bf16.gmra.mrb[160].mxu1 %v11412_v13  ;;  %4346 = vmatmul.mubr.bf16.gmra.mrb[160].mxu0 %v11412_v13  ;;  %v1767_v56 = vld [vmem:[%s11318_s5 + $0x730] sm:$0xff]  ;;  %v1772_v13 = vld [vmem:[%s11318_s5 + $0x758] sm:$0xff] }
 0x30c   : > { %3969 = vmatprep.mubr.bf16.mxu1 %v11413_v62  ;;  %4355 = vmatprep.mubr.bf16.mxu0 %v11413_v62  ;;  %v6716_v30 = vcombine.low %v1763_v5, %v1767_v56 }
 0x30d   : > { %4097 = vmatpush1.bf16.msra.mxu1 %v6684_v4  ;;  %4483 = vmatpush1.bf16.msra.mxu0 %v6686_v12  ;;  %v6710_v4 = vcombine.low %v1756_v41, %v1760_v34  ;;  %v6717_v12 = vcombine.high %v1763_v5, %v1767_v56  ;;  %v11417_v41 = vld [vmem:[#allocation13_spill] sm:$0xff]  ;;  %v1791_v5 = vld [vmem:[%s11318_s5 + $0x7f0] sm:$0xff] }
 0x30e   : > { %4098 = vmatprep.subr.bf16.mxu1 %v6693_v28  ;;  %4484 = vmatprep.subr.bf16.mxu0 %v6695_v10  ;;  %v6719_v28 = vcombine.high %v1764_v53, %v1768_v40  ;;  %v1771_v10 = vld [vmem:[%s11318_s5 + $0x750] sm:$0xff]  ;;  %v1792_v56 = vld [vmem:[%s11318_s5 + $0x7f8] sm:$0xff]  ;;  %v6734_v40 = vcombine.low %v1780_v20, %v1784_v39 }
 0x30f   : > { %v6725_v62 = vcombine.high %v1771_v10, %v1775_v45  ;;  %v6724_v34 = vcombine.low %v1771_v10, %v1775_v45  ;;  %v8099_v45 = vld [vmem:[%s11320_s7 + $0x40] sm:$0xff]  }
 0x311   : > { %4099 = vmatpush1.bf16.msra.mxu1 %v6692_v6  ;;  %4485 = vmatpush1.bf16.msra.mxu0 %v6694_v17  ;;  %v6727_v6 = vcombine.high %v1772_v13, %v1776_v50  ;;  %v1779_v17 = vld [vmem:[%s11318_s5 + $0x790] sm:$0xff] }
 0x312   : > { %4100 = vmatprep.subr.bf16.mxu1 %v6701_v26  ;;  %4486 = vmatprep.subr.bf16.mxu0 %v6703_v47  ;;  %v11416_v26 = vld [vmem:[#allocation10_spill] sm:$0xff]  ;;  %v1783_v47 = vld [vmem:[%s11318_s5 + $0x7b0] sm:$0xff] }
 0x313   : > { %3970 = vmatmul.mubr.bf16.gmra.mrb[164].mxu1 %v11414_v0  ;;  %4356 = vmatmul.mubr.bf16.gmra.mrb[164].mxu0 %v11414_v0  ;;  %v1788_v0 = vld [vmem:[%s11318_s5 + $0x7d8] sm:$0xff]  ;;  %v6732_v53 = vcombine.low %v1779_v17, %v1783_v47 }
 0x314   : > { %3979 = vmatprep.mubr.bf16.mxu1 %v11415_v54  ;;  %4365 = vmatprep.mubr.bf16.mxu0 %v11415_v54  ;;  %v6742_v10 = vcombine.low %v1788_v0, %v1792_v56 }
 0x315   : > { %4101 = vmatpush1.bf16.msra.mxu1 %v6700_v2  ;;  %4487 = vmatpush1.bf16.msra.mxu0 %v6702_v27  ;;  %v6726_v2 = vcombine.low %v1772_v13, %v1776_v50  ;;  %v6733_v27 = vcombine.high %v1779_v17, %v1783_v47  ;;  %v8101_v13 = vld [vmem:[%s11320_s7 + $0xc0] sm:$0xff]  }
 0x316   : > { %4102 = vmatprep.subr.bf16.mxu1 %v6709_v60  ;;  %4488 = vmatprep.subr.bf16.mxu0 %v6711_v51  ;;  %v6735_v60 = vcombine.high %v1780_v20, %v1784_v39  ;;  %v1787_v51 = vld [vmem:[%s11318_s5 + $0x7d0] sm:$0xff]  ;;  %v11420_v50 = vld [vmem:[#allocation14_spill] sm:$0xff] }
 0x317   : > { %v6741_v54 = vcombine.high %v1787_v51, %v1791_v5  ;;  %v11424_v17 = vld [vmem:[#allocation18_spill] sm:$0xff] }
 0x319   : > { %4103 = vmatpush1.bf16.msra.mxu1 %v6708_v29  ;;  %4489 = vmatpush1.bf16.msra.mxu0 %v6710_v4  ;;  %v6743_v29 = vcombine.high %v1788_v0, %v1792_v56  ;;  %v11418_v4 = vld [vmem:[#allocation12_spill] sm:$0xff] }
 0x31a   : > { %4104 = vmatprep.subr.bf16.mxu1 %v6717_v12  ;;  %4490 = vmatprep.subr.bf16.mxu0 %v6719_v28  ;;  %v11419_v12 = vld [vmem:[#allocation15_spill] sm:$0xff]  ;;  %v6740_v28 = vcombine.low %v1787_v51, %v1791_v5 }
 0x31b   : > { %3980 = vmatmul.mubr.bf16.gmra.mrb[168].mxu1 %v11416_v26  ;;  %4366 = vmatmul.mubr.bf16.gmra.mrb[168].mxu0 %v11416_v26  ;;  %v11425_v26 = vld [vmem:[#allocation2_spill] sm:$0xff] }
 0x31c   : > { %3989 = vmatprep.mubr.bf16.mxu1 %v11417_v41  ;;  %4375 = vmatprep.mubr.bf16.mxu0 %v11417_v41  ;;  %v11426_v47 = vsub.s32 0, %v11425_v26  ;;  %v11427_v39 = vsub.s32 2, %v11425_v26 }
 0x31d   : > { %4105 = vmatpush1.bf16.msra.mxu1 %v6716_v30  ;;  %4491 = vmatpush1.bf16.msra.mxu0 %v6718_v44  ;;  %v11421_v30 = vld [vmem:[#allocation17_spill] sm:$0xff]  ;;  %v11422_v44 = vld [vmem:[#allocation16_spill] sm:$0xff] }
 0x31e   : > { %4106 = vmatprep.subr.bf16.mxu1 %v6725_v62  ;;  %4492 = vmatprep.subr.bf16.mxu0 %v6727_v6  ;;  %v11423_v62 = vld [vmem:[#allocation19_spill] sm:$0xff]  ;;  %v1793_v6 = vld [vmem:[%s11319_s6] sm:$0xff] }
 0x31f   : > { %v10215_v20 = vrot.slane %v1793_v6, %v11426_v47  ;;  %v10219_v41 = vrot.slane %v1793_v6, %v11427_v39  ;;  %v11431_v39 = vld [vmem:[#allocation20_spill] sm:$0xff] }
 0x321   : > { %4107 = vmatpush1.bf16.msra.mxu1 %v6724_v34  ;;  %4493 = vmatpush1.bf16.msra.mxu0 %v6726_v2  ;;  %v11428_v34 = vld [vmem:[#allocation21_spill] sm:$0xff]  ;;  %v11429_v2 = vsub.s32 1, %v11425_v26 }
 0x322   : > { %4108 = vmatprep.subr.bf16.mxu1 %v6733_v27  ;;  %4494 = vmatprep.subr.bf16.mxu0 %v6735_v60  ;;  %v11430_v60 = vsub.s32 3, %v11425_v26  ;;  %v11434_v26 = vld [vmem:[#allocation25_spill] sm:$0xff] }
 0x323   : > { %3990 = vmatmul.mubr.bf16.gmra.mrb[172].mxu1 %v11418_v4  ;;  %4376 = vmatmul.mubr.bf16.gmra.mrb[172].mxu0 %v11418_v4  ;;  %v10225_v27 = vrot.slane %v1793_v6, %v11429_v2 }
 0x324   : > { %3999 = vmatprep.mubr.bf16.mxu1 %v11419_v12  ;;  %4385 = vmatprep.mubr.bf16.mxu0 %v11419_v12  ;;  %v10229_v51 = vrot.slane %v1793_v6, %v11430_v60 }
 0x325   : > { %4109 = vmatpush1.bf16.msra.mxu1 %v6732_v53  ;;  %4495 = vmatpush1.bf16.msra.mxu0 %v6734_v40 }
 0x326   : > { %4110 = vmatprep.subr.bf16.mxu1 %v6741_v54  ;;  %4496 = vmatprep.subr.bf16.mxu0 %v6743_v29 }
 0x329   : > { %4111 = vmatpush1.bf16.msra.mxu1 %v6740_v28  ;;  %4497 = vmatpush1.bf16.msra.mxu0 %v6742_v10 }
 0x32a   : > { %6994 = vmatprep.subr.bf16.mxu1 %v8099_v45  ;;  %7106 = vmatprep.subr.bf16.mxu0 %v8101_v13 }
 0x32b   : > { %4000 = vmatmul.mubr.bf16.gmra.mrb[176].mxu1 %v11420_v50  ;;  %4386 = vmatmul.mubr.bf16.gmra.mrb[176].mxu0 %v11420_v50 }
 0x32c   : > { %4009 = vmatprep.mubr.bf16.mxu1 %v11421_v30  ;;  %4395 = vmatprep.mubr.bf16.mxu0 %v11421_v30 }
 0x333   : > { %4010 = vmatmul.mubr.bf16.gmra.mrb[180].mxu1 %v11422_v44  ;;  %4396 = vmatmul.mubr.bf16.gmra.mrb[180].mxu0 %v11422_v44 }
 0x334   : > { %4019 = vmatprep.mubr.bf16.mxu1 %v11423_v62  ;;  %4405 = vmatprep.mubr.bf16.mxu0 %v11423_v62 }
 0x33b   : > { %4020 = vmatmul.mubr.bf16.gmra.mrb[184].mxu1 %v11424_v17  ;;  %4406 = vmatmul.mubr.bf16.gmra.mrb[184].mxu0 %v11424_v17 }
 0x33c   : > { %4029 = vmatprep.mubr.bf16.mxu1 %v11428_v34  ;;  %4415 = vmatprep.mubr.bf16.mxu0 %v11428_v34 }
 0x33e   : > { %v3342_v5 = vpop.f32.mrb[80].mxu1  ;;  %v3728_v0 = vpop.f32.mrb[80].mxu0 }
 0x33f   : > { %v7506_v56 = vadd.f32 %v3342_v5, %v10215_v20  ;;  %v7570_v53 = vadd.f32 %v3728_v0, %v10219_v41  ;;  %v3344_v40 = vpop.f32.mrb[81].mxu1  ;;  %v3730_v54 = vpop.f32.mrb[81].mxu0  ;;  %v11432_v0 = vld [vmem:[#allocation23_spill] sm:$0xff] }
 0x340   : > { %v7507_v29 = vadd.f32 %v3344_v40, %v10225_v27  ;;  %v7571_v4 = vadd.f32 %v3730_v54, %v10229_v51  ;;  %v3346_v12 = vpop.f32.mrb[82].mxu1  ;;  %v3732_v28 = vpop.f32.mrb[82].mxu0 }
 0x341   : > { %v7508_v10 = vadd.f32 %v3346_v12, %v10215_v20  ;;  %v7572_v45 = vadd.f32 %v3732_v28, %v10219_v41  ;;  %v3348_v13 = vpop.f32.mrb[83].mxu1  ;;  %v3734_v50 = vpop.f32.mrb[83].mxu0  ;;  %v4659_v62 = vmax.f32 %v7506_v56, 0.0  ;;  %v4661_v6 = vmax.f32 %v7570_v53, 0.0 }
 0x342   : > { %v7509_v30 = vadd.f32 %v3348_v13, %v10225_v27  ;;  %v7573_v44 = vadd.f32 %v3734_v50, %v10229_v51  ;;  %v4660_v34 = vmax.f32 %v7507_v29, 0.0  ;;  %v4662_v2 = vmax.f32 %v7571_v4, 0.0 }
 0x343   : > { %v4667_v17 = vmax.f32 %v7508_v10, 0.0  ;;  %v4669_v47 = vmax.f32 %v7572_v45, 0.0  ;;  %4030 = vmatmul.mubr.bf16.gmra.mrb[188].mxu1 %v11431_v39  ;;  %4416 = vmatmul.mubr.bf16.gmra.mrb[188].mxu0 %v11431_v39 }
 0x344   : > { %v4668_v60 = vmax.f32 %v7509_v30, 0.0  ;;  %v4670_v5 = vmax.f32 %v7573_v44, 0.0  ;;  %4039 = vmatprep.mubr.bf16.mxu1 %v11432_v0  ;;  %4425 = vmatprep.mubr.bf16.mxu0 %v11432_v0 }
 0x345   : > { %v10243_v40 = vpack.c.bf16 %v4667_v17, %v4659_v62  ;;  %v10245_v54 = vpack.c.bf16 %v4669_v47, %v4661_v6 }
 0x346   : > { %v10247_v56 = vpack.c.bf16 %v4668_v60, %v4660_v34  ;;  %v10249_v53 = vpack.c.bf16 %v4670_v5, %v4662_v2  ;;  %v3352_v12 = vpop.f32.mrb[84].mxu1  ;;  %v3738_v28 = vpop.f32.mrb[84].mxu0 }
 0x347   : > { %v7510_v10 = vadd.f32 %v3352_v12, %v10215_v20  ;;  %v7574_v29 = vadd.f32 %v3738_v28, %v10219_v41  ;;  %v3354_v4 = vpop.f32.mrb[85].mxu1  ;;  %v3740_v45 = vpop.f32.mrb[85].mxu0  ;;  %v11433_v12 = vld [vmem:[#allocation22_spill] sm:$0xff] }
 0x348   : > { %v7511_v13 = vadd.f32 %v3354_v4, %v10225_v27  ;;  %v7575_v50 = vadd.f32 %v3740_v45, %v10229_v51  ;;  %v3356_v30 = vpop.f32.mrb[86].mxu1  ;;  %v3742_v44 = vpop.f32.mrb[86].mxu0 }
 0x349   : > { %v7512_v62 = vadd.f32 %v3356_v30, %v10215_v20  ;;  %v7576_v6 = vadd.f32 %v3742_v44, %v10219_v41  ;;  %v3358_v17 = vpop.f32.mrb[87].mxu1  ;;  %v3744_v47 = vpop.f32.mrb[87].mxu0  ;;  %v4675_v2 = vmax.f32 %v7510_v10, 0.0  ;;  %v4677_v60 = vmax.f32 %v7574_v29, 0.0 }
 0x34a   : > { %v7513_v39 = vadd.f32 %v3358_v17, %v10225_v27  ;;  %v7577_v34 = vadd.f32 %v3744_v47, %v10229_v51  ;;  %v4676_v28 = vmax.f32 %v7511_v13, 0.0  ;;  %v4678_v4 = vmax.f32 %v7575_v50, 0.0 }
 0x34b   : > { %v4683_v5 = vmax.f32 %v7512_v62, 0.0  ;;  %v4685_v0 = vmax.f32 %v7576_v6, 0.0  ;;  %4040 = vmatmul.mubr.bf16.gmra.mrb[192].mxu1 %v11433_v12  ;;  %4426 = vmatmul.mubr.bf16.gmra.mrb[192].mxu0 %v11433_v12 }
 0x34c   : > { %v4684_v45 = vmax.f32 %v7513_v39, 0.0  ;;  %v4686_v30 = vmax.f32 %v7577_v34, 0.0  ;;  %4049 = vmatprep.mubr.bf16.mxu1 %v11434_v26  ;;  %4435 = vmatprep.mubr.bf16.mxu0 %v11434_v26 }
 0x34d   : > { %v10263_v44 = vpack.c.bf16 %v4683_v5, %v4675_v2  ;;  %v10265_v17 = vpack.c.bf16 %v4685_v0, %v4677_v60 }
 0x34e   : > { %v10267_v10 = vpack.c.bf16 %v4684_v45, %v4676_v28  ;;  %v10269_v29 = vpack.c.bf16 %v4686_v30, %v4678_v4  ;;  %v3362_v62 = vpop.f32.mrb[88].mxu1  ;;  %v3748_v6 = vpop.f32.mrb[88].mxu0 }
 0x34f   : > { %11435 = vst [vmem:[#allocation3_spill] sm:$0xff] %v10263_v44  ;;  %11436 = vst [vmem:[#allocation5_spill] sm:$0xff] %v10265_v17  ;;  %v7514_v47 = vadd.f32 %v3362_v62, %v10215_v20  ;;  %v7578_v13 = vadd.f32 %v3748_v6, %v10219_v41  ;;  %v3364_v50 = vpop.f32.mrb[89].mxu1  ;;  %v3750_v39 = vpop.f32.mrb[89].mxu0  ;;  %v11439_v44 = vld [vmem:[#allocation24_spill] sm:$0xff] }
 0x350   : > { %11437 = vst [vmem:[#allocation4_spill] sm:$0xff] %v10267_v10  ;;  %11438 = vst [vmem:[#allocation7_spill] sm:$0xff] %v10269_v29  ;;  %v7515_v34 = vadd.f32 %v3364_v50, %v10225_v27  ;;  %v7579_v26 = vadd.f32 %v3750_v39, %v10229_v51  ;;  %v3366_v2 = vpop.f32.mrb[90].mxu1  ;;  %v3752_v5 = vpop.f32.mrb[90].mxu0  ;;  %v11440_v10 = vld [vmem:[#allocation26_spill] sm:$0xff] }
 0x351   : > { %v7516_v60 = vadd.f32 %v3366_v2, %v10215_v20  ;;  %v7580_v0 = vadd.f32 %v3752_v5, %v10219_v41  ;;  %v3368_v12 = vpop.f32.mrb[91].mxu1  ;;  %v3754_v28 = vpop.f32.mrb[91].mxu0  ;;  %v4691_v30 = vmax.f32 %v7514_v47, 0.0  ;;  %v4693_v62 = vmax.f32 %v7578_v13, 0.0 }
 0x352   : > { %v7517_v4 = vadd.f32 %v3368_v12, %v10225_v27  ;;  %v7581_v45 = vadd.f32 %v3754_v28, %v10229_v51  ;;  %v4692_v50 = vmax.f32 %v7515_v34, 0.0  ;;  %v4694_v39 = vmax.f32 %v7579_v26, 0.0 }
 0x353   : > { %v4699_v6 = vmax.f32 %v7516_v60, 0.0  ;;  %v4701_v17 = vmax.f32 %v7580_v0, 0.0  ;;  %4050 = vmatmul.mubr.bf16.gmra.mrb[196].mxu1 %v11439_v44  ;;  %4436 = vmatmul.mubr.bf16.gmra.mrb[196].mxu0 %v11439_v44 }
 0x354   : > { %v4700_v29 = vmax.f32 %v7517_v4, 0.0  ;;  %v4702_v2 = vmax.f32 %v7581_v45, 0.0  ;;  %4059 = vmatprep.mubr.bf16.mxu1 %v11440_v10  ;;  %4445 = vmatprep.mubr.bf16.mxu0 %v11440_v10 }
 0x355   : > { %v10283_v5 = vpack.c.bf16 %v4699_v6, %v4691_v30  ;;  %v10285_v12 = vpack.c.bf16 %v4701_v17, %v4693_v62 }
 0x356   : > { %v10287_v47 = vpack.c.bf16 %v4700_v29, %v4692_v50  ;;  %v10289_v13 = vpack.c.bf16 %v4702_v2, %v4694_v39  ;;  %v3372_v60 = vpop.f32.mrb[92].mxu1  ;;  %v3758_v0 = vpop.f32.mrb[92].mxu0 }
 0x357   : > { %11441 = vst [vmem:[#allocation6_spill] sm:$0xff] %v10283_v5  ;;  %11442 = vst [vmem:[#allocation9_spill] sm:$0xff] %v10285_v12  ;;  %v7518_v44 = vadd.f32 %v3372_v60, %v10215_v20  ;;  %v7582_v34 = vadd.f32 %v3758_v0, %v10219_v41  ;;  %v3374_v26 = vpop.f32.mrb[93].mxu1  ;;  %v3760_v28 = vpop.f32.mrb[93].mxu0 }
 0x358   : > { %v7519_v4 = vadd.f32 %v3374_v26, %v10225_v27  ;;  %v7583_v10 = vadd.f32 %v3760_v28, %v10229_v51  ;;  %v3376_v45 = vpop.f32.mrb[94].mxu1  ;;  %v3762_v30 = vpop.f32.mrb[94].mxu0 }
 0x359   : > { %v7520_v17 = vadd.f32 %v3376_v45, %v10215_v20  ;;  %v7584_v29 = vadd.f32 %v3762_v30, %v10219_v41  ;;  %v3378_v62 = vpop.f32.mrb[95].mxu1  ;;  %v3764_v6 = vpop.f32.mrb[95].mxu0  ;;  %v4707_v2 = vmax.f32 %v7518_v44, 0.0  ;;  %v4709_v60 = vmax.f32 %v7582_v34, 0.0 }
 0x35a   : > { %v7521_v50 = vadd.f32 %v3378_v62, %v10225_v27  ;;  %v7585_v39 = vadd.f32 %v3764_v6, %v10229_v51  ;;  %v4708_v26 = vmax.f32 %v7519_v4, 0.0  ;;  %v4710_v28 = vmax.f32 %v7583_v10, 0.0 }
 0x35b   : > { %v4715_v0 = vmax.f32 %v7520_v17, 0.0  ;;  %v4717_v12 = vmax.f32 %v7584_v29, 0.0  ;;  %4060 = vmatmul.mubr.bf16.gmra.mrb[200].mxu1 %v9664_v32  ;;  %4446 = vmatmul.mubr.bf16.gmra.mrb[200].mxu0 %v9664_v32 }
 0x35c   : > { %v4716_v5 = vmax.f32 %v7521_v50, 0.0  ;;  %v4718_v45 = vmax.f32 %v7585_v39, 0.0  ;;  %4069 = vmatprep.mubr.bf16.mxu1 %v9688_v36  ;;  %4455 = vmatprep.mubr.bf16.mxu0 %v9688_v36 }
 0x35d   : > { %v10303_v30 = vpack.c.bf16 %v4715_v0, %v4707_v2  ;;  %v10305_v62 = vpack.c.bf16 %v4717_v12, %v4709_v60 }
 0x35e   : > { %v10307_v44 = vpack.c.bf16 %v4716_v5, %v4708_v26  ;;  %v10309_v34 = vpack.c.bf16 %v4718_v45, %v4710_v28  ;;  %v3382_v17 = vpop.f32.mrb[96].mxu1  ;;  %v3768_v29 = vpop.f32.mrb[96].mxu0 }
 0x35f   : > { %11443 = vst [vmem:[#allocation8_spill] sm:$0xff] %v10303_v30  ;;  %11444 = vst [vmem:[#allocation11_spill] sm:$0xff] %v10305_v62  ;;  %v7522_v32 = vadd.f32 %v3382_v17, %v10215_v20  ;;  %v7586_v4 = vadd.f32 %v3768_v29, %v10219_v41  ;;  %v3384_v10 = vpop.f32.mrb[97].mxu1  ;;  %v3770_v6 = vpop.f32.mrb[97].mxu0 }
 0x360   : > { %11445 = vst [vmem:[#allocation10_spill] sm:$0xff] %v10309_v34  ;;  %v7523_v50 = vadd.f32 %v3384_v10, %v10225_v27  ;;  %v7587_v36 = vadd.f32 %v3770_v6, %v10229_v51  ;;  %v3386_v39 = vpop.f32.mrb[98].mxu1  ;;  %v3772_v2 = vpop.f32.mrb[98].mxu0 }
 0x361   : > { %v7524_v12 = vadd.f32 %v3386_v39, %v10215_v20  ;;  %v7588_v5 = vadd.f32 %v3772_v2, %v10219_v41  ;;  %v3388_v60 = vpop.f32.mrb[99].mxu1  ;;  %v3774_v0 = vpop.f32.mrb[99].mxu0  ;;  %v4723_v45 = vmax.f32 %v7522_v32, 0.0  ;;  %v4725_v17 = vmax.f32 %v7586_v4, 0.0 }
 0x362   : > { %v7525_v26 = vadd.f32 %v3388_v60, %v10225_v27  ;;  %v7589_v28 = vadd.f32 %v3774_v0, %v10229_v51  ;;  %v4724_v10 = vmax.f32 %v7523_v50, 0.0  ;;  %v4726_v6 = vmax.f32 %v7587_v36, 0.0 }
 0x363   : > { %v4731_v29 = vmax.f32 %v7524_v12, 0.0  ;;  %v4733_v62 = vmax.f32 %v7588_v5, 0.0  ;;  %4070 = vmatmul.mubr.bf16.gmra.mrb[204].mxu1 %v9684_v15  ;;  %4456 = vmatmul.mubr.bf16.gmra.mrb[204].mxu0 %v9684_v15 }
 0x364   : > { %v4732_v30 = vmax.f32 %v7525_v26, 0.0  ;;  %v4734_v39 = vmax.f32 %v7589_v28, 0.0  ;;  %4112 = vmatprep.mubr.bf16.mxu1 %v8941_v8  ;;  %4498 = vmatprep.mubr.bf16.mxu0 %v8941_v8 }
 0x365   : > { %v10323_v2 = vpack.c.bf16 %v4731_v29, %v4723_v45  ;;  %v10325_v60 = vpack.c.bf16 %v4733_v62, %v4725_v17 }
 0x366   : > { %v10327_v32 = vpack.c.bf16 %v4732_v30, %v4724_v10  ;;  %v10329_v4 = vpack.c.bf16 %v4734_v39, %v4726_v6  ;;  %v3392_v12 = vpop.f32.mrb[100].mxu1  ;;  %v3778_v5 = vpop.f32.mrb[100].mxu0  ;;  %v8100_v30 = vld [vmem:[%s11320_s7] sm:$0xff]  }
 0x367   : > { %11446 = vst [vmem:[#allocation13_spill] sm:$0xff] %v10323_v2  ;;  %11447 = vst [vmem:[#allocation12_spill] sm:$0xff] %v10325_v60  ;;  %v7526_v15 = vadd.f32 %v3392_v12, %v10215_v20  ;;  %v7590_v50 = vadd.f32 %v3778_v5, %v10219_v41  ;;  %v3394_v36 = vpop.f32.mrb[101].mxu1  ;;  %v3780_v0 = vpop.f32.mrb[101].mxu0  ;;  %v8102_v6 = vld [vmem:[%s11320_s7 + $0x80] sm:$0xff]   ;;  %v8103_v5 = vld [vmem:[%s11320_s7 + $0x48] sm:$0xff]  }
 0x368   : > { %11448 = vst [vmem:[#allocation15_spill] sm:$0xff] %v10327_v32  ;;  %11449 = vst [vmem:[#allocation14_spill] sm:$0xff] %v10329_v4  ;;  %v7527_v26 = vadd.f32 %v3394_v36, %v10225_v27  ;;  %v7591_v8 = vadd.f32 %v3780_v0, %v10229_v51  ;;  %v3396_v28 = vpop.f32.mrb[102].mxu1  ;;  %v3782_v45 = vpop.f32.mrb[102].mxu0  ;;  %v8105_v36 = vld [vmem:[%s11320_s7 + $0xc8] sm:$0xff]  }
 0x369   : > { %v7528_v62 = vadd.f32 %v3396_v28, %v10215_v20  ;;  %v7592_v17 = vadd.f32 %v3782_v45, %v10219_v41  ;;  %v3398_v29 = vpop.f32.mrb[103].mxu1  ;;  %v3784_v10 = vpop.f32.mrb[103].mxu0  ;;  %v4739_v0 = vmax.f32 %v7526_v15, 0.0  ;;  %v4741_v28 = vmax.f32 %v7590_v50, 0.0  ;;  %v8104_v32 = vld [vmem:[%s11320_s7 + $0x8] sm:$0xff]   ;;  %v8107_v50 = vld [vmem:[%s11320_s7 + $0x50] sm:$0xff]  }
 0x36a   : > { %v7529_v39 = vadd.f32 %v3398_v29, %v10225_v27  ;;  %v7593_v12 = vadd.f32 %v3784_v10, %v10229_v51  ;;  %v4740_v2 = vmax.f32 %v7527_v26, 0.0  ;;  %v4742_v29 = vmax.f32 %v7591_v8, 0.0 }
 0x36b   : > { %v4747_v45 = vmax.f32 %v7528_v62, 0.0  ;;  %v4749_v60 = vmax.f32 %v7592_v17, 0.0  ;;  %4113 = vmatmul.mubr.bf16.vlgmr.msra.gmra.mrb[144].mxu1 %v8923_v11  ;;  %4499 = vmatmul.mubr.bf16.vlgmr.msra.gmra.mrb[144].mxu0 %v8923_v11  ;;  %v8106_v11 = vld [vmem:[%s11320_s7 + $0x88] sm:$0xff]  }
 0x36c   : > { %v4748_v4 = vmax.f32 %v7529_v39, 0.0  ;;  %v4750_v10 = vmax.f32 %v7593_v12, 0.0  ;;  %6995 = vmatpush3.bf16.msra.mxu1 %v8100_v30  ;;  %4122 = vmatprep.mubr.bf16.mxu1 %v9030_v52 }
 0x36d   : > { %v10357_v34 = vpack.c.bf16 %v4747_v45, %v4739_v0  ;;  %v10359_v15 = vpack.c.bf16 %v4749_v60, %v4741_v28  ;;  %4508 = vmatprep.mubr.bf16.mxu0 %v9030_v52  ;;  %7107 = vmatpush3.bf16.msra.mxu0 %v8102_v6  ;;  %v8109_v52 = vld [vmem:[%s11320_s7 + $0xd0] sm:$0xff]  }
 0x36e   : > { %v10368_v26 = vpack.c.bf16 %v4748_v4, %v4740_v2  ;;  %v10370_v8 = vpack.c.bf16 %v4750_v10, %v4742_v29  ;;  %v3402_v30 = vpop.f32.mrb[104].mxu1  ;;  %v3788_v62 = vpop.f32.mrb[104].mxu0  ;;  %6996 = vmatprep.subr.bf16.mxu1 %v8103_v5  ;;  %7108 = vmatprep.subr.bf16.mxu0 %v8105_v36  ;;  %v8108_v29 = vld [vmem:[%s11320_s7 + $0x10] sm:$0xff]  }
 0x36f   : > { %11450 = vst [vmem:[#allocation17_spill] sm:$0xff] %v10357_v34  ;;  %11451 = vst [vmem:[#allocation16_spill] sm:$0xff] %v10359_v15  ;;  %v7530_v60 = vadd.f32 %v3402_v30, %v10215_v20  ;;  %v7594_v17 = vadd.f32 %v3788_v62, %v10219_v41  ;;  %v3404_v6 = vpop.f32.mrb[105].mxu1  ;;  %v3790_v39 = vpop.f32.mrb[105].mxu0  ;;  %v8110_v10 = vld [vmem:[%s11320_s7 + $0x90] sm:$0xff]   ;;  %v8111_v62 = vld [vmem:[%s11320_s7 + $0x58] sm:$0xff]  }
 0x370   : > { %v7531_v12 = vadd.f32 %v3404_v6, %v10225_v27  ;;  %v7595_v2 = vadd.f32 %v3790_v39, %v10229_v51  ;;  %v3406_v4 = vpop.f32.mrb[106].mxu1  ;;  %v3792_v0 = vpop.f32.mrb[106].mxu0  ;;  %6997 = vmatpush3.bf16.msra.mxu1 %v8104_v32 }
 0x371   : > { %v7532_v5 = vadd.f32 %v3406_v4, %v10215_v20  ;;  %v7596_v36 = vadd.f32 %v3792_v0, %v10219_v41  ;;  %v3408_v28 = vpop.f32.mrb[107].mxu1  ;;  %v3794_v45 = vpop.f32.mrb[107].mxu0  ;;  %7109 = vmatpush3.bf16.msra.mxu0 %v8106_v11  ;;  %6998 = vmatprep.subr.bf16.mxu1 %v8107_v50  ;;  %v8113_v11 = vld [vmem:[%s11320_s7 + $0xd8] sm:$0xff]   ;;  %v4755_v50 = vmax.f32 %v7530_v60, 0.0  ;;  %v4757_v6 = vmax.f32 %v7594_v17, 0.0 }
 0x372   : > { %v7533_v30 = vadd.f32 %v3408_v28, %v10225_v27  ;;  %v7597_v32 = vadd.f32 %v3794_v45, %v10229_v51  ;;  %7110 = vmatprep.subr.bf16.mxu0 %v8109_v52  ;;  %v4756_v0 = vmax.f32 %v7531_v12, 0.0  ;;  %v4758_v28 = vmax.f32 %v7595_v2, 0.0  ;;  %v8112_v60 = vld [vmem:[%s11320_s7 + $0x18] sm:$0xff]  }
 0x373   : > { %v4763_v39 = vmax.f32 %v7532_v5, 0.0  ;;  %v4765_v4 = vmax.f32 %v7596_v36, 0.0  ;;  %4123 = vmatmul.mubr.bf16.gmra.mrb[148].mxu1 %v9022_v48  ;;  %4509 = vmatmul.mubr.bf16.gmra.mrb[148].mxu0 %v9022_v48  ;;  %v8114_v48 = vld [vmem:[%s11320_s7 + $0x98] sm:$0xff]   ;;  %v8115_v5 = vld [vmem:[%s11320_s7 + $0x60] sm:$0xff]  }
 0x374   : > { %v4764_v45 = vmax.f32 %v7533_v30, 0.0  ;;  %v4766_v52 = vmax.f32 %v7597_v32, 0.0  ;;  %4132 = vmatprep.mubr.bf16.mxu1 %v9125_v58  ;;  %4518 = vmatprep.mubr.bf16.mxu0 %v9125_v58  ;;  %v8117_v36 = vld [vmem:[%s11320_s7 + $0xe0] sm:$0xff]  }
 0x375   : > { %v10399_v15 = vpack.c.bf16 %v4763_v39, %v4755_v50  ;;  %v10401_v34 = vpack.c.bf16 %v4765_v4, %v4757_v6  ;;  %6999 = vmatpush3.bf16.msra.mxu1 %v8108_v29  ;;  %7111 = vmatpush3.bf16.msra.mxu0 %v8110_v10 }
 0x376   : > { %v10409_v17 = vpack.c.bf16 %v4764_v45, %v4756_v0  ;;  %v10411_v12 = vpack.c.bf16 %v4766_v52, %v4758_v28  ;;  %v3412_v2 = vpop.f32.mrb[108].mxu1  ;;  %v3798_v58 = vpop.f32.mrb[108].mxu0  ;;  %7000 = vmatprep.subr.bf16.mxu1 %v8111_v62  ;;  %7112 = vmatprep.subr.bf16.mxu0 %v8113_v11  ;;  %v8116_v45 = vld [vmem:[%s11320_s7 + $0x20] sm:$0xff]  }
 0x377   : > { %11452 = vst [vmem:[#allocation19_spill] sm:$0xff] %v10399_v15  ;;  %11453 = vst [vmem:[#allocation18_spill] sm:$0xff] %v10401_v34  ;;  %v7534_v29 = vadd.f32 %v3412_v2, %v10215_v20  ;;  %v7598_v10 = vadd.f32 %v3798_v58, %v10219_v41  ;;  %v3414_v30 = vpop.f32.mrb[109].mxu1  ;;  %v3800_v32 = vpop.f32.mrb[109].mxu0  ;;  %v8118_v52 = vld [vmem:[%s11320_s7 + $0xa0] sm:$0xff]  }
 0x378   : > { %v7535_v50 = vadd.f32 %v3414_v30, %v10225_v27  ;;  %v7599_v6 = vadd.f32 %v3800_v32, %v10229_v51  ;;  %v3416_v62 = vpop.f32.mrb[110].mxu1  ;;  %v3802_v11 = vpop.f32.mrb[110].mxu0  ;;  %v8119_v30 = vld [vmem:[%s11320_s7 + $0x68] sm:$0xff]  }
 0x379   : > { %v7536_v39 = vadd.f32 %v3416_v62, %v10215_v20  ;;  %v7600_v4 = vadd.f32 %v3802_v11, %v10219_v41  ;;  %v3418_v0 = vpop.f32.mrb[111].mxu1  ;;  %v3804_v28 = vpop.f32.mrb[111].mxu0  ;;  %7001 = vmatpush3.bf16.msra.mxu1 %v8112_v60  ;;  %7113 = vmatpush3.bf16.msra.mxu0 %v8114_v48  ;;  %v8121_v60 = vld [vmem:[%s11320_s7 + $0xe8] sm:$0xff]   ;;  %v4771_v48 = vmax.f32 %v7534_v29, 0.0  ;;  %v4773_v32 = vmax.f32 %v7598_v10, 0.0 }
 0x37a   : > { %v7537_v2 = vadd.f32 %v3418_v0, %v10225_v27  ;;  %v7601_v58 = vadd.f32 %v3804_v28, %v10229_v51  ;;  %7002 = vmatprep.subr.bf16.mxu1 %v8115_v5  ;;  %7114 = vmatprep.subr.bf16.mxu0 %v8117_v36  ;;  %v4772_v0 = vmax.f32 %v7535_v50, 0.0  ;;  %v4774_v28 = vmax.f32 %v7599_v6, 0.0  ;;  %v8120_v29 = vld [vmem:[%s11320_s7 + $0x28] sm:$0xff]  }
 0x37b   : > { %v4779_v62 = vmax.f32 %v7536_v39, 0.0  ;;  %v4781_v11 = vmax.f32 %v7600_v4, 0.0  ;;  %4133 = vmatmul.mubr.bf16.gmra.mrb[152].mxu1 %v9107_v31  ;;  %4519 = vmatmul.mubr.bf16.gmra.mrb[152].mxu0 %v9107_v31  ;;  %v8122_v31 = vld [vmem:[%s11320_s7 + $0xa8] sm:$0xff]   ;;  %v8123_v39 = vld [vmem:[%s11320_s7 + $0x70] sm:$0xff]  }
 0x37c   : > { %v4780_v5 = vmax.f32 %v7537_v2, 0.0  ;;  %v4782_v36 = vmax.f32 %v7601_v58, 0.0  ;;  %4142 = vmatprep.mubr.bf16.mxu1 %v9207_v1  ;;  %4528 = vmatprep.mubr.bf16.mxu0 %v9207_v1  ;;  %v8125_v4 = vld [vmem:[%s11320_s7 + $0xf0] sm:$0xff]  }
 0x37d   : > { %v10443_v34 = vpack.c.bf16 %v4779_v62, %v4771_v48  ;;  %v10445_v15 = vpack.c.bf16 %v4781_v11, %v4773_v32  ;;  %7003 = vmatpush3.bf16.msra.mxu1 %v8116_v45  ;;  %7115 = vmatpush3.bf16.msra.mxu0 %v8118_v52 }
 0x37e   : > { %v10453_v10 = vpack.c.bf16 %v4780_v5, %v4772_v0  ;;  %v10455_v50 = vpack.c.bf16 %v4782_v36, %v4774_v28  ;;  %v3422_v6 = vpop.f32.mrb[112].mxu1  ;;  %v3808_v1 = vpop.f32.mrb[112].mxu0  ;;  %7004 = vmatprep.subr.bf16.mxu1 %v8119_v30  ;;  %7116 = vmatprep.subr.bf16.mxu0 %v8121_v60  ;;  %v8124_v5 = vld [vmem:[%s11320_s7 + $0x30] sm:$0xff]  }
 0x37f   : > { %11454 = vst [vmem:[#allocation21_spill] sm:$0xff] %v10443_v34  ;;  %11455 = vst [vmem:[#allocation20_spill] sm:$0xff] %v10445_v15  ;;  %v7538_v45 = vadd.f32 %v3422_v6, %v10215_v20  ;;  %v7602_v52 = vadd.f32 %v3808_v1, %v10219_v41  ;;  %v3424_v2 = vpop.f32.mrb[113].mxu1  ;;  %v3810_v58 = vpop.f32.mrb[113].mxu0  ;;  %v8126_v36 = vld [vmem:[%s11320_s7 + $0xb0] sm:$0xff]  }
 0x380   : > { %v7539_v48 = vadd.f32 %v3424_v2, %v10225_v27  ;;  %v7603_v32 = vadd.f32 %v3810_v58, %v10229_v51  ;;  %v3426_v30 = vpop.f32.mrb[114].mxu1  ;;  %v3812_v60 = vpop.f32.mrb[114].mxu0  ;;  %v8127_v2 = vld [vmem:[%s11320_s7 + $0x78] sm:$0xff]  }
 0x381   : > { %v7540_v62 = vadd.f32 %v3426_v30, %v10215_v20  ;;  %v7604_v11 = vadd.f32 %v3812_v60, %v10219_v41  ;;  %v3428_v0 = vpop.f32.mrb[115].mxu1  ;;  %v3814_v28 = vpop.f32.mrb[115].mxu0  ;;  %7005 = vmatpush3.bf16.msra.mxu1 %v8120_v29  ;;  %7117 = vmatpush3.bf16.msra.mxu0 %v8122_v31  ;;  %v8129_v29 = vld [vmem:[%s11320_s7 + $0xf8] sm:$0xff]   ;;  %v4787_v31 = vmax.f32 %v7538_v45, 0.0  ;;  %v4789_v58 = vmax.f32 %v7602_v52, 0.0 }
 0x382   : > { %v7541_v6 = vadd.f32 %v3428_v0, %v10225_v27  ;;  %v7605_v1 = vadd.f32 %v3814_v28, %v10229_v51  ;;  %7006 = vmatprep.subr.bf16.mxu1 %v8123_v39  ;;  %7118 = vmatprep.subr.bf16.mxu0 %v8125_v4  ;;  %v4788_v0 = vmax.f32 %v7539_v48, 0.0  ;;  %v4790_v28 = vmax.f32 %v7603_v32, 0.0  ;;  %v8128_v45 = vld [vmem:[%s11320_s7 + $0x38] sm:$0xff]  }
 0x383   : > { %v4795_v30 = vmax.f32 %v7540_v62, 0.0  ;;  %v4797_v60 = vmax.f32 %v7604_v11, 0.0  ;;  %4143 = vmatmul.mubr.bf16.gmra.mrb[156].mxu1 %v9199_v14  ;;  %4529 = vmatmul.mubr.bf16.gmra.mrb[156].mxu0 %v9199_v14  ;;  %v8130_v14 = vld [vmem:[%s11320_s7 + $0xb8] sm:$0xff]   ;;  %v8131_v62 = vld [vmem:[%s11320_s7 + $0x140] sm:$0xff]  }
 0x384   : > { %v4796_v39 = vmax.f32 %v7541_v6, 0.0  ;;  %v4798_v4 = vmax.f32 %v7605_v1, 0.0  ;;  %4152 = vmatprep.mubr.bf16.mxu1 %v9299_v35  ;;  %4538 = vmatprep.mubr.bf16.mxu0 %v9299_v35  ;;  %v8133_v11 = vld [vmem:[%s11320_s7 + $0x1c0] sm:$0xff]  }
 0x385   : > { %v10487_v15 = vpack.c.bf16 %v4795_v30, %v4787_v31  ;;  %v10489_v34 = vpack.c.bf16 %v4797_v60, %v4789_v58  ;;  %7007 = vmatpush3.bf16.msra.mxu1 %v8124_v5  ;;  %7119 = vmatpush3.bf16.msra.mxu0 %v8126_v36 }
 0x386   : > { %v10497_v52 = vpack.c.bf16 %v4796_v39, %v4788_v0  ;;  %v10499_v48 = vpack.c.bf16 %v4798_v4, %v4790_v28  ;;  %v3432_v32 = vpop.f32.mrb[116].mxu1  ;;  %v3818_v35 = vpop.f32.mrb[116].mxu0  ;;  %7008 = vmatprep.subr.bf16.mxu1 %v8127_v2  ;;  %7120 = vmatprep.subr.bf16.mxu0 %v8129_v29 }
 0x387   : > { %11456 = vst [vmem:[#allocation23_spill] sm:$0xff] %v10487_v15  ;;  %11457 = vst [vmem:[#allocation22_spill] sm:$0xff] %v10489_v34  ;;  %v7542_v5 = vadd.f32 %v3432_v32, %v10215_v20  ;;  %v7606_v36 = vadd.f32 %v3818_v35, %v10219_v41  ;;  %v3434_v6 = vpop.f32.mrb[117].mxu1  ;;  %v3820_v1 = vpop.f32.mrb[117].mxu0 }
 0x388   : > { %v7543_v31 = vadd.f32 %v3434_v6, %v10225_v27  ;;  %v7607_v58 = vadd.f32 %v3820_v1, %v10229_v51  ;;  %v3436_v2 = vpop.f32.mrb[118].mxu1  ;;  %v3822_v29 = vpop.f32.mrb[118].mxu0 }
 0x389   : > { %v7544_v30 = vadd.f32 %v3436_v2, %v10215_v20  ;;  %v7608_v60 = vadd.f32 %v3822_v29, %v10219_v41  ;;  %v3438_v0 = vpop.f32.mrb[119].mxu1  ;;  %v3824_v28 = vpop.f32.mrb[119].mxu0  ;;  %7009 = vmatpush3.bf16.msra.mxu1 %v8128_v45  ;;  %7121 = vmatpush3.bf16.msra.mxu0 %v8130_v14  ;;  %v4803_v32 = vmax.f32 %v7542_v5, 0.0  ;;  %v4805_v35 = vmax.f32 %v7606_v36, 0.0 }
 0x38a   : > { %v7545_v39 = vadd.f32 %v3438_v0, %v10225_v27  ;;  %v7609_v4 = vadd.f32 %v3824_v28, %v10229_v51  ;;  %7218 = vmatprep.subr.bf16.mxu1 %v8131_v62  ;;  %7330 = vmatprep.subr.bf16.mxu0 %v8133_v11  ;;  %v4804_v2 = vmax.f32 %v7543_v31, 0.0  ;;  %v4806_v29 = vmax.f32 %v7607_v58, 0.0 }
 0x38b   : > { %v4811_v6 = vmax.f32 %v7544_v30, 0.0  ;;  %v4813_v1 = vmax.f32 %v7608_v60, 0.0  ;;  %4153 = vmatmul.mubr.bf16.gmra.mrb[160].mxu1 %v9281_v49  ;;  %4539 = vmatmul.mubr.bf16.gmra.mrb[160].mxu0 %v9281_v49 }
 0x38c   : > { %v4812_v34 = vmax.f32 %v7545_v39, 0.0  ;;  %v4814_v15 = vmax.f32 %v7609_v4, 0.0  ;;  %4162 = vmatprep.mubr.bf16.mxu1 %v9375_v57  ;;  %4548 = vmatprep.mubr.bf16.mxu0 %v9375_v57 }
 0x38d   : > { %v10519_v45 = vpack.c.bf16 %v4811_v6, %v4803_v32  ;;  %v10521_v14 = vpack.c.bf16 %v4813_v1, %v4805_v35 }
 0x38e   : > { %v10523_v62 = vpack.c.bf16 %v4812_v34, %v4804_v2  ;;  %v10525_v11 = vpack.c.bf16 %v4814_v15, %v4806_v29  ;;  %v3442_v5 = vpop.f32.mrb[120].mxu1  ;;  %v3828_v36 = vpop.f32.mrb[120].mxu0 }
 0x38f   : > { %v7546_v49 = vadd.f32 %v3442_v5, %v10215_v20  ;;  %v7610_v31 = vadd.f32 %v3828_v36, %v10219_v41  ;;  %v3444_v58 = vpop.f32.mrb[121].mxu1  ;;  %v3830_v30 = vpop.f32.mrb[121].mxu0 }
 0x390   : > { %v7547_v60 = vadd.f32 %v3444_v58, %v10225_v27  ;;  %v7611_v57 = vadd.f32 %v3830_v30, %v10229_v51  ;;  %v3446_v0 = vpop.f32.mrb[122].mxu1  ;;  %v3832_v28 = vpop.f32.mrb[122].mxu0 }
 0x391   : > { %v7548_v39 = vadd.f32 %v3446_v0, %v10215_v20  ;;  %v7612_v34 = vadd.f32 %v3832_v28, %v10219_v41  ;;  %v3448_v15 = vpop.f32.mrb[123].mxu1  ;;  %v3834_v4 = vpop.f32.mrb[123].mxu0  ;;  %v4819_v6 = vmax.f32 %v7546_v49, 0.0  ;;  %v4821_v1 = vmax.f32 %v7610_v31, 0.0 }
 0x392   : > { %v7549_v32 = vadd.f32 %v3448_v15, %v10225_v27  ;;  %v7613_v35 = vadd.f32 %v3834_v4, %v10229_v51  ;;  %v4820_v5 = vmax.f32 %v7547_v60, 0.0  ;;  %v4822_v36 = vmax.f32 %v7611_v57, 0.0 }
 0x393   : > { %v4827_v2 = vmax.f32 %v7548_v39, 0.0  ;;  %v4829_v29 = vmax.f32 %v7612_v34, 0.0  ;;  %4163 = vmatmul.mubr.bf16.gmra.mrb[164].mxu1 %v9367_v3  ;;  %4549 = vmatmul.mubr.bf16.gmra.mrb[164].mxu0 %v9367_v3 }
 0x394   : > { %v4828_v58 = vmax.f32 %v7549_v32, 0.0  ;;  %v4830_v30 = vmax.f32 %v7613_v35, 0.0  ;;  %4172 = vmatprep.mubr.bf16.mxu1 %v9458_v24  ;;  %4558 = vmatprep.mubr.bf16.mxu0 %v9458_v24 }
 0x395   : > { %v10539_v0 = vpack.c.bf16 %v4827_v2, %v4819_v6  ;;  %v10541_v28 = vpack.c.bf16 %v4829_v29, %v4821_v1 }
 0x396   : > { %v10543_v49 = vpack.c.bf16 %v4828_v58, %v4820_v5  ;;  %v10545_v31 = vpack.c.bf16 %v4830_v30, %v4822_v36  ;;  %v3452_v39 = vpop.f32.mrb[124].mxu1  ;;  %v3838_v34 = vpop.f32.mrb[124].mxu0 }
 0x397   : > { %11458 = vst [vmem:[#allocation25_spill] sm:$0xff] %v10541_v28  ;;  %v7550_v3 = vadd.f32 %v3452_v39, %v10215_v20  ;;  %v7614_v60 = vadd.f32 %v3838_v34, %v10219_v41  ;;  %v3454_v57 = vpop.f32.mrb[125].mxu1  ;;  %v3840_v15 = vpop.f32.mrb[125].mxu0 }
 0x398   : > { %v7551_v4 = vadd.f32 %v3454_v57, %v10225_v27  ;;  %v7615_v24 = vadd.f32 %v3840_v15, %v10229_v51  ;;  %v3456_v32 = vpop.f32.mrb[126].mxu1  ;;  %v3842_v35 = vpop.f32.mrb[126].mxu0 }
 0x399   : > { %v7552_v6 = vadd.f32 %v3456_v32, %v10215_v20  ;;  %v7616_v1 = vadd.f32 %v3842_v35, %v10219_v41  ;;  %v3458_v2 = vpop.f32.mrb[127].mxu1  ;;  %v3844_v29 = vpop.f32.mrb[127].mxu0  ;;  %v4835_v58 = vmax.f32 %v7550_v3, 0.0  ;;  %v4837_v30 = vmax.f32 %v7614_v60, 0.0 }
 0x39a   : > { %v7553_v5 = vadd.f32 %v3458_v2, %v10225_v27  ;;  %v7617_v36 = vadd.f32 %v3844_v29, %v10229_v51  ;;  %v4836_v57 = vmax.f32 %v7551_v4, 0.0  ;;  %v4838_v15 = vmax.f32 %v7615_v24, 0.0 }
 0x39b   : > { %v4843_v39 = vmax.f32 %v7552_v6, 0.0  ;;  %v4845_v34 = vmax.f32 %v7616_v1, 0.0  ;;  %4173 = vmatmul.mubr.bf16.gmra.mrb[168].mxu1 %v9440_v19  ;;  %4559 = vmatmul.mubr.bf16.gmra.mrb[168].mxu0 %v9440_v19 }
 0x39c   : > { %v4844_v28 = vmax.f32 %v7553_v5, 0.0  ;;  %v4846_v32 = vmax.f32 %v7617_v36, 0.0  ;;  %4182 = vmatprep.mubr.bf16.mxu1 %v9524_v23  ;;  %4568 = vmatprep.mubr.bf16.mxu0 %v9524_v23 }
 0x39d   : > { %v10559_v35 = vpack.c.bf16 %v4843_v39, %v4835_v58  ;;  %v10561_v2 = vpack.c.bf16 %v4845_v34, %v4837_v30 }
 0x39e   : > { %v10563_v3 = vpack.c.bf16 %v4844_v28, %v4836_v57  ;;  %v10565_v60 = vpack.c.bf16 %v4846_v32, %v4838_v15  ;;  %v3462_v6 = vpop.f32.mrb[128].mxu1  ;;  %v3848_v1 = vpop.f32.mrb[128].mxu0 }
 0x39f   : > { %11459 = vst [vmem:[#allocation24_spill] sm:$0xff] %v10559_v35  ;;  %11460 = vst [vmem:[#allocation26_spill] sm:$0xff] %v10561_v2  ;;  %v7554_v19 = vadd.f32 %v3462_v6, %v10215_v20  ;;  %v7618_v4 = vadd.f32 %v3848_v1, %v10219_v41  ;;  %v3464_v24 = vpop.f32.mrb[129].mxu1  ;;  %v3850_v29 = vpop.f32.mrb[129].mxu0 }
 0x3a0   : > { %v7555_v5 = vadd.f32 %v3464_v24, %v10225_v27  ;;  %v7619_v23 = vadd.f32 %v3850_v29, %v10229_v51  ;;  %v3466_v36 = vpop.f32.mrb[130].mxu1  ;;  %v3852_v58 = vpop.f32.mrb[130].mxu0 }
 0x3a1   : > { %v7556_v30 = vadd.f32 %v3466_v36, %v10215_v20  ;;  %v7620_v28 = vadd.f32 %v3852_v58, %v10219_v41  ;;  %v3468_v39 = vpop.f32.mrb[131].mxu1  ;;  %v3854_v34 = vpop.f32.mrb[131].mxu0  ;;  %v4851_v32 = vmax.f32 %v7554_v19, 0.0  ;;  %v4853_v6 = vmax.f32 %v7618_v4, 0.0 }
 0x3a2   : > { %v7557_v57 = vadd.f32 %v3468_v39, %v10225_v27  ;;  %v7621_v15 = vadd.f32 %v3854_v34, %v10229_v51  ;;  %v4852_v24 = vmax.f32 %v7555_v5, 0.0  ;;  %v4854_v29 = vmax.f32 %v7619_v23, 0.0 }
 0x3a3   : > { %v4859_v1 = vmax.f32 %v7556_v30, 0.0  ;;  %v4861_v2 = vmax.f32 %v7620_v28, 0.0  ;;  %4183 = vmatmul.mubr.bf16.gmra.mrb[172].mxu1 %v9516_v7  ;;  %4569 = vmatmul.mubr.bf16.gmra.mrb[172].mxu0 %v9516_v7 }
 0x3a4   : > { %v4860_v35 = vmax.f32 %v7557_v57, 0.0  ;;  %v4862_v36 = vmax.f32 %v7621_v15, 0.0  ;;  %4192 = vmatprep.mubr.bf16.mxu1 %v9550_v59  ;;  %4578 = vmatprep.mubr.bf16.mxu0 %v9550_v59 }
 0x3a5   : > { %v10579_v58 = vpack.c.bf16 %v4859_v1, %v4851_v32  ;;  %v10581_v39 = vpack.c.bf16 %v4861_v2, %v4853_v6 }
 0x3a6   : > { %v10583_v19 = vpack.c.bf16 %v4860_v35, %v4852_v24  ;;  %v10585_v4 = vpack.c.bf16 %v4862_v36, %v4854_v29  ;;  %v3472_v30 = vpop.f32.mrb[132].mxu1  ;;  %v3858_v28 = vpop.f32.mrb[132].mxu0 }
 0x3a7   : > { %11461 = vst [vmem:[#allocation27_spill] sm:$0xff] %v10579_v58  ;;  %11462 = vst [vmem:[#allocation28_spill] sm:$0xff] %v10581_v39  ;;  %v7558_v7 = vadd.f32 %v3472_v30, %v10215_v20  ;;  %v7622_v5 = vadd.f32 %v3858_v28, %v10219_v41  ;;  %v3474_v23 = vpop.f32.mrb[133].mxu1  ;;  %v3860_v34 = vpop.f32.mrb[133].mxu0 }
 0x3a8   : > { %v7559_v57 = vadd.f32 %v3474_v23, %v10225_v27  ;;  %v7623_v59 = vadd.f32 %v3860_v34, %v10229_v51  ;;  %v3476_v15 = vpop.f32.mrb[134].mxu1  ;;  %v3862_v32 = vpop.f32.mrb[134].mxu0 }
 0x3a9   : > { %v7560_v2 = vadd.f32 %v3476_v15, %v10215_v20  ;;  %v7624_v35 = vadd.f32 %v3862_v32, %v10219_v41  ;;  %v3478_v6 = vpop.f32.mrb[135].mxu1  ;;  %v3864_v1 = vpop.f32.mrb[135].mxu0  ;;  %v4867_v36 = vmax.f32 %v7558_v7, 0.0  ;;  %v4869_v30 = vmax.f32 %v7622_v5, 0.0 }
 0x3aa   : > { %v7561_v24 = vadd.f32 %v3478_v6, %v10225_v27  ;;  %v7625_v29 = vadd.f32 %v3864_v1, %v10229_v51  ;;  %v4868_v23 = vmax.f32 %v7559_v57, 0.0  ;;  %v4870_v34 = vmax.f32 %v7623_v59, 0.0 }
 0x3ab   : > { %v4875_v28 = vmax.f32 %v7560_v2, 0.0  ;;  %v4877_v39 = vmax.f32 %v7624_v35, 0.0  ;;  %4193 = vmatmul.mubr.bf16.gmra.mrb[176].mxu1 %v9546_v25  ;;  %4579 = vmatmul.mubr.bf16.gmra.mrb[176].mxu0 %v9546_v25 }
 0x3ac   : > { %v4876_v58 = vmax.f32 %v7561_v24, 0.0  ;;  %v4878_v15 = vmax.f32 %v7625_v29, 0.0  ;;  %4202 = vmatprep.mubr.bf16.mxu1 %v9570_v37  ;;  %4588 = vmatprep.mubr.bf16.mxu0 %v9570_v37 }
 0x3ad   : > { %v10599_v32 = vpack.c.bf16 %v4875_v28, %v4867_v36  ;;  %v10601_v6 = vpack.c.bf16 %v4877_v39, %v4869_v30 }
 0x3ae   : > { %v10603_v7 = vpack.c.bf16 %v4876_v58, %v4868_v23  ;;  %v10605_v5 = vpack.c.bf16 %v4878_v15, %v4870_v34  ;;  %v3482_v2 = vpop.f32.mrb[136].mxu1  ;;  %v3868_v35 = vpop.f32.mrb[136].mxu0 }
 0x3af   : > { %11463 = vst [vmem:[#allocation29_spill] sm:$0xff] %v10599_v32  ;;  %11464 = vst [vmem:[#allocation30_spill] sm:$0xff] %v10601_v6  ;;  %v7562_v25 = vadd.f32 %v3482_v2, %v10215_v20  ;;  %v7626_v57 = vadd.f32 %v3868_v35, %v10219_v41  ;;  %v3484_v59 = vpop.f32.mrb[137].mxu1  ;;  %v3870_v1 = vpop.f32.mrb[137].mxu0 }
 0x3b0   : > { %v7563_v24 = vadd.f32 %v3484_v59, %v10225_v27  ;;  %v7627_v37 = vadd.f32 %v3870_v1, %v10229_v51  ;;  %v3486_v29 = vpop.f32.mrb[138].mxu1  ;;  %v3872_v36 = vpop.f32.mrb[138].mxu0 }
 0x3b1   : > { %v7564_v39 = vadd.f32 %v3486_v29, %v10215_v20  ;;  %v7628_v58 = vadd.f32 %v3872_v36, %v10219_v41  ;;  %v3488_v30 = vpop.f32.mrb[139].mxu1  ;;  %v3874_v28 = vpop.f32.mrb[139].mxu0  ;;  %v4883_v15 = vmax.f32 %v7562_v25, 0.0  ;;  %v4885_v2 = vmax.f32 %v7626_v57, 0.0 }
 0x3b2   : > { %v7565_v23 = vadd.f32 %v3488_v30, %v10225_v27  ;;  %v7629_v34 = vadd.f32 %v3874_v28, %v10229_v51  ;;  %v4884_v59 = vmax.f32 %v7563_v24, 0.0  ;;  %v4886_v1 = vmax.f32 %v7627_v37, 0.0 }
 0x3b3   : > { %v4891_v35 = vmax.f32 %v7564_v39, 0.0  ;;  %v4893_v6 = vmax.f32 %v7628_v58, 0.0  ;;  %4203 = vmatmul.mubr.bf16.gmra.mrb[180].mxu1 %v9566_v42  ;;  %4589 = vmatmul.mubr.bf16.gmra.mrb[180].mxu0 %v9566_v42 }
 0x3b4   : > { %v4892_v32 = vmax.f32 %v7565_v23, 0.0  ;;  %v4894_v29 = vmax.f32 %v7629_v34, 0.0  ;;  %4212 = vmatprep.mubr.bf16.mxu1 %v9590_v33  ;;  %4598 = vmatprep.mubr.bf16.mxu0 %v9590_v33 }
 0x3b5   : > { %v10619_v36 = vpack.c.bf16 %v4891_v35, %v4883_v15  ;;  %v10621_v30 = vpack.c.bf16 %v4893_v6, %v4885_v2 }
 0x3b6   : > { %v10623_v25 = vpack.c.bf16 %v4892_v32, %v4884_v59  ;;  %v10625_v57 = vpack.c.bf16 %v4894_v29, %v4886_v1  ;;  %v3492_v39 = vpop.f32.mrb[140].mxu1  ;;  %v3878_v58 = vpop.f32.mrb[140].mxu0 }
 0x3b7   : > { %11465 = vst [vmem:[#allocation31_spill] sm:$0xff] %v10619_v36  ;;  %11466 = vst [vmem:[#allocation32_spill] sm:$0xff] %v10621_v30  ;;  %v7566_v42 = vadd.f32 %v3492_v39, %v10215_v20  ;;  %v7630_v24 = vadd.f32 %v3878_v58, %v10219_v41  ;;  %v3494_v37 = vpop.f32.mrb[141].mxu1  ;;  %v3880_v28 = vpop.f32.mrb[141].mxu0 }
 0x3b8   : > { %v7567_v23 = vadd.f32 %v3494_v37, %v10225_v27  ;;  %v7631_v33 = vadd.f32 %v3880_v28, %v10229_v51  ;;  %v3496_v34 = vpop.f32.mrb[142].mxu1  ;;  %v3882_v15 = vpop.f32.mrb[142].mxu0 }
 0x3b9   : > { %v7568_v6 = vadd.f32 %v3496_v34, %v10215_v20  ;;  %v7632_v32 = vadd.f32 %v3882_v15, %v10219_v41  ;;  %v3498_v2 = vpop.f32.mrb[143].mxu1  ;;  %v3884_v35 = vpop.f32.mrb[143].mxu0  ;;  %v4899_v29 = vmax.f32 %v7566_v42, 0.0  ;;  %v4901_v39 = vmax.f32 %v7630_v24, 0.0  ;;  %v8146_v24 = vld [vmem:[%s11320_s7 + $0x198] sm:$0xff]   ;;  %v8151_v34 = vld [vmem:[%s11320_s7 + $0x168] sm:$0xff]  }
 0x3ba   : > { %v7569_v59 = vadd.f32 %v3498_v2, %v10225_v27  ;;  %v7633_v1 = vadd.f32 %v3884_v35, %v10229_v51  ;;  %v4900_v37 = vmax.f32 %v7567_v23, 0.0  ;;  %v4902_v28 = vmax.f32 %v7631_v33, 0.0  ;;  %v8147_v23 = vld [vmem:[%s11320_s7 + $0x160] sm:$0xff]   ;;  %v8153_v15 = vld [vmem:[%s11320_s7 + $0x1e8] sm:$0xff]  }
 0x3bb   : > { %v4907_v58 = vmax.f32 %v7568_v6, 0.0  ;;  %v4909_v30 = vmax.f32 %v7632_v32, 0.0  ;;  %4213 = vmatmul.mubr.bf16.gmra.mrb[184].mxu1 %v9586_v21  ;;  %4599 = vmatmul.mubr.bf16.gmra.mrb[184].mxu0 %v9586_v21  ;;  %v8136_v21 = vld [vmem:[%s11320_s7 + $0x108] sm:$0xff]   ;;  %v8150_v33 = vld [vmem:[%s11320_s7 + $0x1a0] sm:$0xff]   ;;  %v11472_v32 = vld [vmem:[#allocation9_spill] sm:$0xff] }
 0x3bc   : > { %v4908_v36 = vmax.f32 %v7569_v59, 0.0  ;;  %v4910_v20 = vmax.f32 %v7633_v1, 0.0  ;;  %4222 = vmatprep.mubr.bf16.mxu1 %v9610_v18  ;;  %4608 = vmatprep.mubr.bf16.mxu0 %v9610_v18  ;;  %v11467_v18 = vld [vmem:[#allocation4_spill] sm:$0xff]  ;;  %v11471_v6 = vld [vmem:[#allocation6_spill] sm:$0xff]  ;;  %v8152_v35 = vld [vmem:[%s11320_s7 + $0x128] sm:$0xff]  }
 0x3bd   : > { %v10639_v41 = vpack.c.bf16 %v4907_v58, %v4899_v29  ;;  %v10641_v27 = vpack.c.bf16 %v4909_v30, %v4901_v39  ;;  %v8144_v30 = vld [vmem:[%s11320_s7 + $0x118] sm:$0xff]   ;;  %v11473_v2 = vld [vmem:[#allocation10_spill] sm:$0xff]  ;;  %v8154_v59 = vld [vmem:[%s11320_s7 + $0x1a8] sm:$0xff]  }
 0x3be   : > { %v10643_v51 = vpack.c.bf16 %v4908_v36, %v4900_v37  ;;  %v10645_v42 = vpack.c.bf16 %v4910_v20, %v4902_v28  ;;  %v11470_v36 = vld [vmem:[#allocation5_spill] sm:$0xff]  ;;  %v8155_v1 = vld [vmem:[%s11320_s7 + $0x170] sm:$0xff]   ;;  %v11475_v20 = vld [vmem:[#allocation11_spill] sm:$0xff] }
 0x3bf   : > { %v8156_v29 = vld [vmem:[%s11320_s7 + $0x130] sm:$0xff]   ;;  %v8159_v58 = vld [vmem:[%s11320_s7 + $0x178] sm:$0xff]  }
 0x3c0   : > { %v8158_v39 = vld [vmem:[%s11320_s7 + $0x1b0] sm:$0xff]   ;;  %v8161_v37 = vld [vmem:[%s11320_s7 + $0x1f8] sm:$0xff]  }
 0x3c1   : > { %v11474_v28 = vld [vmem:[#allocation8_spill] sm:$0xff] }
 0x3c3   : > { %4223 = vmatmul.mubr.bf16.gmra.mrb[188].mxu1 %v9606_v22  ;;  %4609 = vmatmul.mubr.bf16.gmra.mrb[188].mxu0 %v9606_v22  ;;  %v11468_v22 = vld [vmem:[#allocation7_spill] sm:$0xff] }
 0x3c4   : > { %4232 = vmatprep.mubr.bf16.mxu1 %v9630_v9  ;;  %4618 = vmatprep.mubr.bf16.mxu0 %v9630_v9  ;;  %v8137_v9 = vld [vmem:[%s11320_s7 + $0x1c8] sm:$0xff]  }
 0x3cb   : > { %4233 = vmatmul.mubr.bf16.gmra.mrb[192].mxu1 %v9626_v46  ;;  %4619 = vmatmul.mubr.bf16.gmra.mrb[192].mxu0 %v9626_v46  ;;  %v8138_v46 = vld [vmem:[%s11320_s7 + $0x188] sm:$0xff]  }
 0x3cc   : > { %4242 = vmatprep.mubr.bf16.mxu1 %v9650_v63  ;;  %4628 = vmatprep.mubr.bf16.mxu0 %v9650_v63  ;;  %v8134_v63 = vld [vmem:[%s11320_s7 + $0x180] sm:$0xff]  }
 0x3d3   : > { %4243 = vmatmul.mubr.bf16.gmra.mrb[196].mxu1 %v9646_v16  ;;  %4629 = vmatmul.mubr.bf16.gmra.mrb[196].mxu0 %v9646_v16  ;;  %v8139_v16 = vld [vmem:[%s11320_s7 + $0x150] sm:$0xff]  }
 0x3d4   : > { %4252 = vmatprep.mubr.bf16.mxu1 %v9670_v55  ;;  %4638 = vmatprep.mubr.bf16.mxu0 %v9670_v55  ;;  %v8132_v55 = vld [vmem:[%s11320_s7 + $0x100] sm:$0xff]  }
 0x3db   : > { %4253 = vmatmul.mubr.bf16.gmra.mrb[200].mxu1 %v9666_v38  ;;  %4639 = vmatmul.mubr.bf16.gmra.mrb[200].mxu0 %v9666_v38  ;;  %v8141_v38 = vld [vmem:[%s11320_s7 + $0x1d0] sm:$0xff]  }
 0x3dc   : > { %4262 = vmatprep.mubr.bf16.mxu1 %v9690_v61  ;;  %4648 = vmatprep.mubr.bf16.mxu0 %v9690_v61  ;;  %v8135_v61 = vld [vmem:[%s11320_s7 + $0x148] sm:$0xff]  }
 0x3e3   : > { %4263 = vmatmul.mubr.bf16.gmra.mrb[204].mxu1 %v9686_v43  ;;  %4649 = vmatmul.mubr.bf16.gmra.mrb[204].mxu0 %v9686_v43  ;;  %v8140_v43 = vld [vmem:[%s11320_s7 + $0x110] sm:$0xff]  }
 0x3e4   : > { %5594 = vmatprep.mubr.bf16.mxu1 %v10247_v56  ;;  %5755 = vmatprep.mubr.bf16.mxu0 %v10249_v53  ;;  %v8145_v56 = vld [vmem:[%s11320_s7 + $0x1d8] sm:$0xff]   ;;  %v11469_v53 = vld [vmem:[#allocation3_spill] sm:$0xff] }
 0x3eb   : > { %5595 = vmatmul.mubr.bf16.vlgmr.msra.gmra.mrb[208].mxu1 %v10243_v40  ;;  %5756 = vmatmul.mubr.bf16.vlgmr.msra.gmra.mrb[208].mxu0 %v10245_v54  ;;  %v8142_v40 = vld [vmem:[%s11320_s7 + $0x190] sm:$0xff]   ;;  %v8143_v54 = vld [vmem:[%s11320_s7 + $0x158] sm:$0xff]  }
 0x3ec   : > { %7219 = vmatpush3.bf16.msra.mxu1 %v8132_v55  ;;  %5602 = vmatprep.mubr.bf16.mxu1 %v11467_v18  ;;  %v11476_v55 = vld [vmem:[#allocation15_spill] sm:$0xff]  ;;  %v11478_v18 = vld [vmem:[#allocation13_spill] sm:$0xff] }
 0x3ed   : > { %5763 = vmatprep.mubr.bf16.mxu0 %v11468_v22  ;;  %7331 = vmatpush3.bf16.msra.mxu0 %v8134_v63  ;;  %v11477_v63 = vld [vmem:[#allocation14_spill] sm:$0xff]  ;;  %v11480_v22 = vld [vmem:[#allocation17_spill] sm:$0xff] }
 0x3ee   : > { %7220 = vmatprep.subr.bf16.mxu1 %v8135_v61  ;;  %7332 = vmatprep.subr.bf16.mxu0 %v8137_v9  ;;  %v8160_v61 = vld [vmem:[%s11320_s7 + $0x138] sm:$0xff]  }
 0x3ef   : > { %v8162_v9 = vld [vmem:[%s11320_s7 + $0x1b8] sm:$0xff]  }
 0x3f0   : > { %7221 = vmatpush3.bf16.msra.mxu1 %v8136_v21  ;;  %v11479_v21 = vld [vmem:[#allocation12_spill] sm:$0xff] }
 0x3f1   : > { %7333 = vmatpush3.bf16.msra.mxu0 %v8138_v46  ;;  %7222 = vmatprep.subr.bf16.mxu1 %v8139_v16  ;;  %v11481_v46 = vld [vmem:[#allocation16_spill] sm:$0xff]  ;;  %v11482_v16 = vld [vmem:[#allocation19_spill] sm:$0xff] }
 0x3f2   : > { %7334 = vmatprep.subr.bf16.mxu0 %v8141_v38  ;;  %v11483_v38 = vld [vmem:[#allocation18_spill] sm:$0xff] }
 0x3f3   : > { %5603 = vmatmul.mubr.bf16.gmra.mrb[212].mxu1 %v11469_v53  ;;  %5764 = vmatmul.mubr.bf16.gmra.mrb[212].mxu0 %v11470_v36 }
 0x3f4   : > { %5610 = vmatprep.mubr.bf16.mxu1 %v10287_v47  ;;  %5771 = vmatprep.mubr.bf16.mxu0 %v10289_v13  ;;  %v8149_v47 = vld [vmem:[%s11320_s7 + $0x1e0] sm:$0xff]  }
 0x3f5   : > { %7223 = vmatpush3.bf16.msra.mxu1 %v8140_v43  ;;  %7335 = vmatpush3.bf16.msra.mxu0 %v8142_v40  ;;  %v8148_v13 = vld [vmem:[%s11320_s7 + $0x120] sm:$0xff]   ;;  %v11484_v43 = vld [vmem:[#allocation21_spill] sm:$0xff] }
 0x3f6   : > { %7224 = vmatprep.subr.bf16.mxu1 %v8143_v54  ;;  %7336 = vmatprep.subr.bf16.mxu0 %v8145_v56 }
 0x3f9   : > { %7225 = vmatpush3.bf16.msra.mxu1 %v8144_v30  ;;  %7337 = vmatpush3.bf16.msra.mxu0 %v8146_v24 }
 0x3fa   : > { %7226 = vmatprep.subr.bf16.mxu1 %v8147_v23  ;;  %7338 = vmatprep.subr.bf16.mxu0 %v8149_v47 }
 0x3fb   : > { %5611 = vmatmul.mubr.bf16.gmra.mrb[216].mxu1 %v11471_v6  ;;  %5772 = vmatmul.mubr.bf16.gmra.mrb[216].mxu0 %v11472_v32 }
 0x3fc   : > { %5618 = vmatprep.mubr.bf16.mxu1 %v10307_v44  ;;  %5779 = vmatprep.mubr.bf16.mxu0 %v11473_v2  ;;  %v8157_v44 = vld [vmem:[%s11320_s7 + $0x1f0] sm:$0xff]  }
 0x3fd   : > { %7227 = vmatpush3.bf16.msra.mxu1 %v8148_v13  ;;  %7339 = vmatpush3.bf16.msra.mxu0 %v8150_v33 }
 0x3fe   : > { %7228 = vmatprep.subr.bf16.mxu1 %v8151_v34  ;;  %7340 = vmatprep.subr.bf16.mxu0 %v8153_v15 }
 0x401   : > { %7229 = vmatpush3.bf16.msra.mxu1 %v8152_v35  ;;  %7341 = vmatpush3.bf16.msra.mxu0 %v8154_v59  ;;  %v11490_v59 = vld [vmem:[#allocation24_spill] sm:$0xff] }
 0x402   : > { %7230 = vmatprep.subr.bf16.mxu1 %v8155_v1  ;;  %7342 = vmatprep.subr.bf16.mxu0 %v8157_v44  ;;  %v11491_v1 = vld [vmem:[#allocation26_spill] sm:$0xff] }
 0x403   : > { %5619 = vmatmul.mubr.bf16.gmra.mrb[220].mxu1 %v11474_v28  ;;  %5780 = vmatmul.mubr.bf16.gmra.mrb[220].mxu0 %v11475_v20 }
 0x404   : > { %5626 = vmatprep.mubr.bf16.mxu1 %v11476_v55  ;;  %5787 = vmatprep.mubr.bf16.mxu0 %v11477_v63 }
 0x405   : > { %7231 = vmatpush3.bf16.msra.mxu1 %v8156_v29  ;;  %7343 = vmatpush3.bf16.msra.mxu0 %v8158_v39 }
 0x406   : > { %7232 = vmatprep.subr.bf16.mxu1 %v8159_v58  ;;  %7344 = vmatprep.subr.bf16.mxu0 %v8161_v37 }
 0x409   : > { %7233 = vmatpush3.bf16.msra.mxu1 %v8160_v61  ;;  %7345 = vmatpush3.bf16.msra.mxu0 %v8162_v9 }
 0x40b   : > { %5627 = vmatmul.mubr.bf16.gmra.mrb[224].mxu1 %v11478_v18  ;;  %5788 = vmatmul.mubr.bf16.gmra.mrb[224].mxu0 %v11479_v21 }
 0x40c   : > { %5634 = vmatprep.mubr.bf16.mxu1 %v10368_v26  ;;  %5795 = vmatprep.mubr.bf16.mxu0 %v10370_v8  ;;  %v11485_v26 = vld [vmem:[#allocation20_spill] sm:$0xff]  ;;  %v11486_v8 = vld [vmem:[#allocation23_spill] sm:$0xff] }
 0x413   : > { %5635 = vmatmul.mubr.bf16.gmra.mrb[228].mxu1 %v11480_v22  ;;  %5796 = vmatmul.mubr.bf16.gmra.mrb[228].mxu0 %v11481_v46 }
 0x414   : > { %5642 = vmatprep.mubr.bf16.mxu1 %v10409_v17  ;;  %5803 = vmatprep.mubr.bf16.mxu0 %v10411_v12  ;;  %v11487_v17 = vld [vmem:[#allocation22_spill] sm:$0xff] }
 0x415   : > { %v11488_v12 = vld [vmem:[#allocation2_spill] sm:$0xff] }
 0x41b   : > { %5643 = vmatmul.mubr.bf16.gmra.mrb[232].mxu1 %v11482_v16  ;;  %5804 = vmatmul.mubr.bf16.gmra.mrb[232].mxu0 %v11483_v38 }
 0x41c   : > { %5650 = vmatprep.mubr.bf16.mxu1 %v10453_v10  ;;  %5811 = vmatprep.mubr.bf16.mxu0 %v10455_v50  ;;  %v1813_v10 = vsub.s32 4, %v11488_v12  ;;  %v1821_v50 = vsub.s32 6, %v11488_v12 }
 0x423   : > { %5651 = vmatmul.mubr.bf16.gmra.mrb[236].mxu1 %v11484_v43  ;;  %5812 = vmatmul.mubr.bf16.gmra.mrb[236].mxu0 %v11485_v26 }
 0x424   : > { %5658 = vmatprep.mubr.bf16.mxu1 %v10497_v52  ;;  %5819 = vmatprep.mubr.bf16.mxu0 %v10499_v48  ;;  %v1817_v52 = vsub.s32 5, %v11488_v12  ;;  %v1825_v48 = vsub.s32 7, %v11488_v12 }
 0x42b   : > { %5659 = vmatmul.mubr.bf16.gmra.mrb[240].mxu1 %v11486_v8  ;;  %5820 = vmatmul.mubr.bf16.gmra.mrb[240].mxu0 %v11487_v17 }
 0x42c   : > { %5666 = vmatprep.mubr.bf16.mxu1 %v10523_v62  ;;  %5827 = vmatprep.mubr.bf16.mxu0 %v10525_v11  ;;  %v11489_v62 = vld [vmem:[#allocation25_spill] sm:$0xff] }
 0x433   : > { %5667 = vmatmul.mubr.bf16.gmra.mrb[244].mxu1 %v10519_v45  ;;  %5828 = vmatmul.mubr.bf16.gmra.mrb[244].mxu0 %v10521_v14  ;;  %v8163_v45 = vld [vmem:[%s11319_s6] sm:$0xff] }
 0x434   : > { %5674 = vmatprep.mubr.bf16.mxu1 %v10543_v49  ;;  %5835 = vmatprep.mubr.bf16.mxu0 %v10545_v31  ;;  %v10806_v14 = vrot.slane %v8163_v45, %v1813_v10  ;;  %v10808_v11 = vrot.slane %v8163_v45, %v1821_v50  ;;  %v10812_v49 = vrot.slane %v8163_v45, %v1817_v52 }
 0x435   : > { %v10814_v31 = vrot.slane %v8163_v45, %v1825_v48  ;;  %v11493_v45 = vld [vmem:[#allocation28_spill] sm:$0xff] }
 0x43b   : > { %5675 = vmatmul.mubr.bf16.gmra.mrb[248].mxu1 %v10539_v0  ;;  %5836 = vmatmul.mubr.bf16.gmra.mrb[248].mxu0 %v11489_v62  ;;  %v11492_v62 = vld [vmem:[#allocation27_spill] sm:$0xff] }
 0x43c   : > { %5682 = vmatprep.mubr.bf16.mxu1 %v10563_v3  ;;  %5843 = vmatprep.mubr.bf16.mxu0 %v10565_v60 }
 0x43e   : > { %v4114_v40 = vpop.f32.mrb[144].mxu1  ;;  %v4500_v0 = vpop.f32.mrb[144].mxu0 }
 0x43f   : > { %v7634_v54 = vadd.f32 %v4114_v40, %v10806_v14  ;;  %v7698_v56 = vadd.f32 %v4500_v0, %v10808_v11  ;;  %v4116_v53 = vpop.f32.mrb[145].mxu1  ;;  %v4502_v36 = vpop.f32.mrb[145].mxu0 }
 0x440   : > { %v7635_v30 = vadd.f32 %v4116_v53, %v10812_v49  ;;  %v7699_v24 = vadd.f32 %v4502_v36, %v10814_v31  ;;  %v4118_v23 = vpop.f32.mrb[146].mxu1  ;;  %v4504_v3 = vpop.f32.mrb[146].mxu0 }
 0x441   : > { %v7636_v60 = vadd.f32 %v4118_v23, %v10806_v14  ;;  %v7700_v47 = vadd.f32 %v4504_v3, %v10808_v11  ;;  %v4120_v13 = vpop.f32.mrb[147].mxu1  ;;  %v4506_v33 = vpop.f32.mrb[147].mxu0  ;;  %v4663_v6 = vmax.f32 %v7634_v54, 0.0  ;;  %v4665_v32 = vmax.f32 %v7698_v56, 0.0 }
 0x442   : > { %v7637_v34 = vadd.f32 %v4120_v13, %v10812_v49  ;;  %v7701_v15 = vadd.f32 %v4506_v33, %v10814_v31  ;;  %v4664_v44 = vmax.f32 %v7635_v30, 0.0  ;;  %v4666_v29 = vmax.f32 %v7699_v24, 0.0 }
 0x443   : > { %v4671_v2 = vmax.f32 %v7636_v60, 0.0  ;;  %v4673_v35 = vmax.f32 %v7700_v47, 0.0  ;;  %5683 = vmatmul.mubr.bf16.gmra.mrb[252].mxu1 %v11490_v59  ;;  %5844 = vmatmul.mubr.bf16.gmra.mrb[252].mxu0 %v11491_v1 }
 0x444   : > { %v4672_v39 = vmax.f32 %v7637_v34, 0.0  ;;  %v4674_v58 = vmax.f32 %v7701_v15, 0.0  ;;  %5690 = vmatprep.mubr.bf16.mxu1 %v10583_v19  ;;  %5851 = vmatprep.mubr.bf16.mxu0 %v10585_v4 }
 0x445   : > { %v10828_v37 = vpack.c.bf16 %v4671_v2, %v4663_v6  ;;  %v10830_v28 = vpack.c.bf16 %v4673_v35, %v4665_v32 }
 0x446   : > { %v10832_v20 = vpack.c.bf16 %v4672_v39, %v4664_v44  ;;  %v10834_v55 = vpack.c.bf16 %v4674_v58, %v4666_v29  ;;  %v4124_v63 = vpop.f32.mrb[148].mxu1  ;;  %v4510_v61 = vpop.f32.mrb[148].mxu0 }
 0x447   : > { %v7638_v9 = vadd.f32 %v4124_v63, %v10806_v14  ;;  %v7702_v18 = vadd.f32 %v4510_v61, %v10808_v11  ;;  %v4126_v21 = vpop.f32.mrb[149].mxu1  ;;  %v4512_v22 = vpop.f32.mrb[149].mxu0  ;;  %v11494_v63 = vld [vmem:[#allocation29_spill] sm:$0xff]  ;;  %v11495_v61 = vld [vmem:[#allocation30_spill] sm:$0xff] }
 0x448   : > { %v7639_v19 = vadd.f32 %v4126_v21, %v10812_v49  ;;  %v7703_v4 = vadd.f32 %v4512_v22, %v10814_v31  ;;  %v4128_v46 = vpop.f32.mrb[150].mxu1  ;;  %v4514_v16 = vpop.f32.mrb[150].mxu0 }
 0x449   : > { %v7640_v38 = vadd.f32 %v4128_v46, %v10806_v14  ;;  %v7704_v43 = vadd.f32 %v4514_v16, %v10808_v11  ;;  %v4130_v26 = vpop.f32.mrb[151].mxu1  ;;  %v4516_v8 = vpop.f32.mrb[151].mxu0  ;;  %v4679_v10 = vmax.f32 %v7638_v9, 0.0  ;;  %v4681_v50 = vmax.f32 %v7702_v18, 0.0 }
 0x44a   : > { %v7641_v17 = vadd.f32 %v4130_v26, %v10812_v49  ;;  %v7705_v12 = vadd.f32 %v4516_v8, %v10814_v31  ;;  %v4680_v40 = vmax.f32 %v7639_v19, 0.0  ;;  %v4682_v0 = vmax.f32 %v7703_v4, 0.0 }
 0x44b   : > { %v4687_v52 = vmax.f32 %v7640_v38, 0.0  ;;  %v4689_v48 = vmax.f32 %v7704_v43, 0.0  ;;  %5691 = vmatmul.mubr.bf16.gmra.mrb[0].mxu1 %v11492_v62  ;;  %5852 = vmatmul.mubr.bf16.gmra.mrb[0].mxu0 %v11493_v45 }
 0x44c   : > { %v4688_v54 = vmax.f32 %v7641_v17, 0.0  ;;  %v4690_v56 = vmax.f32 %v7705_v12, 0.0  ;;  %5698 = vmatprep.mubr.bf16.mxu1 %v10603_v7  ;;  %5859 = vmatprep.mubr.bf16.mxu0 %v10605_v5 }
 0x44d   : > { %v10848_v53 = vpack.c.bf16 %v4687_v52, %v4679_v10  ;;  %v10850_v36 = vpack.c.bf16 %v4689_v48, %v4681_v50 }
 0x44e   : > { %v10852_v30 = vpack.c.bf16 %v4688_v54, %v4680_v40  ;;  %v10854_v24 = vpack.c.bf16 %v4690_v56, %v4682_v0  ;;  %v4134_v23 = vpop.f32.mrb[152].mxu1  ;;  %v4520_v3 = vpop.f32.mrb[152].mxu0 }
 0x44f   : > { %v7642_v60 = vadd.f32 %v4134_v23, %v10806_v14  ;;  %v7706_v47 = vadd.f32 %v4520_v3, %v10808_v11  ;;  %v4136_v13 = vpop.f32.mrb[153].mxu1  ;;  %v4522_v33 = vpop.f32.mrb[153].mxu0 }
 0x450   : > { %v7643_v7 = vadd.f32 %v4136_v13, %v10812_v49  ;;  %v7707_v5 = vadd.f32 %v4522_v33, %v10814_v31  ;;  %v4138_v34 = vpop.f32.mrb[154].mxu1  ;;  %v4524_v15 = vpop.f32.mrb[154].mxu0 }
 0x451   : > { %v7644_v6 = vadd.f32 %v4138_v34, %v10806_v14  ;;  %v7708_v32 = vadd.f32 %v4524_v15, %v10808_v11  ;;  %v4140_v2 = vpop.f32.mrb[155].mxu1  ;;  %v4526_v35 = vpop.f32.mrb[155].mxu0  ;;  %v4695_v44 = vmax.f32 %v7642_v60, 0.0  ;;  %v4697_v29 = vmax.f32 %v7706_v47, 0.0  ;;  %v11496_v60 = vld [vmem:[#allocation31_spill] sm:$0xff]  ;;  %v11497_v47 = vld [vmem:[#allocation32_spill] sm:$0xff] }
 0x452   : > { %v7645_v59 = vadd.f32 %v4140_v2, %v10812_v49  ;;  %v7709_v1 = vadd.f32 %v4526_v35, %v10814_v31  ;;  %v4696_v9 = vmax.f32 %v7643_v7, 0.0  ;;  %v4698_v18 = vmax.f32 %v7707_v5, 0.0 }
 0x453   : > { %v4703_v39 = vmax.f32 %v7644_v6, 0.0  ;;  %v4705_v58 = vmax.f32 %v7708_v32, 0.0  ;;  %5699 = vmatmul.mubr.bf16.gmra.mrb[4].mxu1 %v11494_v63  ;;  %5860 = vmatmul.mubr.bf16.gmra.mrb[4].mxu0 %v11495_v61 }
 0x454   : > { %v4704_v21 = vmax.f32 %v7645_v59, 0.0  ;;  %v4706_v22 = vmax.f32 %v7709_v1, 0.0  ;;  %5706 = vmatprep.mubr.bf16.mxu1 %v10623_v25  ;;  %5867 = vmatprep.mubr.bf16.mxu0 %v10625_v57 }
 0x455   : > { %v10868_v19 = vpack.c.bf16 %v4703_v39, %v4695_v44  ;;  %v10870_v4 = vpack.c.bf16 %v4705_v58, %v4697_v29 }
 0x456   : > { %v10872_v46 = vpack.c.bf16 %v4704_v21, %v4696_v9  ;;  %v10874_v16 = vpack.c.bf16 %v4706_v22, %v4698_v18  ;;  %v4144_v38 = vpop.f32.mrb[156].mxu1  ;;  %v4530_v43 = vpop.f32.mrb[156].mxu0 }
 0x457   : > { %v7646_v26 = vadd.f32 %v4144_v38, %v10806_v14  ;;  %v7710_v8 = vadd.f32 %v4530_v43, %v10808_v11  ;;  %v4146_v17 = vpop.f32.mrb[157].mxu1  ;;  %v4532_v12 = vpop.f32.mrb[157].mxu0 }
 0x458   : > { %v7647_v25 = vadd.f32 %v4146_v17, %v10812_v49  ;;  %v7711_v57 = vadd.f32 %v4532_v12, %v10814_v31  ;;  %v4148_v10 = vpop.f32.mrb[158].mxu1  ;;  %v4534_v50 = vpop.f32.mrb[158].mxu0 }
 0x459   : > { %v7648_v52 = vadd.f32 %v4148_v10, %v10806_v14  ;;  %v7712_v48 = vadd.f32 %v4534_v50, %v10808_v11  ;;  %v4150_v62 = vpop.f32.mrb[159].mxu1  ;;  %v4536_v45 = vpop.f32.mrb[159].mxu0  ;;  %v4711_v54 = vmax.f32 %v7646_v26, 0.0  ;;  %v4713_v56 = vmax.f32 %v7710_v8, 0.0 }
 0x45a   : > { %v7649_v40 = vadd.f32 %v4150_v62, %v10812_v49  ;;  %v7713_v0 = vadd.f32 %v4536_v45, %v10814_v31  ;;  %v4712_v13 = vmax.f32 %v7647_v25, 0.0  ;;  %v4714_v33 = vmax.f32 %v7711_v57, 0.0 }
 0x45b   : > { %v4719_v23 = vmax.f32 %v7648_v52, 0.0  ;;  %v4721_v3 = vmax.f32 %v7712_v48, 0.0  ;;  %5707 = vmatmul.mubr.bf16.gmra.mrb[8].mxu1 %v11496_v60  ;;  %5868 = vmatmul.mubr.bf16.gmra.mrb[8].mxu0 %v11497_v47 }
 0x45c   : > { %v4720_v7 = vmax.f32 %v7649_v40, 0.0  ;;  %v4722_v5 = vmax.f32 %v7713_v0, 0.0  ;;  %5714 = vmatprep.mubr.bf16.mxu1 %v10643_v51  ;;  %5875 = vmatprep.mubr.bf16.mxu0 %v10645_v42 }
 0x45d   : > { %v10888_v34 = vpack.c.bf16 %v4719_v23, %v4711_v54  ;;  %v10890_v15 = vpack.c.bf16 %v4721_v3, %v4713_v56 }
 0x45e   : > { %v10892_v6 = vpack.c.bf16 %v4720_v7, %v4712_v13  ;;  %v10894_v32 = vpack.c.bf16 %v4722_v5, %v4714_v33  ;;  %v4154_v2 = vpop.f32.mrb[160].mxu1  ;;  %v4540_v35 = vpop.f32.mrb[160].mxu0 }
 0x45f   : > { %v7650_v59 = vadd.f32 %v4154_v2, %v10806_v14  ;;  %v7714_v1 = vadd.f32 %v4540_v35, %v10808_v11  ;;  %v4156_v44 = vpop.f32.mrb[161].mxu1  ;;  %v4542_v29 = vpop.f32.mrb[161].mxu0 }
 0x460   : > { %v7651_v51 = vadd.f32 %v4156_v44, %v10812_v49  ;;  %v7715_v42 = vadd.f32 %v4542_v29, %v10814_v31  ;;  %v4158_v39 = vpop.f32.mrb[162].mxu1  ;;  %v4544_v58 = vpop.f32.mrb[162].mxu0 }
 0x461   : > { %v7652_v63 = vadd.f32 %v4158_v39, %v10806_v14  ;;  %v7716_v61 = vadd.f32 %v4544_v58, %v10808_v11  ;;  %v4160_v9 = vpop.f32.mrb[163].mxu1  ;;  %v4546_v18 = vpop.f32.mrb[163].mxu0  ;;  %v4727_v38 = vmax.f32 %v7650_v59, 0.0  ;;  %v4729_v43 = vmax.f32 %v7714_v1, 0.0 }
 0x462   : > { %v7653_v21 = vadd.f32 %v4160_v9, %v10812_v49  ;;  %v7717_v22 = vadd.f32 %v4546_v18, %v10814_v31  ;;  %v4728_v17 = vmax.f32 %v7651_v51, 0.0  ;;  %v4730_v12 = vmax.f32 %v7715_v42, 0.0 }
 0x463   : > { %v4735_v26 = vmax.f32 %v7652_v63, 0.0  ;;  %v4737_v8 = vmax.f32 %v7716_v61, 0.0  ;;  %5715 = vmatmul.mubr.bf16.gmra.mrb[12].mxu1 %v10639_v41  ;;  %5876 = vmatmul.mubr.bf16.gmra.mrb[12].mxu0 %v10641_v27 }
 0x464   : > { %v4736_v25 = vmax.f32 %v7653_v21, 0.0  ;;  %v4738_v57 = vmax.f32 %v7717_v22, 0.0  ;;  %5916 = vmatprep.mubr.bf16.mxu1 %v10832_v20  ;;  %6077 = vmatprep.mubr.bf16.mxu0 %v10834_v55 }
 0x465   : > { %v10908_v10 = vpack.c.bf16 %v4735_v26, %v4727_v38  ;;  %v10910_v50 = vpack.c.bf16 %v4737_v8, %v4729_v43 }
 0x466   : > { %v10912_v52 = vpack.c.bf16 %v4736_v25, %v4728_v17  ;;  %v10914_v48 = vpack.c.bf16 %v4738_v57, %v4730_v12  ;;  %v4164_v62 = vpop.f32.mrb[164].mxu1  ;;  %v4550_v41 = vpop.f32.mrb[164].mxu0 }
 0x467   : > { %v7654_v27 = vadd.f32 %v4164_v62, %v10806_v14  ;;  %v7718_v45 = vadd.f32 %v4550_v41, %v10808_v11  ;;  %v4166_v40 = vpop.f32.mrb[165].mxu1  ;;  %v4552_v0 = vpop.f32.mrb[165].mxu0 }
 0x468   : > { %v7655_v20 = vadd.f32 %v4166_v40, %v10812_v49  ;;  %v7719_v55 = vadd.f32 %v4552_v0, %v10814_v31  ;;  %v4168_v54 = vpop.f32.mrb[166].mxu1  ;;  %v4554_v56 = vpop.f32.mrb[166].mxu0 }
 0x469   : > { %v7656_v23 = vadd.f32 %v4168_v54, %v10806_v14  ;;  %v7720_v3 = vadd.f32 %v4554_v56, %v10808_v11  ;;  %v4170_v60 = vpop.f32.mrb[167].mxu1  ;;  %v4556_v47 = vpop.f32.mrb[167].mxu0  ;;  %v4743_v7 = vmax.f32 %v7654_v27, 0.0  ;;  %v4745_v5 = vmax.f32 %v7718_v45, 0.0 }
 0x46a   : > { %v7657_v13 = vadd.f32 %v4170_v60, %v10812_v49  ;;  %v7721_v33 = vadd.f32 %v4556_v47, %v10814_v31  ;;  %v4744_v59 = vmax.f32 %v7655_v20, 0.0  ;;  %v4746_v1 = vmax.f32 %v7719_v55, 0.0 }
 0x46b   : > { %v4751_v2 = vmax.f32 %v7656_v23, 0.0  ;;  %v4753_v35 = vmax.f32 %v7720_v3, 0.0  ;;  %5917 = vmatmul.mubr.bf16.vlgmr.msra.gmra.mrb[16].mxu1 %v10828_v37  ;;  %6078 = vmatmul.mubr.bf16.vlgmr.msra.gmra.mrb[16].mxu0 %v10830_v28 }
 0x46c   : > { %v4752_v44 = vmax.f32 %v7657_v13, 0.0  ;;  %v4754_v29 = vmax.f32 %v7721_v33, 0.0  ;;  %5924 = vmatprep.mubr.bf16.mxu1 %v10852_v30  ;;  %6085 = vmatprep.mubr.bf16.mxu0 %v10854_v24 }
 0x46d   : > { %v10928_v51 = vpack.c.bf16 %v4751_v2, %v4743_v7  ;;  %v10930_v42 = vpack.c.bf16 %v4753_v35, %v4745_v5 }
 0x46e   : > { %v10932_v39 = vpack.c.bf16 %v4752_v44, %v4744_v59  ;;  %v10934_v58 = vpack.c.bf16 %v4754_v29, %v4746_v1  ;;  %v4174_v63 = vpop.f32.mrb[168].mxu1  ;;  %v4560_v37 = vpop.f32.mrb[168].mxu0 }
 0x46f   : > { %v7658_v28 = vadd.f32 %v4174_v63, %v10806_v14  ;;  %v7722_v61 = vadd.f32 %v4560_v37, %v10808_v11  ;;  %v4176_v9 = vpop.f32.mrb[169].mxu1  ;;  %v4562_v18 = vpop.f32.mrb[169].mxu0 }
 0x470   : > { %v7659_v30 = vadd.f32 %v4176_v9, %v10812_v49  ;;  %v7723_v24 = vadd.f32 %v4562_v18, %v10814_v31  ;;  %v4178_v21 = vpop.f32.mrb[170].mxu1  ;;  %v4564_v22 = vpop.f32.mrb[170].mxu0 }
 0x471   : > { %v7660_v38 = vadd.f32 %v4178_v21, %v10806_v14  ;;  %v7724_v43 = vadd.f32 %v4564_v22, %v10808_v11  ;;  %v4180_v26 = vpop.f32.mrb[171].mxu1  ;;  %v4566_v8 = vpop.f32.mrb[171].mxu0  ;;  %v4759_v25 = vmax.f32 %v7658_v28, 0.0  ;;  %v4761_v57 = vmax.f32 %v7722_v61, 0.0 }
 0x472   : > { %v7661_v17 = vadd.f32 %v4180_v26, %v10812_v49  ;;  %v7725_v12 = vadd.f32 %v4566_v8, %v10814_v31  ;;  %v4760_v27 = vmax.f32 %v7659_v30, 0.0  ;;  %v4762_v45 = vmax.f32 %v7723_v24, 0.0 }
 0x473   : > { %v4767_v62 = vmax.f32 %v7660_v38, 0.0  ;;  %v4769_v41 = vmax.f32 %v7724_v43, 0.0  ;;  %5925 = vmatmul.mubr.bf16.gmra.mrb[20].mxu1 %v10848_v53  ;;  %6086 = vmatmul.mubr.bf16.gmra.mrb[20].mxu0 %v10850_v36 }
 0x474   : > { %v4768_v40 = vmax.f32 %v7661_v17, 0.0  ;;  %v4770_v0 = vmax.f32 %v7725_v12, 0.0  ;;  %5932 = vmatprep.mubr.bf16.mxu1 %v10872_v46  ;;  %6093 = vmatprep.mubr.bf16.mxu0 %v10874_v16 }
 0x475   : > { %v10948_v20 = vpack.c.bf16 %v4767_v62, %v4759_v25  ;;  %v10950_v55 = vpack.c.bf16 %v4769_v41, %v4761_v57 }
 0x476   : > { %v10952_v54 = vpack.c.bf16 %v4768_v40, %v4760_v27  ;;  %v10954_v56 = vpack.c.bf16 %v4770_v0, %v4762_v45  ;;  %v4184_v23 = vpop.f32.mrb[172].mxu1  ;;  %v4570_v53 = vpop.f32.mrb[172].mxu0 }
 0x477   : > { %v7662_v36 = vadd.f32 %v4184_v23, %v10806_v14  ;;  %v7726_v3 = vadd.f32 %v4570_v53, %v10808_v11  ;;  %v4186_v60 = vpop.f32.mrb[173].mxu1  ;;  %v4572_v47 = vpop.f32.mrb[173].mxu0 }
 0x478   : > { %v7663_v46 = vadd.f32 %v4186_v60, %v10812_v49  ;;  %v7727_v16 = vadd.f32 %v4572_v47, %v10814_v31  ;;  %v4188_v13 = vpop.f32.mrb[174].mxu1  ;;  %v4574_v33 = vpop.f32.mrb[174].mxu0 }
 0x479   : > { %v7664_v7 = vadd.f32 %v4188_v13, %v10806_v14  ;;  %v7728_v5 = vadd.f32 %v4574_v33, %v10808_v11  ;;  %v4190_v2 = vpop.f32.mrb[175].mxu1  ;;  %v4576_v35 = vpop.f32.mrb[175].mxu0  ;;  %v4775_v44 = vmax.f32 %v7662_v36, 0.0  ;;  %v4777_v29 = vmax.f32 %v7726_v3, 0.0 }
 0x47a   : > { %v7665_v59 = vadd.f32 %v4190_v2, %v10812_v49  ;;  %v7729_v1 = vadd.f32 %v4576_v35, %v10814_v31  ;;  %v4776_v28 = vmax.f32 %v7663_v46, 0.0  ;;  %v4778_v61 = vmax.f32 %v7727_v16, 0.0 }
 0x47b   : > { %v4783_v63 = vmax.f32 %v7664_v7, 0.0  ;;  %v4785_v37 = vmax.f32 %v7728_v5, 0.0  ;;  %5933 = vmatmul.mubr.bf16.gmra.mrb[24].mxu1 %v10868_v19  ;;  %6094 = vmatmul.mubr.bf16.gmra.mrb[24].mxu0 %v10870_v4 }
 0x47c   : > { %v4784_v9 = vmax.f32 %v7665_v59, 0.0  ;;  %v4786_v18 = vmax.f32 %v7729_v1, 0.0  ;;  %5940 = vmatprep.mubr.bf16.mxu1 %v10892_v6  ;;  %6101 = vmatprep.mubr.bf16.mxu0 %v10894_v32 }
 0x47d   : > { %v10968_v30 = vpack.c.bf16 %v4783_v63, %v4775_v44  ;;  %v10970_v24 = vpack.c.bf16 %v4785_v37, %v4777_v29 }
 0x47e   : > { %v10972_v21 = vpack.c.bf16 %v4784_v9, %v4776_v28  ;;  %v10974_v22 = vpack.c.bf16 %v4786_v18, %v4778_v61  ;;  %v4194_v38 = vpop.f32.mrb[176].mxu1  ;;  %v4580_v19 = vpop.f32.mrb[176].mxu0 }
 0x47f   : > { %v7666_v4 = vadd.f32 %v4194_v38, %v10806_v14  ;;  %v7730_v43 = vadd.f32 %v4580_v19, %v10808_v11  ;;  %v4196_v26 = vpop.f32.mrb[177].mxu1  ;;  %v4582_v8 = vpop.f32.mrb[177].mxu0 }
 0x480   : > { %v7667_v6 = vadd.f32 %v4196_v26, %v10812_v49  ;;  %v7731_v32 = vadd.f32 %v4582_v8, %v10814_v31  ;;  %v4198_v17 = vpop.f32.mrb[178].mxu1  ;;  %v4584_v12 = vpop.f32.mrb[178].mxu0 }
 0x481   : > { %v7668_v25 = vadd.f32 %v4198_v17, %v10806_v14  ;;  %v7732_v57 = vadd.f32 %v4584_v12, %v10808_v11  ;;  %v4200_v62 = vpop.f32.mrb[179].mxu1  ;;  %v4586_v41 = vpop.f32.mrb[179].mxu0  ;;  %v4791_v40 = vmax.f32 %v7666_v4, 0.0  ;;  %v4793_v0 = vmax.f32 %v7730_v43, 0.0 }
 0x482   : > { %v7669_v27 = vadd.f32 %v4200_v62, %v10812_v49  ;;  %v7733_v45 = vadd.f32 %v4586_v41, %v10814_v31  ;;  %v4792_v36 = vmax.f32 %v7667_v6, 0.0  ;;  %v4794_v3 = vmax.f32 %v7731_v32, 0.0 }
 0x483   : > { %v4799_v23 = vmax.f32 %v7668_v25, 0.0  ;;  %v4801_v53 = vmax.f32 %v7732_v57, 0.0  ;;  %5941 = vmatmul.mubr.bf16.gmra.mrb[28].mxu1 %v10888_v34  ;;  %6102 = vmatmul.mubr.bf16.gmra.mrb[28].mxu0 %v10890_v15 }
 0x484   : > { %v4800_v60 = vmax.f32 %v7669_v27, 0.0  ;;  %v4802_v47 = vmax.f32 %v7733_v45, 0.0  ;;  %5948 = vmatprep.mubr.bf16.mxu1 %v10912_v52  ;;  %6109 = vmatprep.mubr.bf16.mxu0 %v10914_v48 }
 0x485   : > { %v10988_v46 = vpack.c.bf16 %v4799_v23, %v4791_v40  ;;  %v10990_v16 = vpack.c.bf16 %v4801_v53, %v4793_v0 }
 0x486   : > { %v10992_v13 = vpack.c.bf16 %v4800_v60, %v4792_v36  ;;  %v10994_v33 = vpack.c.bf16 %v4802_v47, %v4794_v3  ;;  %v4204_v7 = vpop.f32.mrb[180].mxu1  ;;  %v4590_v34 = vpop.f32.mrb[180].mxu0 }
 0x487   : > { %v7670_v15 = vadd.f32 %v4204_v7, %v10806_v14  ;;  %v7734_v5 = vadd.f32 %v4590_v34, %v10808_v11  ;;  %v4206_v2 = vpop.f32.mrb[181].mxu1  ;;  %v4592_v35 = vpop.f32.mrb[181].mxu0 }
 0x488   : > { %v7671_v52 = vadd.f32 %v4206_v2, %v10812_v49  ;;  %v7735_v48 = vadd.f32 %v4592_v35, %v10814_v31  ;;  %v4208_v59 = vpop.f32.mrb[182].mxu1  ;;  %v4594_v1 = vpop.f32.mrb[182].mxu0 }
 0x489   : > { %v7672_v44 = vadd.f32 %v4208_v59, %v10806_v14  ;;  %v7736_v29 = vadd.f32 %v4594_v1, %v10808_v11  ;;  %v4210_v63 = vpop.f32.mrb[183].mxu1  ;;  %v4596_v37 = vpop.f32.mrb[183].mxu0  ;;  %v4807_v9 = vmax.f32 %v7670_v15, 0.0  ;;  %v4809_v18 = vmax.f32 %v7734_v5, 0.0 }
 0x48a   : > { %v7673_v28 = vadd.f32 %v4210_v63, %v10812_v49  ;;  %v7737_v61 = vadd.f32 %v4596_v37, %v10814_v31  ;;  %v4808_v4 = vmax.f32 %v7671_v52, 0.0  ;;  %v4810_v43 = vmax.f32 %v7735_v48, 0.0 }
 0x48b   : > { %v4815_v38 = vmax.f32 %v7672_v44, 0.0  ;;  %v4817_v19 = vmax.f32 %v7736_v29, 0.0  ;;  %5949 = vmatmul.mubr.bf16.gmra.mrb[32].mxu1 %v10908_v10  ;;  %6110 = vmatmul.mubr.bf16.gmra.mrb[32].mxu0 %v10910_v50 }
 0x48c   : > { %v4816_v26 = vmax.f32 %v7673_v28, 0.0  ;;  %v4818_v8 = vmax.f32 %v7737_v61, 0.0  ;;  %5956 = vmatprep.mubr.bf16.mxu1 %v10932_v39  ;;  %6117 = vmatprep.mubr.bf16.mxu0 %v10934_v58 }
 0x48d   : > { %v11008_v6 = vpack.c.bf16 %v4815_v38, %v4807_v9  ;;  %v11010_v32 = vpack.c.bf16 %v4817_v19, %v4809_v18 }
 0x48e   : > { %v11012_v17 = vpack.c.bf16 %v4816_v26, %v4808_v4  ;;  %v11014_v12 = vpack.c.bf16 %v4818_v8, %v4810_v43  ;;  %v4214_v25 = vpop.f32.mrb[184].mxu1  ;;  %v4600_v10 = vpop.f32.mrb[184].mxu0 }
 0x48f   : > { %v7674_v50 = vadd.f32 %v4214_v25, %v10806_v14  ;;  %v7738_v57 = vadd.f32 %v4600_v10, %v10808_v11  ;;  %v4216_v62 = vpop.f32.mrb[185].mxu1  ;;  %v4602_v41 = vpop.f32.mrb[185].mxu0 }
 0x490   : > { %v7675_v39 = vadd.f32 %v4216_v62, %v10812_v49  ;;  %v7739_v58 = vadd.f32 %v4602_v41, %v10814_v31  ;;  %v4218_v27 = vpop.f32.mrb[186].mxu1  ;;  %v4604_v45 = vpop.f32.mrb[186].mxu0 }
 0x491   : > { %v7676_v40 = vadd.f32 %v4218_v27, %v10806_v14  ;;  %v7740_v0 = vadd.f32 %v4604_v45, %v10808_v11  ;;  %v4220_v23 = vpop.f32.mrb[187].mxu1  ;;  %v4606_v53 = vpop.f32.mrb[187].mxu0  ;;  %v4823_v60 = vmax.f32 %v7674_v50, 0.0  ;;  %v4825_v47 = vmax.f32 %v7738_v57, 0.0 }
 0x492   : > { %v7677_v36 = vadd.f32 %v4220_v23, %v10812_v49  ;;  %v7741_v3 = vadd.f32 %v4606_v53, %v10814_v31  ;;  %v4824_v15 = vmax.f32 %v7675_v39, 0.0  ;;  %v4826_v5 = vmax.f32 %v7739_v58, 0.0 }
 0x493   : > { %v4831_v7 = vmax.f32 %v7676_v40, 0.0  ;;  %v4833_v34 = vmax.f32 %v7740_v0, 0.0  ;;  %5957 = vmatmul.mubr.bf16.gmra.mrb[36].mxu1 %v10928_v51  ;;  %6118 = vmatmul.mubr.bf16.gmra.mrb[36].mxu0 %v10930_v42 }
 0x494   : > { %v4832_v2 = vmax.f32 %v7677_v36, 0.0  ;;  %v4834_v35 = vmax.f32 %v7741_v3, 0.0  ;;  %5964 = vmatprep.mubr.bf16.mxu1 %v10952_v54  ;;  %6125 = vmatprep.mubr.bf16.mxu0 %v10954_v56 }
 0x495   : > { %v11028_v52 = vpack.c.bf16 %v4831_v7, %v4823_v60  ;;  %v11030_v48 = vpack.c.bf16 %v4833_v34, %v4825_v47 }
 0x496   : > { %v11032_v59 = vpack.c.bf16 %v4832_v2, %v4824_v15  ;;  %v11034_v1 = vpack.c.bf16 %v4834_v35, %v4826_v5  ;;  %v4224_v44 = vpop.f32.mrb[188].mxu1  ;;  %v4610_v51 = vpop.f32.mrb[188].mxu0 }
 0x497   : > { %v7678_v42 = vadd.f32 %v4224_v44, %v10806_v14  ;;  %v7742_v29 = vadd.f32 %v4610_v51, %v10808_v11  ;;  %v4226_v63 = vpop.f32.mrb[189].mxu1  ;;  %v4612_v37 = vpop.f32.mrb[189].mxu0 }
 0x498   : > { %v7679_v54 = vadd.f32 %v4226_v63, %v10812_v49  ;;  %v7743_v56 = vadd.f32 %v4612_v37, %v10814_v31  ;;  %v4228_v28 = vpop.f32.mrb[190].mxu1  ;;  %v4614_v61 = vpop.f32.mrb[190].mxu0 }
 0x499   : > { %v7680_v9 = vadd.f32 %v4228_v28, %v10806_v14  ;;  %v7744_v18 = vadd.f32 %v4614_v61, %v10808_v11  ;;  %v4230_v38 = vpop.f32.mrb[191].mxu1  ;;  %v4616_v19 = vpop.f32.mrb[191].mxu0  ;;  %v4839_v26 = vmax.f32 %v7678_v42, 0.0  ;;  %v4841_v8 = vmax.f32 %v7742_v29, 0.0 }
 0x49a   : > { %v7681_v4 = vadd.f32 %v4230_v38, %v10812_v49  ;;  %v7745_v43 = vadd.f32 %v4616_v19, %v10814_v31  ;;  %v4840_v50 = vmax.f32 %v7679_v54, 0.0  ;;  %v4842_v57 = vmax.f32 %v7743_v56, 0.0 }
 0x49b   : > { %v4847_v25 = vmax.f32 %v7680_v9, 0.0  ;;  %v4849_v10 = vmax.f32 %v7744_v18, 0.0  ;;  %5965 = vmatmul.mubr.bf16.gmra.mrb[40].mxu1 %v10948_v20  ;;  %6126 = vmatmul.mubr.bf16.gmra.mrb[40].mxu0 %v10950_v55 }
 0x49c   : > { %v4848_v62 = vmax.f32 %v7681_v4, 0.0  ;;  %v4850_v41 = vmax.f32 %v7745_v43, 0.0  ;;  %5972 = vmatprep.mubr.bf16.mxu1 %v10972_v21  ;;  %6133 = vmatprep.mubr.bf16.mxu0 %v10974_v22 }
 0x49d   : > { %v11048_v39 = vpack.c.bf16 %v4847_v25, %v4839_v26  ;;  %v11050_v58 = vpack.c.bf16 %v4849_v10, %v4841_v8 }
 0x49e   : > { %v11052_v27 = vpack.c.bf16 %v4848_v62, %v4840_v50  ;;  %v11054_v45 = vpack.c.bf16 %v4850_v41, %v4842_v57  ;;  %v4234_v40 = vpop.f32.mrb[192].mxu1  ;;  %v4620_v20 = vpop.f32.mrb[192].mxu0 }
 0x49f   : > { %v7682_v55 = vadd.f32 %v4234_v40, %v10806_v14  ;;  %v7746_v0 = vadd.f32 %v4620_v20, %v10808_v11  ;;  %v4236_v23 = vpop.f32.mrb[193].mxu1  ;;  %v4622_v53 = vpop.f32.mrb[193].mxu0 }
 0x4a0   : > { %v7683_v21 = vadd.f32 %v4236_v23, %v10812_v49  ;;  %v7747_v22 = vadd.f32 %v4622_v53, %v10814_v31  ;;  %v4238_v36 = vpop.f32.mrb[194].mxu1  ;;  %v4624_v3 = vpop.f32.mrb[194].mxu0 }
 0x4a1   : > { %v7684_v60 = vadd.f32 %v4238_v36, %v10806_v14  ;;  %v7748_v47 = vadd.f32 %v4624_v3, %v10808_v11  ;;  %v4240_v7 = vpop.f32.mrb[195].mxu1  ;;  %v4626_v34 = vpop.f32.mrb[195].mxu0  ;;  %v4855_v2 = vmax.f32 %v7682_v55, 0.0  ;;  %v4857_v35 = vmax.f32 %v7746_v0, 0.0 }
 0x4a2   : > { %v7685_v15 = vadd.f32 %v4240_v7, %v10812_v49  ;;  %v7749_v5 = vadd.f32 %v4626_v34, %v10814_v31  ;;  %v4856_v42 = vmax.f32 %v7683_v21, 0.0  ;;  %v4858_v29 = vmax.f32 %v7747_v22, 0.0 }
 0x4a3   : > { %v4863_v44 = vmax.f32 %v7684_v60, 0.0  ;;  %v4865_v51 = vmax.f32 %v7748_v47, 0.0  ;;  %5973 = vmatmul.mubr.bf16.gmra.mrb[44].mxu1 %v10968_v30  ;;  %6134 = vmatmul.mubr.bf16.gmra.mrb[44].mxu0 %v10970_v24 }
 0x4a4   : > { %v4864_v63 = vmax.f32 %v7685_v15, 0.0  ;;  %v4866_v37 = vmax.f32 %v7749_v5, 0.0  ;;  %5980 = vmatprep.mubr.bf16.mxu1 %v10992_v13  ;;  %6141 = vmatprep.mubr.bf16.mxu0 %v10994_v33 }
 0x4a5   : > { %v11068_v54 = vpack.c.bf16 %v4863_v44, %v4855_v2  ;;  %v11070_v56 = vpack.c.bf16 %v4865_v51, %v4857_v35 }
 0x4a6   : > { %v11072_v28 = vpack.c.bf16 %v4864_v63, %v4856_v42  ;;  %v11074_v61 = vpack.c.bf16 %v4866_v37, %v4858_v29  ;;  %v4244_v9 = vpop.f32.mrb[196].mxu1  ;;  %v4630_v30 = vpop.f32.mrb[196].mxu0 }
 0x4a7   : > { %v7686_v24 = vadd.f32 %v4244_v9, %v10806_v14  ;;  %v7750_v18 = vadd.f32 %v4630_v30, %v10808_v11  ;;  %v4246_v38 = vpop.f32.mrb[197].mxu1  ;;  %v4632_v19 = vpop.f32.mrb[197].mxu0 }
 0x4a8   : > { %v7687_v13 = vadd.f32 %v4246_v38, %v10812_v49  ;;  %v7751_v33 = vadd.f32 %v4632_v19, %v10814_v31  ;;  %v4248_v4 = vpop.f32.mrb[198].mxu1  ;;  %v4634_v43 = vpop.f32.mrb[198].mxu0 }
 0x4a9   : > { %v7688_v26 = vadd.f32 %v4248_v4, %v10806_v14  ;;  %v7752_v8 = vadd.f32 %v4634_v43, %v10808_v11  ;;  %v4250_v25 = vpop.f32.mrb[199].mxu1  ;;  %v4636_v10 = vpop.f32.mrb[199].mxu0  ;;  %v4871_v62 = vmax.f32 %v7686_v24, 0.0  ;;  %v4873_v41 = vmax.f32 %v7750_v18, 0.0 }
 0x4aa   : > { %v7689_v50 = vadd.f32 %v4250_v25, %v10812_v49  ;;  %v7753_v57 = vadd.f32 %v4636_v10, %v10814_v31  ;;  %v4872_v55 = vmax.f32 %v7687_v13, 0.0  ;;  %v4874_v0 = vmax.f32 %v7751_v33, 0.0 }
 0x4ab   : > { %v4879_v40 = vmax.f32 %v7688_v26, 0.0  ;;  %v4881_v20 = vmax.f32 %v7752_v8, 0.0  ;;  %5981 = vmatmul.mubr.bf16.gmra.mrb[48].mxu1 %v10988_v46  ;;  %6142 = vmatmul.mubr.bf16.gmra.mrb[48].mxu0 %v10990_v16 }
 0x4ac   : > { %v4880_v23 = vmax.f32 %v7689_v50, 0.0  ;;  %v4882_v53 = vmax.f32 %v7753_v57, 0.0  ;;  %5988 = vmatprep.mubr.bf16.mxu1 %v11012_v17  ;;  %6149 = vmatprep.mubr.bf16.mxu0 %v11014_v12 }
 0x4ad   : > { %v11088_v21 = vpack.c.bf16 %v4879_v40, %v4871_v62  ;;  %v11090_v22 = vpack.c.bf16 %v4881_v20, %v4873_v41 }
 0x4ae   : > { %v11092_v36 = vpack.c.bf16 %v4880_v23, %v4872_v55  ;;  %v11094_v3 = vpack.c.bf16 %v4882_v53, %v4874_v0  ;;  %v4254_v60 = vpop.f32.mrb[200].mxu1  ;;  %v4640_v46 = vpop.f32.mrb[200].mxu0 }
 0x4af   : > { %v7690_v16 = vadd.f32 %v4254_v60, %v10806_v14  ;;  %v7754_v47 = vadd.f32 %v4640_v46, %v10808_v11  ;;  %v4256_v7 = vpop.f32.mrb[201].mxu1  ;;  %v4642_v34 = vpop.f32.mrb[201].mxu0 }
 0x4b0   : > { %v7691_v17 = vadd.f32 %v4256_v7, %v10812_v49  ;;  %v7755_v12 = vadd.f32 %v4642_v34, %v10814_v31  ;;  %v4258_v15 = vpop.f32.mrb[202].mxu1  ;;  %v4644_v5 = vpop.f32.mrb[202].mxu0 }
 0x4b1   : > { %v7692_v2 = vadd.f32 %v4258_v15, %v10806_v14  ;;  %v7756_v35 = vadd.f32 %v4644_v5, %v10808_v11  ;;  %v4260_v44 = vpop.f32.mrb[203].mxu1  ;;  %v4646_v51 = vpop.f32.mrb[203].mxu0  ;;  %v4887_v63 = vmax.f32 %v7690_v16, 0.0  ;;  %v4889_v37 = vmax.f32 %v7754_v47, 0.0 }
 0x4b2   : > { %v7693_v42 = vadd.f32 %v4260_v44, %v10812_v49  ;;  %v7757_v29 = vadd.f32 %v4646_v51, %v10814_v31  ;;  %v4888_v24 = vmax.f32 %v7691_v17, 0.0  ;;  %v4890_v18 = vmax.f32 %v7755_v12, 0.0 }
 0x4b3   : > { %v4895_v9 = vmax.f32 %v7692_v2, 0.0  ;;  %v4897_v30 = vmax.f32 %v7756_v35, 0.0  ;;  %5989 = vmatmul.mubr.bf16.gmra.mrb[52].mxu1 %v11008_v6  ;;  %6150 = vmatmul.mubr.bf16.gmra.mrb[52].mxu0 %v11010_v32 }
 0x4b4   : > { %v4896_v38 = vmax.f32 %v7693_v42, 0.0  ;;  %v4898_v19 = vmax.f32 %v7757_v29, 0.0  ;;  %5996 = vmatprep.mubr.bf16.mxu1 %v11032_v59  ;;  %6157 = vmatprep.mubr.bf16.mxu0 %v11034_v1 }
 0x4b5   : > { %v11108_v13 = vpack.c.bf16 %v4895_v9, %v4887_v63  ;;  %v11110_v33 = vpack.c.bf16 %v4897_v30, %v4889_v37 }
 0x4b6   : > { %v11112_v4 = vpack.c.bf16 %v4896_v38, %v4888_v24  ;;  %v11114_v43 = vpack.c.bf16 %v4898_v19, %v4890_v18  ;;  %v4264_v26 = vpop.f32.mrb[204].mxu1  ;;  %v4650_v6 = vpop.f32.mrb[204].mxu0 }
 0x4b7   : > { %v7694_v32 = vadd.f32 %v4264_v26, %v10806_v14  ;;  %v7758_v8 = vadd.f32 %v4650_v6, %v10808_v11  ;;  %v4266_v25 = vpop.f32.mrb[205].mxu1  ;;  %v4652_v10 = vpop.f32.mrb[205].mxu0 }
 0x4b8   : > { %v7695_v59 = vadd.f32 %v4266_v25, %v10812_v49  ;;  %v7759_v1 = vadd.f32 %v4652_v10, %v10814_v31  ;;  %v4268_v50 = vpop.f32.mrb[206].mxu1  ;;  %v4654_v57 = vpop.f32.mrb[206].mxu0 }
 0x4b9   : > { %v7696_v62 = vadd.f32 %v4268_v50, %v10806_v14  ;;  %v7760_v41 = vadd.f32 %v4654_v57, %v10808_v11  ;;  %v4270_v40 = vpop.f32.mrb[207].mxu1  ;;  %v4656_v20 = vpop.f32.mrb[207].mxu0  ;;  %v4903_v23 = vmax.f32 %v7694_v32, 0.0  ;;  %v4905_v53 = vmax.f32 %v7758_v8, 0.0 }
 0x4ba   : > { %v7697_v55 = vadd.f32 %v4270_v40, %v10812_v49  ;;  %v7761_v0 = vadd.f32 %v4656_v20, %v10814_v31  ;;  %v4904_v16 = vmax.f32 %v7695_v59, 0.0  ;;  %v4906_v47 = vmax.f32 %v7759_v1, 0.0 }
 0x4bb   : > { %v4911_v60 = vmax.f32 %v7696_v62, 0.0  ;;  %v4913_v46 = vmax.f32 %v7760_v41, 0.0  ;;  %5997 = vmatmul.mubr.bf16.gmra.mrb[56].mxu1 %v11028_v52  ;;  %6158 = vmatmul.mubr.bf16.gmra.mrb[56].mxu0 %v11030_v48  ;;  %v11139_v48 = vld [vmem:[%s11321_s8] ss:$0 sm:$0xff] }
 0x4bc   : > { %v4912_v7 = vmax.f32 %v7697_v55, 0.0  ;;  %v4914_v14 = vmax.f32 %v7761_v0, 0.0  ;;  %6004 = vmatprep.mubr.bf16.mxu1 %v11052_v27  ;;  %6165 = vmatprep.mubr.bf16.mxu0 %v11054_v45 }
 0x4bd   : > { %v11128_v11 = vpack.c.bf16 %v4911_v60, %v4903_v23  ;;  %v11130_v49 = vpack.c.bf16 %v4913_v46, %v4905_v53 }
 0x4be   : > { %v11132_v31 = vpack.c.bf16 %v4912_v7, %v4904_v16  ;;  %v11134_v34 = vpack.c.bf16 %v4914_v14, %v4906_v47  ;;  %v7010_v17 = vpop.f32.mrb[208].mxu1  ;;  %v7122_v52 = vpop.f32.mrb[208].mxu0 }
 0x4bf   : > { %v7011_v12 = vpop.f32.mrb[209].mxu1  ;;  %v7123_v15 = vpop.f32.mrb[209].mxu0 }
 0x4c0   : > { %v7012_v27 = vadd.f32 %v7011_v12, %v7010_v17  ;;  %v7124_v5 = vadd.f32 %v7123_v15, %v7122_v52  ;;  %v7013_v45 = vpop.f32.mrb[210].mxu1  ;;  %v7125_v2 = vpop.f32.mrb[210].mxu0 }
 0x4c1   : > { %v7014_v35 = vpop.f32.mrb[211].mxu1  ;;  %v7126_v44 = vpop.f32.mrb[211].mxu0 }
 0x4c2   : > { %v5597_v51 = vadd.f32 %v7012_v27, %v11139_v48  ;;  %v7015_v42 = vadd.f32 %v7014_v35, %v7013_v45  ;;  %v7127_v29 = vadd.f32 %v7126_v44, %v7125_v2 }
 0x4c3   : > { %6005 = vmatmul.mubr.bf16.gmra.mrb[60].mxu1 %v11048_v39  ;;  %6166 = vmatmul.mubr.bf16.gmra.mrb[60].mxu0 %v11050_v58 }
 0x4c4   : > { %v11144_v63 = vadd.f32 %v7124_v5, %v5597_v51  ;;  %v5600_v37 = vadd.f32 %v7015_v42, %v11139_v48  ;;  %6012 = vmatprep.mubr.bf16.mxu1 %v11072_v28  ;;  %6173 = vmatprep.mubr.bf16.mxu0 %v11074_v61 }
 0x4c6   : > { %v11149_v9 = vadd.f32 %v7127_v29, %v5600_v37  ;;  %v7016_v30 = vpop.f32.mrb[212].mxu1  ;;  %v7128_v24 = vpop.f32.mrb[212].mxu0 }
 0x4c7   : > { %v7017_v18 = vpop.f32.mrb[213].mxu1  ;;  %v7129_v38 = vpop.f32.mrb[213].mxu0 }
 0x4c8   : > { %v7018_v19 = vadd.f32 %v7017_v18, %v7016_v30  ;;  %v7130_v26 = vadd.f32 %v7129_v38, %v7128_v24  ;;  %v7019_v6 = vpop.f32.mrb[214].mxu1  ;;  %v7131_v39 = vpop.f32.mrb[214].mxu0 }
 0x4c9   : > { %v7020_v32 = vpop.f32.mrb[215].mxu1  ;;  %v7132_v58 = vpop.f32.mrb[215].mxu0 }
 0x4ca   : > { %v5605_v8 = vadd.f32 %v7018_v19, %v11139_v48  ;;  %v7021_v25 = vadd.f32 %v7020_v32, %v7019_v6  ;;  %v7133_v10 = vadd.f32 %v7132_v58, %v7131_v39 }
 0x4cb   : > { %6013 = vmatmul.mubr.bf16.gmra.mrb[64].mxu1 %v11068_v54  ;;  %6174 = vmatmul.mubr.bf16.gmra.mrb[64].mxu0 %v11070_v56 }
 0x4cc   : > { %v11154_v28 = vadd.f32 %v7130_v26, %v5605_v8  ;;  %v5608_v61 = vadd.f32 %v7021_v25, %v11139_v48  ;;  %6020 = vmatprep.mubr.bf16.mxu1 %v11092_v36  ;;  %6181 = vmatprep.mubr.bf16.mxu0 %v11094_v3 }
 0x4ce   : > { %v11159_v59 = vadd.f32 %v7133_v10, %v5608_v61  ;;  %v7022_v1 = vpop.f32.mrb[216].mxu1  ;;  %v7134_v50 = vpop.f32.mrb[216].mxu0 }
 0x4cf   : > { %v7023_v57 = vpop.f32.mrb[217].mxu1  ;;  %v7135_v62 = vpop.f32.mrb[217].mxu0 }
 0x4d0   : > { %v7024_v41 = vadd.f32 %v7023_v57, %v7022_v1  ;;  %v7136_v40 = vadd.f32 %v7135_v62, %v7134_v50  ;;  %v7025_v20 = vpop.f32.mrb[218].mxu1  ;;  %v7137_v54 = vpop.f32.mrb[218].mxu0 }
 0x4d1   : > { %v7026_v55 = vpop.f32.mrb[219].mxu1  ;;  %v7138_v56 = vpop.f32.mrb[219].mxu0 }
 0x4d2   : > { %v5613_v0 = vadd.f32 %v7024_v41, %v11139_v48  ;;  %v7027_v23 = vadd.f32 %v7026_v55, %v7025_v20  ;;  %v7139_v53 = vadd.f32 %v7138_v56, %v7137_v54 }
 0x4d3   : > { %6021 = vmatmul.mubr.bf16.gmra.mrb[68].mxu1 %v11088_v21  ;;  %6182 = vmatmul.mubr.bf16.gmra.mrb[68].mxu0 %v11090_v22 }
 0x4d4   : > { %v11164_v36 = vadd.f32 %v7136_v40, %v5613_v0  ;;  %v5616_v3 = vadd.f32 %v7027_v23, %v11139_v48  ;;  %6028 = vmatprep.mubr.bf16.mxu1 %v11112_v4  ;;  %6189 = vmatprep.mubr.bf16.mxu0 %v11114_v43 }
 0x4d6   : > { %v11169_v60 = vadd.f32 %v7139_v53, %v5616_v3  ;;  %v7028_v46 = vpop.f32.mrb[220].mxu1  ;;  %v7140_v16 = vpop.f32.mrb[220].mxu0 }
 0x4d7   : > { %v7029_v47 = vpop.f32.mrb[221].mxu1  ;;  %v7141_v7 = vpop.f32.mrb[221].mxu0 }
 0x4d8   : > { %v7030_v14 = vadd.f32 %v7029_v47, %v7028_v46  ;;  %v7142_v17 = vadd.f32 %v7141_v7, %v7140_v16  ;;  %v7031_v52 = vpop.f32.mrb[222].mxu1  ;;  %v7143_v21 = vpop.f32.mrb[222].mxu0 }
 0x4d9   : > { %v7032_v12 = vpop.f32.mrb[223].mxu1  ;;  %v7144_v22 = vpop.f32.mrb[223].mxu0 }
 0x4da   : > { %v5621_v15 = vadd.f32 %v7030_v14, %v11139_v48  ;;  %v7033_v27 = vadd.f32 %v7032_v12, %v7031_v52  ;;  %v7145_v5 = vadd.f32 %v7144_v22, %v7143_v21 }
 0x4db   : > { %6029 = vmatmul.mubr.bf16.gmra.mrb[72].mxu1 %v11108_v13  ;;  %6190 = vmatmul.mubr.bf16.gmra.mrb[72].mxu0 %v11110_v33 }
 0x4dc   : > { %v11174_v4 = vadd.f32 %v7142_v17, %v5621_v15  ;;  %v5624_v43 = vadd.f32 %v7033_v27, %v11139_v48  ;;  %6036 = vmatprep.mubr.bf16.mxu1 %v11132_v31  ;;  %6197 = vmatprep.mubr.bf16.mxu0 %v11134_v34 }
 0x4de   : > { %v11179_v45 = vadd.f32 %v7145_v5, %v5624_v43  ;;  %v7034_v2 = vpop.f32.mrb[224].mxu1  ;;  %v7146_v35 = vpop.f32.mrb[224].mxu0 }
 0x4df   : > { %v7035_v44 = vpop.f32.mrb[225].mxu1  ;;  %v7147_v51 = vpop.f32.mrb[225].mxu0 }
 0x4e0   : > { %v7036_v42 = vadd.f32 %v7035_v44, %v7034_v2  ;;  %v7148_v29 = vadd.f32 %v7147_v51, %v7146_v35  ;;  %v7037_v37 = vpop.f32.mrb[226].mxu1  ;;  %v7149_v13 = vpop.f32.mrb[226].mxu0 }
 0x4e1   : > { %v7038_v30 = vpop.f32.mrb[227].mxu1  ;;  %v7150_v33 = vpop.f32.mrb[227].mxu0 }
 0x4e2   : > { %v5629_v24 = vadd.f32 %v7036_v42, %v11139_v48  ;;  %v7039_v18 = vadd.f32 %v7038_v30, %v7037_v37  ;;  %v7151_v38 = vadd.f32 %v7150_v33, %v7149_v13 }
 0x4e3   : > { %6037 = vmatmul.mubr.bf16.gmra.mrb[76].mxu1 %v11128_v11  ;;  %6198 = vmatmul.mubr.bf16.gmra.mrb[76].mxu0 %v11130_v49 }
 0x4e4   : > { %v11184_v31 = vadd.f32 %v7148_v29, %v5629_v24  ;;  %v5632_v34 = vadd.f32 %v7039_v18, %v11139_v48 }
 0x4e6   : > { %v11187_v19 = vadd.f32 %v7151_v38, %v5632_v34  ;;  %v7040_v26 = vpop.f32.mrb[228].mxu1  ;;  %v7152_v6 = vpop.f32.mrb[228].mxu0 }
 0x4e7   : > { %v7041_v39 = vpop.f32.mrb[229].mxu1  ;;  %v7153_v32 = vpop.f32.mrb[229].mxu0 }
 0x4e8   : > { %v7042_v58 = vadd.f32 %v7041_v39, %v7040_v26  ;;  %v7154_v8 = vadd.f32 %v7153_v32, %v7152_v6  ;;  %v7043_v25 = vpop.f32.mrb[230].mxu1  ;;  %v7155_v10 = vpop.f32.mrb[230].mxu0 }
 0x4e9   : > { %v7044_v61 = vpop.f32.mrb[231].mxu1  ;;  %v7156_v1 = vpop.f32.mrb[231].mxu0 }
 0x4ea   : > { %v5637_v11 = vadd.f32 %v7042_v58, %v11139_v48  ;;  %v7045_v50 = vadd.f32 %v7044_v61, %v7043_v25  ;;  %v7157_v49 = vadd.f32 %v7156_v1, %v7155_v10 }
 0x4ec   : > { %v11190_v57 = vadd.f32 %v7154_v8, %v5637_v11  ;;  %v5640_v62 = vadd.f32 %v7045_v50, %v11139_v48 }
 0x4ee   : > { %v11193_v41 = vadd.f32 %v7157_v49, %v5640_v62  ;;  %v7046_v40 = vpop.f32.mrb[232].mxu1  ;;  %v7158_v20 = vpop.f32.mrb[232].mxu0 }
 0x4ef   : > { %v7047_v54 = vpop.f32.mrb[233].mxu1  ;;  %v7159_v55 = vpop.f32.mrb[233].mxu0 }
 0x4f0   : > { %v7048_v56 = vadd.f32 %v7047_v54, %v7046_v40  ;;  %v7160_v0 = vadd.f32 %v7159_v55, %v7158_v20  ;;  %v7049_v23 = vpop.f32.mrb[234].mxu1  ;;  %v7161_v53 = vpop.f32.mrb[234].mxu0 }
 0x4f1   : > { %v7050_v3 = vpop.f32.mrb[235].mxu1  ;;  %v7162_v46 = vpop.f32.mrb[235].mxu0 }
 0x4f2   : > { %v5645_v16 = vadd.f32 %v7048_v56, %v11139_v48  ;;  %v7051_v47 = vadd.f32 %v7050_v3, %v7049_v23  ;;  %v7163_v7 = vadd.f32 %v7162_v46, %v7161_v53 }
 0x4f4   : > { %v11196_v14 = vadd.f32 %v7160_v0, %v5645_v16  ;;  %v5648_v17 = vadd.f32 %v7051_v47, %v11139_v48 }
 0x4f6   : > { %v11199_v52 = vadd.f32 %v7163_v7, %v5648_v17  ;;  %v7052_v21 = vpop.f32.mrb[236].mxu1  ;;  %v7164_v12 = vpop.f32.mrb[236].mxu0 }
 0x4f7   : > { %v7053_v22 = vpop.f32.mrb[237].mxu1  ;;  %v7165_v15 = vpop.f32.mrb[237].mxu0 }
 0x4f8   : > { %v7054_v27 = vadd.f32 %v7053_v22, %v7052_v21  ;;  %v7166_v5 = vadd.f32 %v7165_v15, %v7164_v12  ;;  %v7055_v43 = vpop.f32.mrb[238].mxu1  ;;  %v7167_v2 = vpop.f32.mrb[238].mxu0 }
 0x4f9   : > { %v7056_v35 = vpop.f32.mrb[239].mxu1  ;;  %v7168_v44 = vpop.f32.mrb[239].mxu0 }
 0x4fa   : > { %v5653_v51 = vadd.f32 %v7054_v27, %v11139_v48  ;;  %v7057_v42 = vadd.f32 %v7056_v35, %v7055_v43  ;;  %v7169_v29 = vadd.f32 %v7168_v44, %v7167_v2 }
 0x4fc   : > { %v11202_v37 = vadd.f32 %v7166_v5, %v5653_v51  ;;  %v5656_v13 = vadd.f32 %v7057_v42, %v11139_v48 }
 0x4fe   : > { %v11205_v30 = vadd.f32 %v7169_v29, %v5656_v13  ;;  %v7058_v33 = vpop.f32.mrb[240].mxu1  ;;  %v7170_v24 = vpop.f32.mrb[240].mxu0 }
 0x4ff   : > { %v7059_v18 = vpop.f32.mrb[241].mxu1  ;;  %v7171_v38 = vpop.f32.mrb[241].mxu0 }
 0x500   : > { %v7060_v34 = vadd.f32 %v7059_v18, %v7058_v33  ;;  %v7172_v26 = vadd.f32 %v7171_v38, %v7170_v24  ;;  %v7061_v6 = vpop.f32.mrb[242].mxu1  ;;  %v7173_v39 = vpop.f32.mrb[242].mxu0 }
 0x501   : > { %v7062_v32 = vpop.f32.mrb[243].mxu1  ;;  %v7174_v58 = vpop.f32.mrb[243].mxu0 }
 0x502   : > { %v5661_v8 = vadd.f32 %v7060_v34, %v11139_v48  ;;  %v7063_v25 = vadd.f32 %v7062_v32, %v7061_v6  ;;  %v7175_v10 = vadd.f32 %v7174_v58, %v7173_v39 }
 0x504   : > { %v11208_v61 = vadd.f32 %v7172_v26, %v5661_v8  ;;  %v5664_v1 = vadd.f32 %v7063_v25, %v11139_v48 }
 0x506   : > { %v11211_v11 = vadd.f32 %v7175_v10, %v5664_v1  ;;  %v7064_v50 = vpop.f32.mrb[244].mxu1  ;;  %v7176_v49 = vpop.f32.mrb[244].mxu0 }
 0x507   : > { %v7065_v62 = vpop.f32.mrb[245].mxu1  ;;  %v7177_v40 = vpop.f32.mrb[245].mxu0 }
 0x508   : > { %v7066_v20 = vadd.f32 %v7065_v62, %v7064_v50  ;;  %v7178_v54 = vadd.f32 %v7177_v40, %v7176_v49  ;;  %v7067_v55 = vpop.f32.mrb[246].mxu1  ;;  %v7179_v56 = vpop.f32.mrb[246].mxu0 }
 0x509   : > { %v7068_v0 = vpop.f32.mrb[247].mxu1  ;;  %v7180_v23 = vpop.f32.mrb[247].mxu0 }
 0x50a   : > { %v5669_v53 = vadd.f32 %v7066_v20, %v11139_v48  ;;  %v7069_v3 = vadd.f32 %v7068_v0, %v7067_v55  ;;  %v7181_v46 = vadd.f32 %v7180_v23, %v7179_v56 }
 0x50c   : > { %v11214_v16 = vadd.f32 %v7178_v54, %v5669_v53  ;;  %v5672_v47 = vadd.f32 %v7069_v3, %v11139_v48 }
 0x50e   : > { %v11217_v7 = vadd.f32 %v7181_v46, %v5672_v47  ;;  %v7070_v17 = vpop.f32.mrb[248].mxu1  ;;  %v7182_v21 = vpop.f32.mrb[248].mxu0 }
 0x50f   : > { %v7071_v12 = vpop.f32.mrb[249].mxu1  ;;  %v7183_v22 = vpop.f32.mrb[249].mxu0 }
 0x510   : > { %v7072_v15 = vadd.f32 %v7071_v12, %v7070_v17  ;;  %v7184_v27 = vadd.f32 %v7183_v22, %v7182_v21  ;;  %v7073_v5 = vpop.f32.mrb[250].mxu1  ;;  %v7185_v43 = vpop.f32.mrb[250].mxu0 }
 0x511   : > { %v7074_v2 = vpop.f32.mrb[251].mxu1  ;;  %v7186_v35 = vpop.f32.mrb[251].mxu0 }
 0x512   : > { %v5677_v44 = vadd.f32 %v7072_v15, %v11139_v48  ;;  %v7075_v51 = vadd.f32 %v7074_v2, %v7073_v5  ;;  %v7187_v42 = vadd.f32 %v7186_v35, %v7185_v43 }
 0x514   : > { %v11220_v29 = vadd.f32 %v7184_v27, %v5677_v44  ;;  %v5680_v13 = vadd.f32 %v7075_v51, %v11139_v48 }
 0x516   : > { %v11223_v33 = vadd.f32 %v7187_v42, %v5680_v13  ;;  %v7076_v24 = vpop.f32.mrb[252].mxu1  ;;  %v7188_v18 = vpop.f32.mrb[252].mxu0 }
 0x517   : > { %v7077_v38 = vpop.f32.mrb[253].mxu1  ;;  %v7189_v34 = vpop.f32.mrb[253].mxu0 }
 0x518   : > { %v7078_v26 = vadd.f32 %v7077_v38, %v7076_v24  ;;  %v7190_v6 = vadd.f32 %v7189_v34, %v7188_v18  ;;  %v7079_v39 = vpop.f32.mrb[254].mxu1  ;;  %v7191_v32 = vpop.f32.mrb[254].mxu0 }
 0x519   : > { %v7080_v58 = vpop.f32.mrb[255].mxu1  ;;  %v7192_v8 = vpop.f32.mrb[255].mxu0 }
 0x51a   : > { %v5685_v25 = vadd.f32 %v7078_v26, %v11139_v48  ;;  %v7081_v10 = vadd.f32 %v7080_v58, %v7079_v39  ;;  %v7193_v1 = vadd.f32 %v7192_v8, %v7191_v32 }
 0x51c   : > { %v11226_v50 = vadd.f32 %v7190_v6, %v5685_v25  ;;  %v5688_v49 = vadd.f32 %v7081_v10, %v11139_v48 }
 0x51e   : > { %v11229_v62 = vadd.f32 %v7193_v1, %v5688_v49  ;;  %v7082_v40 = vpop.f32.mrb[0].mxu1  ;;  %v7194_v20 = vpop.f32.mrb[0].mxu0 }
 0x51f   : > { %v7083_v54 = vpop.f32.mrb[1].mxu1  ;;  %v7195_v55 = vpop.f32.mrb[1].mxu0 }
 0x520   : > { %v7084_v56 = vadd.f32 %v7083_v54, %v7082_v40  ;;  %v7196_v0 = vadd.f32 %v7195_v55, %v7194_v20  ;;  %v7085_v23 = vpop.f32.mrb[2].mxu1  ;;  %v7197_v53 = vpop.f32.mrb[2].mxu0 }
 0x521   : > { %v7086_v3 = vpop.f32.mrb[3].mxu1  ;;  %v7198_v46 = vpop.f32.mrb[3].mxu0 }
 0x522   : > { %v5693_v47 = vadd.f32 %v7084_v56, %v11139_v48  ;;  %v7087_v17 = vadd.f32 %v7086_v3, %v7085_v23  ;;  %v7199_v21 = vadd.f32 %v7198_v46, %v7197_v53 }
 0x524   : > { %v11232_v12 = vadd.f32 %v7196_v0, %v5693_v47  ;;  %v5696_v22 = vadd.f32 %v7087_v17, %v11139_v48 }
 0x526   : > { %v11235_v15 = vadd.f32 %v7199_v21, %v5696_v22  ;;  %v7088_v27 = vpop.f32.mrb[4].mxu1  ;;  %v7200_v5 = vpop.f32.mrb[4].mxu0 }
 0x527   : > { %v7089_v43 = vpop.f32.mrb[5].mxu1  ;;  %v7201_v2 = vpop.f32.mrb[5].mxu0 }
 0x528   : > { %v7090_v35 = vadd.f32 %v7089_v43, %v7088_v27  ;;  %v7202_v44 = vadd.f32 %v7201_v2, %v7200_v5  ;;  %v7091_v51 = vpop.f32.mrb[6].mxu1  ;;  %v7203_v42 = vpop.f32.mrb[6].mxu0 }
 0x529   : > { %v7092_v13 = vpop.f32.mrb[7].mxu1  ;;  %v7204_v24 = vpop.f32.mrb[7].mxu0 }
 0x52a   : > { %v5701_v18 = vadd.f32 %v7090_v35, %v11139_v48  ;;  %v7093_v38 = vadd.f32 %v7092_v13, %v7091_v51  ;;  %v7205_v34 = vadd.f32 %v7204_v24, %v7203_v42 }
 0x52c   : > { %v11238_v26 = vadd.f32 %v7202_v44, %v5701_v18  ;;  %v5704_v6 = vadd.f32 %v7093_v38, %v11139_v48 }
 0x52e   : > { %v11241_v39 = vadd.f32 %v7205_v34, %v5704_v6  ;;  %v7094_v32 = vpop.f32.mrb[8].mxu1  ;;  %v7206_v58 = vpop.f32.mrb[8].mxu0 }
 0x52f   : > { %v7095_v8 = vpop.f32.mrb[9].mxu1  ;;  %v7207_v25 = vpop.f32.mrb[9].mxu0 }
 0x530   : > { %v7096_v10 = vadd.f32 %v7095_v8, %v7094_v32  ;;  %v7208_v1 = vadd.f32 %v7207_v25, %v7206_v58  ;;  %v7097_v49 = vpop.f32.mrb[10].mxu1  ;;  %v7209_v40 = vpop.f32.mrb[10].mxu0 }
 0x531   : > { %v7098_v20 = vpop.f32.mrb[11].mxu1  ;;  %v7210_v54 = vpop.f32.mrb[11].mxu0 }
 0x532   : > { %v5709_v55 = vadd.f32 %v7096_v10, %v11139_v48  ;;  %v7099_v56 = vadd.f32 %v7098_v20, %v7097_v49  ;;  %v7211_v0 = vadd.f32 %v7210_v54, %v7209_v40 }
 0x534   : > { %v11244_v23 = vadd.f32 %v7208_v1, %v5709_v55  ;;  %v5712_v53 = vadd.f32 %v7099_v56, %v11139_v48 }
 0x536   : > { %v11247_v3 = vadd.f32 %v7211_v0, %v5712_v53  ;;  %v7100_v46 = vpop.f32.mrb[12].mxu1  ;;  %v7212_v47 = vpop.f32.mrb[12].mxu0 }
 0x537   : > { %v7101_v17 = vpop.f32.mrb[13].mxu1  ;;  %v7213_v21 = vpop.f32.mrb[13].mxu0 }
 0x538   : > { %v7102_v22 = vadd.f32 %v7101_v17, %v7100_v46  ;;  %v7214_v27 = vadd.f32 %v7213_v21, %v7212_v47  ;;  %v7103_v5 = vpop.f32.mrb[14].mxu1  ;;  %v7215_v43 = vpop.f32.mrb[14].mxu0 }
 0x539   : > { %v7104_v2 = vpop.f32.mrb[15].mxu1  ;;  %v7216_v35 = vpop.f32.mrb[15].mxu0 }
 0x53a   : > { %v5717_v44 = vadd.f32 %v7102_v22, %v11139_v48  ;;  %v7105_v51 = vadd.f32 %v7104_v2, %v7103_v5  ;;  %v7217_v42 = vadd.f32 %v7216_v35, %v7215_v43 }
 0x53c   : > { %v11250_v13 = vadd.f32 %v7214_v27, %v5717_v44  ;;  %v5720_v24 = vadd.f32 %v7105_v51, %v11139_v48 }
 0x53e   : > { %v11253_v18 = vadd.f32 %v7217_v42, %v5720_v24  ;;  %v7234_v38 = vpop.f32.mrb[16].mxu1  ;;  %v7346_v34 = vpop.f32.mrb[16].mxu0 }
 0x53f   : > { %v7235_v6 = vpop.f32.mrb[17].mxu1  ;;  %v7347_v32 = vpop.f32.mrb[17].mxu0 }
 0x540   : > { %v7236_v58 = vadd.f32 %v7235_v6, %v7234_v38  ;;  %v7348_v8 = vadd.f32 %v7347_v32, %v7346_v34  ;;  %v7237_v25 = vpop.f32.mrb[18].mxu1  ;;  %v7349_v10 = vpop.f32.mrb[18].mxu0 }
 0x541   : > { %v7238_v1 = vpop.f32.mrb[19].mxu1  ;;  %v7350_v49 = vpop.f32.mrb[19].mxu0 }
 0x542   : > { %v5919_v40 = vadd.f32 %v7236_v58, %v11144_v63  ;;  %v7239_v20 = vadd.f32 %v7238_v1, %v7237_v25  ;;  %v7351_v54 = vadd.f32 %v7350_v49, %v7349_v10 }
 0x544   : > { %v6080_v55 = vadd.f32 %v7348_v8, %v5919_v40  ;;  %v5922_v48 = vadd.f32 %v7239_v20, %v11149_v9 }
 0x546   : > { %v6083_v56 = vadd.f32 %v7351_v54, %v5922_v48  ;;  %v7240_v0 = vpop.f32.mrb[20].mxu1  ;;  %v7352_v53 = vpop.f32.mrb[20].mxu0 }
 0x547   : > { %v7241_v46 = vpop.f32.mrb[21].mxu1  ;;  %v7353_v47 = vpop.f32.mrb[21].mxu0 }
 0x548   : > { %v6878_v17 = vpack.c.bf16 %v6083_v56, %v6080_v55  ;;  %v7242_v21 = vadd.f32 %v7241_v46, %v7240_v0  ;;  %v7354_v63 = vadd.f32 %v7353_v47, %v7352_v53  ;;  %v7243_v22 = vpop.f32.mrb[22].mxu1  ;;  %v7355_v27 = vpop.f32.mrb[22].mxu0 }
 0x549   : > { %v7244_v5 = vpop.f32.mrb[23].mxu1  ;;  %v7356_v43 = vpop.f32.mrb[23].mxu0 }
 0x54a   : > { %6879 = vst [vmem:[%s11262_s11] sm:$0xff] %v6878_v17   ;;  %v5927_v9 = vadd.f32 %v7242_v21, %v11154_v28  ;;  %v7245_v2 = vadd.f32 %v7244_v5, %v7243_v22  ;;  %v7357_v35 = vadd.f32 %v7356_v43, %v7355_v27 }
 0x54c   : > { %v6088_v44 = vadd.f32 %v7354_v63, %v5927_v9  ;;  %v5930_v51 = vadd.f32 %v7245_v2, %v11159_v59 }
 0x54e   : > { %v6091_v42 = vadd.f32 %v7357_v35, %v5930_v51  ;;  %v7246_v24 = vpop.f32.mrb[24].mxu1  ;;  %v7358_v38 = vpop.f32.mrb[24].mxu0 }
 0x54f   : > { %v7247_v34 = vpop.f32.mrb[25].mxu1  ;;  %v7359_v6 = vpop.f32.mrb[25].mxu0 }
 0x550   : > { %v6883_v32 = vpack.c.bf16 %v6091_v42, %v6088_v44  ;;  %v7248_v58 = vadd.f32 %v7247_v34, %v7246_v24  ;;  %v7360_v8 = vadd.f32 %v7359_v6, %v7358_v38  ;;  %v7249_v25 = vpop.f32.mrb[26].mxu1  ;;  %v7361_v10 = vpop.f32.mrb[26].mxu0 }
 0x551   : > { %v7250_v1 = vpop.f32.mrb[27].mxu1  ;;  %v7362_v49 = vpop.f32.mrb[27].mxu0 }
 0x552   : > { %6955 = vst [vmem:[%s11262_s11 + $0x8] sm:$0xff] %v6883_v32   ;;  %v5935_v28 = vadd.f32 %v7248_v58, %v11164_v36  ;;  %v7251_v40 = vadd.f32 %v7250_v1, %v7249_v25  ;;  %v7363_v20 = vadd.f32 %v7362_v49, %v7361_v10 }
 0x554   : > { %v6096_v54 = vadd.f32 %v7360_v8, %v5935_v28  ;;  %v5938_v59 = vadd.f32 %v7251_v40, %v11169_v60 }
 0x556   : > { %v6099_v55 = vadd.f32 %v7363_v20, %v5938_v59  ;;  %v7252_v48 = vpop.f32.mrb[28].mxu1  ;;  %v7364_v56 = vpop.f32.mrb[28].mxu0 }
 0x557   : > { %v7253_v0 = vpop.f32.mrb[29].mxu1  ;;  %v7365_v53 = vpop.f32.mrb[29].mxu0 }
 0x558   : > { %v6888_v46 = vpack.c.bf16 %v6099_v55, %v6096_v54  ;;  %v7254_v47 = vadd.f32 %v7253_v0, %v7252_v48  ;;  %v7366_v17 = vadd.f32 %v7365_v53, %v7364_v56  ;;  %v7255_v21 = vpop.f32.mrb[30].mxu1  ;;  %v7367_v63 = vpop.f32.mrb[30].mxu0 }
 0x559   : > { %v7256_v22 = vpop.f32.mrb[31].mxu1  ;;  %v7368_v27 = vpop.f32.mrb[31].mxu0 }
 0x55a   : > { %6956 = vst [vmem:[%s11262_s11 + $0x10] sm:$0xff] %v6888_v46   ;;  %v5943_v36 = vadd.f32 %v7254_v47, %v11174_v4  ;;  %v7257_v5 = vadd.f32 %v7256_v22, %v7255_v21  ;;  %v7369_v43 = vadd.f32 %v7368_v27, %v7367_v63 }
 0x55c   : > { %v6104_v9 = vadd.f32 %v7366_v17, %v5943_v36  ;;  %v5946_v60 = vadd.f32 %v7257_v5, %v11179_v45 }
 0x55e   : > { %v6107_v2 = vadd.f32 %v7369_v43, %v5946_v60  ;;  %v7258_v35 = vpop.f32.mrb[32].mxu1  ;;  %v7370_v44 = vpop.f32.mrb[32].mxu0 }
 0x55f   : > { %v7259_v51 = vpop.f32.mrb[33].mxu1  ;;  %v7371_v42 = vpop.f32.mrb[33].mxu0 }
 0x560   : > { %v6893_v24 = vpack.c.bf16 %v6107_v2, %v6104_v9  ;;  %v7260_v38 = vadd.f32 %v7259_v51, %v7258_v35  ;;  %v7372_v34 = vadd.f32 %v7371_v42, %v7370_v44  ;;  %v7261_v6 = vpop.f32.mrb[34].mxu1  ;;  %v7373_v32 = vpop.f32.mrb[34].mxu0 }
 0x561   : > { %v7262_v58 = vpop.f32.mrb[35].mxu1  ;;  %v7374_v8 = vpop.f32.mrb[35].mxu0 }
 0x562   : > { %6957 = vst [vmem:[%s11262_s11 + $0x18] sm:$0xff] %v6893_v24   ;;  %v5951_v4 = vadd.f32 %v7260_v38, %v11184_v31  ;;  %v7263_v25 = vadd.f32 %v7262_v58, %v7261_v6  ;;  %v7375_v10 = vadd.f32 %v7374_v8, %v7373_v32 }
 0x564   : > { %v6112_v1 = vadd.f32 %v7372_v34, %v5951_v4  ;;  %v5954_v45 = vadd.f32 %v7263_v25, %v11187_v19 }
 0x566   : > { %v6115_v49 = vadd.f32 %v7375_v10, %v5954_v45  ;;  %v7264_v28 = vpop.f32.mrb[36].mxu1  ;;  %v7376_v40 = vpop.f32.mrb[36].mxu0 }
 0x567   : > { %v7265_v20 = vpop.f32.mrb[37].mxu1  ;;  %v7377_v54 = vpop.f32.mrb[37].mxu0 }
 0x568   : > { %v6898_v59 = vpack.c.bf16 %v6115_v49, %v6112_v1  ;;  %v7266_v55 = vadd.f32 %v7265_v20, %v7264_v28  ;;  %v7378_v48 = vadd.f32 %v7377_v54, %v7376_v40  ;;  %v7267_v56 = vpop.f32.mrb[38].mxu1  ;;  %v7379_v0 = vpop.f32.mrb[38].mxu0 }
 0x569   : > { %v7268_v53 = vpop.f32.mrb[39].mxu1  ;;  %v7380_v46 = vpop.f32.mrb[39].mxu0 }
 0x56a   : > { %6958 = vst [vmem:[%s11262_s11 + $0x20] sm:$0xff] %v6898_v59   ;;  %v5959_v31 = vadd.f32 %v7266_v55, %v11190_v57  ;;  %v7269_v47 = vadd.f32 %v7268_v53, %v7267_v56  ;;  %v7381_v17 = vadd.f32 %v7380_v46, %v7379_v0 }
 0x56c   : > { %v6120_v21 = vadd.f32 %v7378_v48, %v5959_v31  ;;  %v5962_v19 = vadd.f32 %v7269_v47, %v11193_v41 }
 0x56e   : > { %v6123_v63 = vadd.f32 %v7381_v17, %v5962_v19  ;;  %v7270_v22 = vpop.f32.mrb[40].mxu1  ;;  %v7382_v27 = vpop.f32.mrb[40].mxu0 }
 0x56f   : > { %v7271_v36 = vpop.f32.mrb[41].mxu1  ;;  %v7383_v5 = vpop.f32.mrb[41].mxu0 }
 0x570   : > { %v6903_v43 = vpack.c.bf16 %v6123_v63, %v6120_v21  ;;  %v7272_v9 = vadd.f32 %v7271_v36, %v7270_v22  ;;  %v7384_v60 = vadd.f32 %v7383_v5, %v7382_v27  ;;  %v7273_v2 = vpop.f32.mrb[42].mxu1  ;;  %v7385_v35 = vpop.f32.mrb[42].mxu0 }
 0x571   : > { %v7274_v44 = vpop.f32.mrb[43].mxu1  ;;  %v7386_v51 = vpop.f32.mrb[43].mxu0 }
 0x572   : > { %6959 = vst [vmem:[%s11262_s11 + $0x28] sm:$0xff] %v6903_v43   ;;  %v5967_v57 = vadd.f32 %v7272_v9, %v11196_v14  ;;  %v7275_v42 = vadd.f32 %v7274_v44, %v7273_v2  ;;  %v7387_v24 = vadd.f32 %v7386_v51, %v7385_v35 }
 0x574   : > { %v6128_v38 = vadd.f32 %v7384_v60, %v5967_v57  ;;  %v5970_v41 = vadd.f32 %v7275_v42, %v11199_v52 }
 0x576   : > { %v6131_v34 = vadd.f32 %v7387_v24, %v5970_v41  ;;  %v7276_v6 = vpop.f32.mrb[44].mxu1  ;;  %v7388_v32 = vpop.f32.mrb[44].mxu0 }
 0x577   : > { %v7277_v58 = vpop.f32.mrb[45].mxu1  ;;  %v7389_v8 = vpop.f32.mrb[45].mxu0 }
 0x578   : > { %v6908_v4 = vpack.c.bf16 %v6131_v34, %v6128_v38  ;;  %v7278_v25 = vadd.f32 %v7277_v58, %v7276_v6  ;;  %v7390_v10 = vadd.f32 %v7389_v8, %v7388_v32  ;;  %v7279_v1 = vpop.f32.mrb[46].mxu1  ;;  %v7391_v45 = vpop.f32.mrb[46].mxu0 }
 0x579   : > { %v7280_v49 = vpop.f32.mrb[47].mxu1  ;;  %v7392_v28 = vpop.f32.mrb[47].mxu0 }
 0x57a   : > { %6960 = vst [vmem:[%s11262_s11 + $0x30] sm:$0xff] %v6908_v4   ;;  %v5975_v14 = vadd.f32 %v7278_v25, %v11202_v37  ;;  %v7281_v40 = vadd.f32 %v7280_v49, %v7279_v1  ;;  %v7393_v20 = vadd.f32 %v7392_v28, %v7391_v45 }
 0x57c   : > { %v6136_v54 = vadd.f32 %v7390_v10, %v5975_v14  ;;  %v5978_v52 = vadd.f32 %v7281_v40, %v11205_v30 }
 0x57e   : > { %v6139_v59 = vadd.f32 %v7393_v20, %v5978_v52  ;;  %v7282_v55 = vpop.f32.mrb[48].mxu1  ;;  %v7394_v48 = vpop.f32.mrb[48].mxu0 }
 0x57f   : > { %v7283_v56 = vpop.f32.mrb[49].mxu1  ;;  %v7395_v0 = vpop.f32.mrb[49].mxu0 }
 0x580   : > { %v6913_v53 = vpack.c.bf16 %v6139_v59, %v6136_v54  ;;  %v7284_v46 = vadd.f32 %v7283_v56, %v7282_v55  ;;  %v7396_v31 = vadd.f32 %v7395_v0, %v7394_v48  ;;  %v7285_v47 = vpop.f32.mrb[50].mxu1  ;;  %v7397_v17 = vpop.f32.mrb[50].mxu0 }
 0x581   : > { %v7286_v21 = vpop.f32.mrb[51].mxu1  ;;  %v7398_v19 = vpop.f32.mrb[51].mxu0 }
 0x582   : > { %6961 = vst [vmem:[%s11262_s11 + $0x38] sm:$0xff] %v6913_v53   ;;  %v5983_v37 = vadd.f32 %v7284_v46, %v11208_v61  ;;  %v7287_v63 = vadd.f32 %v7286_v21, %v7285_v47  ;;  %v7399_v22 = vadd.f32 %v7398_v19, %v7397_v17 }
 0x584   : > { %v6144_v27 = vadd.f32 %v7396_v31, %v5983_v37  ;;  %v5986_v30 = vadd.f32 %v7287_v63, %v11211_v11 }
 0x586   : > { %v6147_v36 = vadd.f32 %v7399_v22, %v5986_v30  ;;  %v7288_v5 = vpop.f32.mrb[52].mxu1  ;;  %v7400_v43 = vpop.f32.mrb[52].mxu0 }
 0x587   : > { %v7289_v9 = vpop.f32.mrb[53].mxu1  ;;  %v7401_v60 = vpop.f32.mrb[53].mxu0 }
 0x588   : > { %v6918_v2 = vpack.c.bf16 %v6147_v36, %v6144_v27  ;;  %v7290_v35 = vadd.f32 %v7289_v9, %v7288_v5  ;;  %v7402_v44 = vadd.f32 %v7401_v60, %v7400_v43  ;;  %v7291_v51 = vpop.f32.mrb[54].mxu1  ;;  %v7403_v57 = vpop.f32.mrb[54].mxu0 }
 0x589   : > { %v7292_v42 = vpop.f32.mrb[55].mxu1  ;;  %v7404_v24 = vpop.f32.mrb[55].mxu0 }
 0x58a   : > { %6962 = vst [vmem:[%s11262_s11 + $0x40] sm:$0xff] %v6918_v2   ;;  %v5991_v61 = vadd.f32 %v7290_v35, %v11214_v16  ;;  %v7293_v38 = vadd.f32 %v7292_v42, %v7291_v51  ;;  %v7405_v41 = vadd.f32 %v7404_v24, %v7403_v57 }
 0x58c   : > { %v6152_v34 = vadd.f32 %v7402_v44, %v5991_v61  ;;  %v5994_v11 = vadd.f32 %v7293_v38, %v11217_v7 }
 0x58e   : > { %v6155_v6 = vadd.f32 %v7405_v41, %v5994_v11  ;;  %v7294_v32 = vpop.f32.mrb[56].mxu1  ;;  %v7406_v58 = vpop.f32.mrb[56].mxu0 }
 0x58f   : > { %v7295_v8 = vpop.f32.mrb[57].mxu1  ;;  %v7407_v4 = vpop.f32.mrb[57].mxu0 }
 0x590   : > { %v6923_v25 = vpack.c.bf16 %v6155_v6, %v6152_v34  ;;  %v7296_v10 = vadd.f32 %v7295_v8, %v7294_v32  ;;  %v7408_v1 = vadd.f32 %v7407_v4, %v7406_v58  ;;  %v7297_v45 = vpop.f32.mrb[58].mxu1  ;;  %v7409_v49 = vpop.f32.mrb[58].mxu0 }
 0x591   : > { %v7298_v28 = vpop.f32.mrb[59].mxu1  ;;  %v7410_v14 = vpop.f32.mrb[59].mxu0 }
 0x592   : > { %6963 = vst [vmem:[%s11262_s11 + $0x48] sm:$0xff] %v6923_v25   ;;  %v5999_v16 = vadd.f32 %v7296_v10, %v11220_v29  ;;  %v7299_v40 = vadd.f32 %v7298_v28, %v7297_v45  ;;  %v7411_v20 = vadd.f32 %v7410_v14, %v7409_v49 }
 0x594   : > { %v6160_v54 = vadd.f32 %v7408_v1, %v5999_v16  ;;  %v6002_v7 = vadd.f32 %v7299_v40, %v11223_v33 }
 0x596   : > { %v6163_v52 = vadd.f32 %v7411_v20, %v6002_v7  ;;  %v7300_v59 = vpop.f32.mrb[60].mxu1  ;;  %v7412_v55 = vpop.f32.mrb[60].mxu0 }
 0x597   : > { %v7301_v48 = vpop.f32.mrb[61].mxu1  ;;  %v7413_v56 = vpop.f32.mrb[61].mxu0 }
 0x598   : > { %v6928_v0 = vpack.c.bf16 %v6163_v52, %v6160_v54  ;;  %v7302_v53 = vadd.f32 %v7301_v48, %v7300_v59  ;;  %v7414_v46 = vadd.f32 %v7413_v56, %v7412_v55  ;;  %v7303_v31 = vpop.f32.mrb[62].mxu1  ;;  %v7415_v47 = vpop.f32.mrb[62].mxu0 }
 0x599   : > { %v7304_v17 = vpop.f32.mrb[63].mxu1  ;;  %v7416_v21 = vpop.f32.mrb[63].mxu0 }
 0x59a   : > { %6964 = vst [vmem:[%s11262_s11 + $0x50] sm:$0xff] %v6928_v0   ;;  %v6007_v29 = vadd.f32 %v7302_v53, %v11226_v50  ;;  %v7305_v19 = vadd.f32 %v7304_v17, %v7303_v31  ;;  %v7417_v37 = vadd.f32 %v7416_v21, %v7415_v47 }
 0x59c   : > { %v6168_v63 = vadd.f32 %v7414_v46, %v6007_v29  ;;  %v6010_v33 = vadd.f32 %v7305_v19, %v11229_v62 }
 0x59e   : > { %v6171_v22 = vadd.f32 %v7417_v37, %v6010_v33  ;;  %v7306_v27 = vpop.f32.mrb[64].mxu1  ;;  %v7418_v30 = vpop.f32.mrb[64].mxu0 }
 0x59f   : > { %v7307_v36 = vpop.f32.mrb[65].mxu1  ;;  %v7419_v5 = vpop.f32.mrb[65].mxu0 }
 0x5a0   : > { %v6933_v43 = vpack.c.bf16 %v6171_v22, %v6168_v63  ;;  %v7308_v9 = vadd.f32 %v7307_v36, %v7306_v27  ;;  %v7420_v60 = vadd.f32 %v7419_v5, %v7418_v30  ;;  %v7309_v2 = vpop.f32.mrb[66].mxu1  ;;  %v7421_v35 = vpop.f32.mrb[66].mxu0 }
 0x5a1   : > { %v7310_v44 = vpop.f32.mrb[67].mxu1  ;;  %v7422_v51 = vpop.f32.mrb[67].mxu0 }
 0x5a2   : > { %6965 = vst [vmem:[%s11262_s11 + $0x58] sm:$0xff] %v6933_v43   ;;  %v6015_v50 = vadd.f32 %v7308_v9, %v11232_v12  ;;  %v7311_v57 = vadd.f32 %v7310_v44, %v7309_v2  ;;  %v7423_v42 = vadd.f32 %v7422_v51, %v7421_v35 }
 0x5a4   : > { %v6176_v24 = vadd.f32 %v7420_v60, %v6015_v50  ;;  %v6018_v62 = vadd.f32 %v7311_v57, %v11235_v15 }
 0x5a6   : > { %v6179_v61 = vadd.f32 %v7423_v42, %v6018_v62  ;;  %v7312_v38 = vpop.f32.mrb[68].mxu1  ;;  %v7424_v41 = vpop.f32.mrb[68].mxu0 }
 0x5a7   : > { %v7313_v34 = vpop.f32.mrb[69].mxu1  ;;  %v7425_v11 = vpop.f32.mrb[69].mxu0 }
 0x5a8   : > { %v6938_v6 = vpack.c.bf16 %v6179_v61, %v6176_v24  ;;  %v7314_v32 = vadd.f32 %v7313_v34, %v7312_v38  ;;  %v7426_v58 = vadd.f32 %v7425_v11, %v7424_v41  ;;  %v7315_v8 = vpop.f32.mrb[70].mxu1  ;;  %v7427_v4 = vpop.f32.mrb[70].mxu0 }
 0x5a9   : > { %v7316_v25 = vpop.f32.mrb[71].mxu1  ;;  %v7428_v10 = vpop.f32.mrb[71].mxu0 }
 0x5aa   : > { %6966 = vst [vmem:[%s11262_s11 + $0x60] sm:$0xff] %v6938_v6   ;;  %v6023_v12 = vadd.f32 %v7314_v32, %v11238_v26  ;;  %v7317_v1 = vadd.f32 %v7316_v25, %v7315_v8  ;;  %v7429_v45 = vadd.f32 %v7428_v10, %v7427_v4 }
 0x5ac   : > { %v6184_v49 = vadd.f32 %v7426_v58, %v6023_v12  ;;  %v6026_v15 = vadd.f32 %v7317_v1, %v11241_v39 }
 0x5ae   : > { %v6187_v28 = vadd.f32 %v7429_v45, %v6026_v15  ;;  %v7318_v14 = vpop.f32.mrb[72].mxu1  ;;  %v7430_v16 = vpop.f32.mrb[72].mxu0 }
 0x5af   : > { %v7319_v40 = vpop.f32.mrb[73].mxu1  ;;  %v7431_v20 = vpop.f32.mrb[73].mxu0 }
 0x5b0   : > { %v6943_v54 = vpack.c.bf16 %v6187_v28, %v6184_v49  ;;  %v7320_v7 = vadd.f32 %v7319_v40, %v7318_v14  ;;  %v7432_v52 = vadd.f32 %v7431_v20, %v7430_v16  ;;  %v7321_v59 = vpop.f32.mrb[74].mxu1  ;;  %v7433_v55 = vpop.f32.mrb[74].mxu0 }
 0x5b1   : > { %v7322_v48 = vpop.f32.mrb[75].mxu1  ;;  %v7434_v56 = vpop.f32.mrb[75].mxu0 }
 0x5b2   : > { %6967 = vst [vmem:[%s11262_s11 + $0x68] sm:$0xff] %v6943_v54   ;;  %v6031_v26 = vadd.f32 %v7320_v7, %v11244_v23  ;;  %v7323_v0 = vadd.f32 %v7322_v48, %v7321_v59  ;;  %v7435_v53 = vadd.f32 %v7434_v56, %v7433_v55 }
 0x5b4   : > { %v6192_v46 = vadd.f32 %v7432_v52, %v6031_v26  ;;  %v6034_v39 = vadd.f32 %v7323_v0, %v11247_v3 }
 0x5b6   : > { %v6195_v31 = vadd.f32 %v7435_v53, %v6034_v39  ;;  %v7324_v47 = vpop.f32.mrb[76].mxu1  ;;  %v7436_v17 = vpop.f32.mrb[76].mxu0 }
 0x5b7   : > { %v7325_v21 = vpop.f32.mrb[77].mxu1  ;;  %v7437_v29 = vpop.f32.mrb[77].mxu0 }
 0x5b8   : > { %v6948_v19 = vpack.c.bf16 %v6195_v31, %v6192_v46  ;;  %v7326_v37 = vadd.f32 %v7325_v21, %v7324_v47  ;;  %v7438_v63 = vadd.f32 %v7437_v29, %v7436_v17  ;;  %v7327_v33 = vpop.f32.mrb[78].mxu1  ;;  %v7439_v22 = vpop.f32.mrb[78].mxu0 }
 0x5b9   : > { %v7328_v27 = vpop.f32.mrb[79].mxu1  ;;  %v7440_v30 = vpop.f32.mrb[79].mxu0 }
 0x5ba   : > { %6968 = vst [vmem:[%s11262_s11 + $0x70] sm:$0xff] %v6948_v19   ;;  %v6039_v23 = vadd.f32 %v7326_v37, %v11250_v13  ;;  %v7329_v36 = vadd.f32 %v7328_v27, %v7327_v33  ;;  %v7441_v5 = vadd.f32 %v7440_v30, %v7439_v22 }
 0x5bc   : > { %v6200_v43 = vadd.f32 %v7438_v63, %v6039_v23  ;;  %v6042_v3 = vadd.f32 %v7329_v36, %v11253_v18 }
 0x5be   : > { %v6203_v9 = vadd.f32 %v7441_v5, %v6042_v3 }
 0x5c0   : > { %v6953_v60 = vpack.c.bf16 %v6203_v9, %v6200_v43 }
 0x5c2   : > { %6969 = vst [vmem:[%s11262_s11 + $0x78] sm:$0xff] %v6953_v60  }
 0x5c3 PF: > { %s19_s30 = sadd.s32 1, %s8170_s30  }
 0x5c4   : > { %p16_p4 = scmp.ge.s32.totalorder %s19_s30, 4  }
 0x5c6   :  { %18 = sbr.rel (!%p16_p4) target bundleno = 1 (0x1), region = 86 }

</bundles_post_ra>
